<compile_context>
chip_gen: v7x
topology: tpu7x:2x2x1
jax: 0.10.0
libtpu: 0.0.40
codegen_flags: <defaults>
</compile_context>

<pallas_src>
import functools
import math

import jax
import jax.numpy as jnp
import numpy as np
from jax.experimental import pallas as pl
from jax.experimental.pallas import tpu as pltpu


_MATMUL_DTYPE = jnp.bfloat16        # MXU operand dtype (accumulate in f32)
_MASK_VALUE = -1e30                 # finite "minus infinity" (NaN-safe)
_VMEM_LIMIT = 32 * 1024 * 1024      # explicit scoped-VMEM budget (v7x-safe)
_MAX_ROW_TILE = 512                 # rows per grid step for row-tiled kernels
_LANE = 128
_EPS = 1e-5


# ----------------------------- small helpers ---------------------------------

def _round_up(x, m):
    return ((x + m - 1) // m) * m


def _row_tiles(m):
    """(padded_rows, tile_rows): tile | padded, tile % 8 == 0, >=2 grid steps."""
    m = max(int(m), 1)
    mp8 = _round_up(m, 8)
    if mp8 <= 8:
        return mp8, mp8
    tm = min(_MAX_ROW_TILE, _round_up((mp8 + 1) // 2, 8))
    mp = _round_up(m, tm)
    return mp, tm


def _pad_rows(x2, mp):
    m = x2.shape[0]
    if mp == m:
        return x2
    return jnp.pad(x2, ((0, mp - m), (0, 0)))


def _compiler_params():
    return pltpu.CompilerParams(dimension_semantics=("parallel",),
                                vmem_limit_bytes=_VMEM_LIMIT)


def _w_spec(shape):
    """Grid-invariant (weight) block: whole array, same block every step."""
    nd = len(shape)
    return pl.BlockSpec(shape, lambda *_, _n=nd: (0,) * _n)


def _b_spec(shape):
    """Per-batch block: leading axis follows the grid index."""
    nd = len(shape)
    return pl.BlockSpec(shape, lambda i, *_, _n=nd: (i,) + (0,) * (_n - 1))


# --------------------------- in-kernel math helpers ---------------------------

def _ln(x, g, b, eps):
    mu = jnp.mean(x, axis=-1, keepdims=True)
    var = jnp.mean(jnp.square(x - mu), axis=-1, keepdims=True)
    return (x - mu) * jax.lax.rsqrt(var + eps) * g + b


def _gelu_erf(x):
    """Exact-erf GELU; erf via Abramowitz–Stegun 7.1.26 (f32-exact, exp-only)."""
    z = x * 0.7071067811865476
    a = jnp.abs(z)
    t = 1.0 / (1.0 + 0.3275911 * a)
    poly = t * (0.254829592 + t * (-0.284496736 + t * (1.421413741
                + t * (-1.453152027 + t * 1.061405429))))
    erf_a = 1.0 - poly * jnp.exp(-a * a)
    erf = jnp.where(z < 0.0, -erf_a, erf_a)
    return 0.5 * x * (1.0 + erf)


def _mha_fwd(xq_n, xkv, kv_len, w_in, b_in, w_o, b_o, *, num_heads, causal,
             self_attn, return_probs):
    """nn.MultiheadAttention (batch_first, eval) for one batch element.

    xq_n : (Tq, d) f32 query-side input (already LayerNorm'ed by the caller).
    xkv  : (S, d) f32 key/value-side input (ignored when self_attn=True).
    w_in : (d, 3d) bf16 fused in-projection (cols [0:d]=Q, [d:2d]=K, [2d:3d]=V).
    Returns (attn output after W_o + bias, head-averaged probs or None).
    """
    tq, d = xq_n.shape
    dh = d // num_heads
    scale = 1.0 / math.sqrt(dh)
    xq_bf = xq_n.astype(_MATMUL_DTYPE)

    if self_attn:
        s_len = tq
        qkv = jnp.dot(xq_bf, w_in, preferred_element_type=jnp.float32) + b_in
        q, k, v = qkv[:, :d], qkv[:, d:2 * d], qkv[:, 2 * d:]
    else:
        s_len = xkv.shape[0]
        q = (jnp.dot(xq_bf, w_in[:, :d], preferred_element_type=jnp.float32)
             + b_in[:, :d])
        kv = (jnp.dot(xkv.astype(_MATMUL_DTYPE), w_in[:, d:],
                      preferred_element_type=jnp.float32) + b_in[:, d:])
        k, v = kv[:, :d], kv[:, d:]

    col = jax.lax.broadcasted_iota(jnp.int32, (tq, s_len), 1)
    masked = col >= kv_len                            # key padding
    if causal:
        row = jax.lax.broadcasted_iota(jnp.int32, (tq, s_len), 0)
        masked = jnp.logical_or(masked, col > row)    # strict upper triangle

    out = jnp.zeros((tq, d), jnp.float32)
    p_sum = jnp.zeros((tq, s_len), jnp.float32)
    for h in range(num_heads):                        # static unroll (H is tiny)
        sl = slice(h * dh, (h + 1) * dh)
        sc = jax.lax.dot_general(
            q[:, sl].astype(_MATMUL_DTYPE), k[:, sl].astype(_MATMUL_DTYPE),
            (((1,), (1,)), ((), ())),
            preferred_element_type=jnp.float32) * scale
        sc = jnp.where(masked, _MASK_VALUE, sc)
        ex = jnp.exp(sc - jnp.max(sc, axis=-1, keepdims=True))
        p = ex * pl.reciprocal(jnp.sum(ex, axis=-1, keepdims=True), approx=True)
        ctx = jnp.dot(p.astype(_MATMUL_DTYPE), v[:, sl].astype(_MATMUL_DTYPE),
                      preferred_element_type=jnp.float32)
        # ctx @ W_o == sum_h ctx_h @ W_o[h*dh:(h+1)*dh]   (avoids a concat)
        out = out + jnp.dot(ctx.astype(_MATMUL_DTYPE), w_o[sl, :],
                            preferred_element_type=jnp.float32)
        if return_probs:
            p_sum = p_sum + p
    out = out + b_o
    if not return_probs:
        return out, None
    return out, p_sum * (1.0 / num_heads)             # PyTorch head-averaged probs


def _ffn(x_in, res, w1, b1, w2, b2):
    """W1 -> exact-erf GELU -> W2 -> +residual, all resident in VMEM."""
    h = jnp.dot(x_in.astype(_MATMUL_DTYPE), w1,
                preferred_element_type=jnp.float32) + b1
    h = _gelu_erf(h)
    return res + jnp.dot(h.astype(_MATMUL_DTYPE), w2,
                         preferred_element_type=jnp.float32) + b2


# ----------------------------- Pallas kernels --------------------------------

def _linear_kernel(x_ref, w_ref, b_ref, o_ref, *, activation):
    y = jnp.dot(x_ref[...].astype(_MATMUL_DTYPE), w_ref[...],
                preferred_element_type=jnp.float32) + b_ref[...]
    if activation == "relu":
        y = jnp.maximum(y, 0.0)
    o_ref[...] = y


def _encoder_head_kernel(x_ref, g_ref, beta_ref, w_ref, b_ref, xn_ref, lp_ref,
                         *, valid_n, eps):
    # after_norm + CTC head + log_softmax, lane-dense (vocab padded to 128)
    xn = _ln(x_ref[...], g_ref[...], beta_ref[...], eps)
    xn_ref[...] = xn
    logits = jnp.dot(xn.astype(_MATMUL_DTYPE), w_ref[...],
                     preferred_element_type=jnp.float32) + b_ref[...]
    col = jax.lax.broadcasted_iota(jnp.int32, logits.shape, 1)
    logits = jnp.where(col < valid_n, logits, _MASK_VALUE)
    m = jnp.max(logits, axis=-1, keepdims=True)
    z = logits - m
    lse = jnp.log(jnp.sum(jnp.exp(z), axis=-1, keepdims=True))
    lp_ref[...] = z - lse


def _encoder_layer_kernel(xlen_ref, x_ref, png_ref, pnb_ref,
                          win_ref, bin_ref, wo_ref, bo_ref,
                          n1g_ref, n1b_ref, w1_ref, b1_ref, w2_ref, b2_ref,
                          n2g_ref, n2b_ref, o_ref, *, num_heads, eps):
    """Whole EncoderLayer fused: pre_norm -> MHA -> +res -> norm1 -> FFN -> +res
    -> norm2.  One grid step == one batch element; padding mask from xlen."""
    b = pl.program_id(0)
    kv_len = xlen_ref[b]
    x = x_ref[0]                                               # (T, d) f32
    xn = _ln(x, png_ref[...], pnb_ref[...], eps)
    attn, _ = _mha_fwd(xn, xn, kv_len, win_ref[...], bin_ref[...],
                       wo_ref[...], bo_ref[...],
                       num_heads=num_heads, causal=False, self_attn=True,
                       return_probs=False)
    y = x + attn                                               # residual
    yn = _ln(y, n1g_ref[...], n1b_ref[...], eps)               # norm1
    z = _ffn(yn, y, w1_ref[...], b1_ref[...], w2_ref[...], b2_ref[...])
    o_ref[0] = _ln(z, n2g_ref[...], n2b_ref[...], eps)         # norm2


def _decoder_layer_kernel(enclen_ref, tgtlen_ref, x_ref, enc_ref,
                          png_ref, pnb_ref,
                          w1in_ref, b1in_ref, w1o_ref, b1o_ref,
                          l1g_ref, l1b_ref,
                          w2in_ref, b2in_ref, w2o_ref, b2o_ref,
                          f1w_ref, f1b_ref, f2w_ref, f2b_ref,
                          l3g_ref, l3b_ref,
                          o_ref, p1_ref, p2_ref, *, num_heads, eps):
    """Whole DecoderLayer fused: pre_norm -> causal self-MHA -> +res -> LN1 ->
    cross-MHA -> +res -> FFN -> +res -> LN3.  Emits head-averaged probs."""
    b = pl.program_id(0)
    tgt_len = tgtlen_ref[b]
    enc_len = enclen_ref[b]
    x = x_ref[0]                                               # (L, d)
    enc = enc_ref[0]                                           # (S, d)

    # masked self-attention (pre_norm, causal + target key padding)
    xn = _ln(x, png_ref[...], pnb_ref[...], eps)
    a1, p1 = _mha_fwd(xn, xn, tgt_len, w1in_ref[...], b1in_ref[...],
                      w1o_ref[...], b1o_ref[...],
                      num_heads=num_heads, causal=True, self_attn=True,
                      return_probs=True)
    y = _ln(x + a1, l1g_ref[...], l1b_ref[...], eps)           # layernorm1

    # cross-attention: query AND residual base are layernorm1 output (reference)
    a2, p2 = _mha_fwd(y, enc, enc_len, w2in_ref[...], b2in_ref[...],
                      w2o_ref[...], b2o_ref[...],
                      num_heads=num_heads, causal=False, self_attn=False,
                      return_probs=True)
    z = y + a2

    # FFN (no pre-norm in the decoder reference), residual, layernorm3
    f = _ffn(z, z, f1w_ref[...], f1b_ref[...], f2w_ref[...], f2b_ref[...])
    o_ref[0] = _ln(f, l3g_ref[...], l3b_ref[...], eps)
    p1_ref[0] = p1
    p2_ref[0] = p2


# ----------------------------- kernel wrappers --------------------------------

def pallas_linear(x, w, b, activation=None, out_valid_cols=None):
    """x: (..., K) @ w(bf16): (K, N) + b: (1, N); rows tiled with a parallel grid."""
    shape = x.shape
    k = shape[-1]
    n = w.shape[1]
    x2 = x.reshape(-1, k)
    m = x2.shape[0]
    mp, tm = _row_tiles(m)
    x2 = _pad_rows(x2, mp)
    cost = pl.CostEstimate(flops=int(2 * mp * k * n), transcendentals=0,
                           bytes_accessed=int(4 * (mp * k + mp * n) + 2 * k * n))
    out = pl.pallas_call(
        functools.partial(_linear_kernel, activation=activation),
        out_shape=jax.ShapeDtypeStruct((mp, n), jnp.float32),
        grid=(mp // tm,),
        in_specs=[pl.BlockSpec((tm, k), lambda i: (i, 0)),
                  pl.BlockSpec((k, n), lambda i: (0, 0)),
                  pl.BlockSpec((1, n), lambda i: (0, 0))],
        out_specs=pl.BlockSpec((tm, n), lambda i: (i, 0)),
        compiler_params=_compiler_params(),
        cost_estimate=cost,
    )(x2, w, b)
    out = out[:m]
    if out_valid_cols is not None:
        out = out[:, :out_valid_cols]
        n = out_valid_cols
    return out.reshape(shape[:-1] + (n,))


def pallas_encoder_head(x, ln_p, w, b, valid_n):
    """after_norm + CTC head + log_softmax (lane-dense padded vocab)."""
    shape = x.shape
    d = shape[-1]
    npad = w.shape[1]
    x2 = x.reshape(-1, d)
    m = x2.shape[0]
    mp, tm = _row_tiles(m)
    x2 = _pad_rows(x2, mp)
    cost = pl.CostEstimate(flops=int(2 * mp * d * npad),
                           transcendentals=int(2 * mp * npad),
                           bytes_accessed=int(4 * (2 * mp * d + mp * npad)
                                              + 2 * d * npad))
    xn, lp = pl.pallas_call(
        functools.partial(_encoder_head_kernel, valid_n=valid_n, eps=_EPS),
        out_shape=(jax.ShapeDtypeStruct((mp, d), jnp.float32),
                   jax.ShapeDtypeStruct((mp, npad), jnp.float32)),
        grid=(mp // tm,),
        in_specs=[pl.BlockSpec((tm, d), lambda i: (i, 0)),
                  pl.BlockSpec((1, d), lambda i: (0, 0)),
                  pl.BlockSpec((1, d), lambda i: (0, 0)),
                  pl.BlockSpec((d, npad), lambda i: (0, 0)),
                  pl.BlockSpec((1, npad), lambda i: (0, 0))],
        out_specs=(pl.BlockSpec((tm, d), lambda i: (i, 0)),
                   pl.BlockSpec((tm, npad), lambda i: (i, 0))),
        compiler_params=_compiler_params(),
        cost_estimate=cost,
    )(x2, ln_p["g"], ln_p["b"], w, b)
    xn = xn[:m].reshape(shape)
    lp = lp[:m, :valid_n].reshape(shape[:-1] + (valid_n,))
    return xn, lp


def pallas_encoder_layer(x, x_len, p, *, num_heads):
    """One fused EncoderLayer; grid over batch ('parallel', one TC per element)."""
    b, t, d = x.shape
    attn, ffn = p["attn"], p["ffn"]
    dff = ffn["w1"].shape[1]
    dh = d // num_heads
    flops = 2 * b * (t * d * 3 * d + 2 * num_heads * t * t * dh + t * d * d
                     + 2 * t * d * dff)
    cost = pl.CostEstimate(
        flops=int(flops),
        transcendentals=int(b * t * (num_heads * t + dff)),
        bytes_accessed=int(8 * b * t * d + 2 * (4 * d * d + 2 * d * dff)))
    grid_spec = pltpu.PrefetchScalarGridSpec(
        num_scalar_prefetch=1, grid=(b,),
        in_specs=[
            _b_spec((1, t, d)),
            _w_spec((1, d)), _w_spec((1, d)),             # pre_norm
            _w_spec((d, 3 * d)), _w_spec((1, 3 * d)),     # attn in-proj
            _w_spec((d, d)), _w_spec((1, d)),             # attn out-proj
            _w_spec((1, d)), _w_spec((1, d)),             # norm1
            _w_spec((d, dff)), _w_spec((1, dff)),         # ffn W1
            _w_spec((dff, d)), _w_spec((1, d)),           # ffn W2
            _w_spec((1, d)), _w_spec((1, d)),             # norm2
        ],
        out_specs=_b_spec((1, t, d)))
    return pl.pallas_call(
        functools.partial(_encoder_layer_kernel, num_heads=num_heads, eps=_EPS),
        grid_spec=grid_spec,
        out_shape=jax.ShapeDtypeStruct((b, t, d), jnp.float32),
        compiler_params=_compiler_params(),
        cost_estimate=cost,
    )(x_len.astype(jnp.int32), x,
      p["pre_norm"]["g"], p["pre_norm"]["b"],
      attn["w_in"], attn["b_in"], attn["w_o"], attn["b_o"],
      p["norm1"]["g"], p["norm1"]["b"],
      ffn["w1"], ffn["b1"], ffn["w2"], ffn["b2"],
      p["norm2"]["g"], p["norm2"]["b"])


def pallas_decoder_layer(x, enc_out, enc_len, tgt_len, p, *, num_heads):
    """One fused DecoderLayer; grid over batch ('parallel')."""
    b, l, d = x.shape
    s = enc_out.shape[1]
    dff = p["ffn"]["w1"].shape[1]
    dh = d // num_heads
    flops = 2 * b * (l * d * 3 * d + s * d * 2 * d + 2 * l * d * d
                     + 2 * num_heads * (l * l + l * s) * dh + 2 * l * d * dff)
    cost = pl.CostEstimate(
        flops=int(flops),
        transcendentals=int(b * l * (num_heads * (l + s) + dff)),
        bytes_accessed=int(4 * (2 * b * l * d + b * s * d + b * l * (l + s))
                           + 2 * (8 * d * d + 2 * d * dff)))
    grid_spec = pltpu.PrefetchScalarGridSpec(
        num_scalar_prefetch=2, grid=(b,),
        in_specs=[
            _b_spec((1, l, d)),
            _b_spec((1, s, d)),
            _w_spec((1, d)), _w_spec((1, d)),             # pre_norm
            _w_spec((d, 3 * d)), _w_spec((1, 3 * d)),     # mha1 in-proj
            _w_spec((d, d)), _w_spec((1, d)),             # mha1 out-proj
            _w_spec((1, d)), _w_spec((1, d)),             # layernorm1
            _w_spec((d, 3 * d)), _w_spec((1, 3 * d)),     # mha2 in-proj
            _w_spec((d, d)), _w_spec((1, d)),             # mha2 out-proj
            _w_spec((d, dff)), _w_spec((1, dff)),         # ffn W1
            _w_spec((dff, d)), _w_spec((1, d)),           # ffn W2
            _w_spec((1, d)), _w_spec((1, d)),             # layernorm3
        ],
        out_specs=(_b_spec((1, l, d)), _b_spec((1, l, l)), _b_spec((1, l, s))))
    out_shape = (jax.ShapeDtypeStruct((b, l, d), jnp.float32),
                 jax.ShapeDtypeStruct((b, l, l), jnp.float32),
                 jax.ShapeDtypeStruct((b, l, s), jnp.float32))
    return pl.pallas_call(
        functools.partial(_decoder_layer_kernel, num_heads=num_heads, eps=_EPS),
        grid_spec=grid_spec,
        out_shape=out_shape,
        compiler_params=_compiler_params(),
        cost_estimate=cost,
    )(enc_len.astype(jnp.int32), tgt_len.astype(jnp.int32), x, enc_out,
      p["pre_norm"]["g"], p["pre_norm"]["b"],
      p["mha1"]["w_in"], p["mha1"]["b_in"], p["mha1"]["w_o"], p["mha1"]["b_o"],
      p["ln1"]["g"], p["ln1"]["b"],
      p["mha2"]["w_in"], p["mha2"]["b_in"], p["mha2"]["w_o"], p["mha2"]["b_o"],
      p["ffn"]["w1"], p["ffn"]["b1"], p["ffn"]["w2"], p["ffn"]["b2"],
      p["ln3"]["g"], p["ln3"]["b"])


# ----------------------------- glue / model ----------------------------------

def closest_factors(n):
    f = int(n ** 0.5)
    while n % f != 0:
        f -= 1
    return (max(f, n // f), min(f, n // f))


def positional_encoding_table(max_len, d_model):
    position = np.arange(max_len, dtype=np.float32)[:, None]
    div_term = np.exp(np.arange(0, d_model, 2, dtype=np.float32)
                      * (-math.log(10000.0) / d_model))
    pe = np.zeros((max_len, d_model), dtype=np.float32)
    pe[:, 0::2] = np.sin(position * div_term)
    pe[:, 1::2] = np.cos(position * div_term)
    return jnp.asarray(pe)


def im2col(x, kh, kw, sh, sw):
    # x: (B, H, W, C) -> (B, Ho, Wo, C*kh*kw) with torch (c, ki, kj) flatten order
    # TODO(synk): the 3x3 patch gather could be fused into the conv matmul kernel
    # (strided pl.ds window reads) to cut HBM traffic ~9x at real sizes.
    B, H, W, C = x.shape
    Ho = (H - kh) // sh + 1
    Wo = (W - kw) // sw + 1
    cols = []
    for ki in range(kh):
        for kj in range(kw):
            cols.append(x[:, ki: ki + sh * Ho: sh, kj: kj + sw * Wo: sw, :])
    p = jnp.stack(cols, axis=3)               # (B, Ho, Wo, kh*kw, C)
    p = jnp.transpose(p, (0, 1, 2, 4, 3))     # (B, Ho, Wo, C, kh*kw)
    return p.reshape(B, Ho, Wo, C * kh * kw)


def conv2d_subsampling_fwd(p, x, cfg):
    ts1, ts2 = cfg["tstrides"]
    fs1, fs2 = cfg["fstrides"]
    x = x[..., None]                                            # (B, T, F, 1)
    p1 = im2col(x, 3, 3, ts1, fs1)
    y1 = pallas_linear(p1, p["conv1_w"], p["conv1_b"], activation="relu")
    p2 = im2col(y1, 3, 3, ts2, fs2)
    y2 = pallas_linear(p2, p["conv2_w"], p["conv2_b"], activation="relu")
    B, T2, F2, C = y2.shape
    y = jnp.transpose(y2, (0, 1, 3, 2)).reshape(B, T2, C * F2)  # torch (c, f) order
    return pallas_linear(y, p["proj_w"], p["proj_b"])           # Dropout = identity


def encoder_fwd(p, x, x_len, cfg):
    T = x.shape[1]
    x = x + p["pe"][None, :T, :]
    # Encoder.forward: x = pos_enc(x); x_res = dropout(x); x = x + x_res
    # with dropout = identity (eval) this is a doubling of the PE-added input.
    x = x + x
    for lp in p["layers"]:
        x = pallas_encoder_layer(x, x_len, lp, num_heads=cfg["enc_num_heads"])
    xn, ctc_log = pallas_encoder_head(x, p["after_norm"], p["ctc_w"], p["ctc_b"],
                                      cfg["vocab"])
    return xn, x_len, jnp.transpose(ctc_log, (1, 0, 2))


def decoder_fwd(p, targets, target_lengths, enc_out, enc_len, cfg):
    L = targets.shape[1]
    x = p["embedding"][targets] + p["pe"][None, :L, :]
    att = {}
    for i, lp in enumerate(p["layers"]):
        x, w1, w2 = pallas_decoder_layer(x, enc_out, enc_len, target_lengths, lp,
                                         num_heads=cfg["dec_num_heads"])
        att["layer{}_dec_self".format(i + 1)] = w1
        att["layer{}_dec_cross".format(i + 1)] = w2
    seq_out = pallas_linear(x, p["final_w"], p["final_b"],
                            out_valid_cols=cfg["vocab"])
    return seq_out, att


def transformer_fwd(P, padded_input, input_lengths, padded_target, target_lengths,
                    cfg):
    # mode == 'full'; eval semantics
    x = conv2d_subsampling_fwd(P["emb"], padded_input, cfg)
    tdf = cfg["time_downsampling_factor"]
    x_len = jnp.ceil(input_lengths.astype(jnp.float32) / tdf).astype(jnp.int32)
    x_len = jnp.minimum(x_len, x.shape[1])
    enc_out, enc_len, ctc_out = encoder_fwd(P["enc"], x, x_len, cfg)
    seq_out, att = decoder_fwd(P["dec"], padded_target,
                               target_lengths.astype(jnp.int32),
                               enc_out, enc_len, cfg)
    return seq_out, att, ctc_out


# ----------------------------- parameter init --------------------------------

def init_params(seed, cfg):
    keys = iter(jax.random.split(jax.random.PRNGKey(seed), 512))

    def nrm(shape, scale=0.05, dtype=jnp.float32):
        w = scale * jax.random.normal(next(keys), shape, dtype=jnp.float32)
        return w.astype(dtype)

    d, dff, V = cfg["d_model"], cfg["d_ff"], cfg["vocab"]
    Vpad = _round_up(V, _LANE)
    WDT = _MATMUL_DTYPE   # matmul weights pre-cast to bf16 at the boundary

    def ln():
        return {"g": jnp.ones((1, d), jnp.float32),
                "b": jnp.zeros((1, d), jnp.float32)}

    def mha():
        # fused in-projection: columns [0:d]=Q, [d:2d]=K, [2d:3d]=V
        return {"w_in": nrm((d, 3 * d), dtype=WDT), "b_in": nrm((1, 3 * d)),
                "w_o": nrm((d, d), dtype=WDT), "b_o": nrm((1, d))}

    def ffn():
        return {"w1": nrm((d, dff), dtype=WDT), "b1": nrm((1, dff)),
                "w2": nrm((dff, d), dtype=WDT), "b2": nrm((1, d))}

    fs1, fs2 = cfg["fstrides"]
    c1 = (cfg["input_dim"] - 2 - 1) // fs1 + 1
    c2 = (c1 - 2 - 1) // fs2 + 1
    conv_out_dim = d * c2

    # conv kernels stored directly as im2col matmul matrices ((c,ki,kj) x out_ch)
    emb = {"conv1_w": nrm((1 * 9, d), dtype=WDT), "conv1_b": nrm((1, d)),
           "conv2_w": nrm((d * 9, d), dtype=WDT), "conv2_b": nrm((1, d)),
           "proj_w": nrm((conv_out_dim, d), dtype=WDT), "proj_b": nrm((1, d))}

    def pad_head(w, b):
        wp = jnp.zeros((d, Vpad), jnp.float32).at[:, :V].set(w).astype(WDT)
        bp = jnp.zeros((1, Vpad), jnp.float32).at[:, :V].set(b)
        return wp, bp

    ctc_w, ctc_b = pad_head(nrm((d, V)), nrm((1, V)))
    fin_w, fin_b = pad_head(nrm((d, V)), nrm((1, V)))

    enc = {"pe": positional_encoding_table(cfg["enc_max_len"], d),
           "layers": [{"pre_norm": ln(), "attn": mha(), "norm1": ln(),
                       "ffn": ffn(), "norm2": ln()}
                      for _ in range(cfg["enc_num_layers"])],
           "after_norm": ln(), "ctc_w": ctc_w, "ctc_b": ctc_b}

    dec = {"embedding": nrm((V, d)),
           "pe": positional_encoding_table(cfg["trans_max_len"], d),
           "layers": [{"pre_norm": ln(), "mha1": mha(), "ln1": ln(),
                       "mha2": mha(), "ffn": ffn(), "ln3": ln()}
                      for _ in range(cfg["dec_num_layers"])],
           "final_w": fin_w, "final_b": fin_b}

    return {"emb": emb, "enc": enc, "dec": dec}


# ----------------------------- main -------------------------------------------

if __name__ == "__main__":
    input_dim = 16
    time_stride = 2
    feature_stride = 2
    d_model = 32
    enc_num_layers = 2
    enc_num_heads = 2
    speech_max_len = 64
    dec_num_layers = 2
    dec_num_heads = 2
    d_ff = 64
    target_vocab_size = 40
    trans_max_len = 16

    tstrides = closest_factors(time_stride)     # (2, 1)
    fstrides = closest_factors(feature_stride)  # (2, 1)
    tdf = tstrides[0] * tstrides[1]

    cfg = {
        "input_dim": input_dim,
        "d_model": d_model,
        "d_ff": d_ff,
        "vocab": target_vocab_size,
        "enc_num_layers": enc_num_layers,
        "enc_num_heads": enc_num_heads,
        "dec_num_layers": dec_num_layers,
        "dec_num_heads": dec_num_heads,
        "tstrides": tstrides,
        "fstrides": fstrides,
        "time_downsampling_factor": tdf,
        "enc_max_len": int(np.ceil(speech_max_len / tdf)),
        "trans_max_len": trans_max_len,
    }

    params = init_params(0, cfg)

    key = jax.random.PRNGKey(0)
    k1, k2 = jax.random.split(key)
    B, T_in, L_t = 2, 16, 8
    padded_input = jax.random.normal(k1, (B, T_in, input_dim), dtype=jnp.float32)
    input_lengths = jnp.array([16, 8], dtype=jnp.int32)
    padded_target = jax.random.randint(k2, (B, L_t), 1, target_vocab_size,
                                       dtype=jnp.int32)
    target_lengths = jnp.array([8, 5], dtype=jnp.int32)

    fwd = jax.jit(functools.partial(transformer_fwd, cfg=cfg))
    seq_out, att, ctc_out = fwd(params, padded_input, input_lengths,
                                padded_target, target_lengths)
    jax.block_until_ready((seq_out, att, ctc_out))

    assert seq_out.shape == (B, L_t, target_vocab_size)
    assert ctc_out.shape[1] == B and ctc_out.shape[2] == target_vocab_size
    assert att["layer1_dec_self"].shape == (B, L_t, L_t)
    assert att["layer1_dec_cross"].shape[0] == B
    assert bool(jnp.all(jnp.isfinite(seq_out)))
    assert bool(jnp.all(jnp.isfinite(ctc_out)))
    assert bool(jnp.all(jnp.isfinite(att["layer1_dec_self"])))
    # TODO(synk): BiLSTMEmbedding / greedy & beam search decode loops are not
    # exercised in mode='full' and are not implemented as Pallas kernels.
    print("KERNEL_OK")
</pallas_src>

<mosaic_0001>
module attributes {stable_mosaic.version = 11 : i64} {
  func.func @_linear_kernel(%arg0: i32, %arg1: memref<56x9xf32, #tpu.memory_space<vmem>>, %arg2: memref<9x32xbf16, #tpu.memory_space<vmem>>, %arg3: memref<1x32xf32, #tpu.memory_space<vmem>>, %arg4: memref<56x32xf32, #tpu.memory_space<vmem>>) attributes {dimension_semantics = [#tpu.dimension_semantics<parallel>], iteration_bounds = array<i64: 2>, scalar_prefetch = 0 : i64, scratch_operands = 0 : i64, tpu.core_type = #tpu.core_type<tc>, window_params = [{transform_indices = @transform_0, window_bounds = array<i64: 56, 9>}, {pipeline_mode = #tpu.pipeline_mode<synchronous>, transform_indices = @transform_1, window_bounds = array<i64: 9, 32>}, {pipeline_mode = #tpu.pipeline_mode<synchronous>, transform_indices = @transform_2, window_bounds = array<i64: 1, 32>}, {transform_indices = @transform_3, window_bounds = array<i64: 56, 32>}]} {
    %c0 = arith.constant 0 : index
    %c0_0 = arith.constant 0 : index
    %0 = vector.load %arg1[%c0, %c0_0] : memref<56x9xf32, #tpu.memory_space<vmem>>, vector<56x9xf32>
    %1 = arith.truncf %0 : vector<56x9xf32> to vector<56x9xbf16>
    %c0_1 = arith.constant 0 : index
    %c0_2 = arith.constant 0 : index
    %2 = vector.load %arg2[%c0_1, %c0_2] : memref<9x32xbf16, #tpu.memory_space<vmem>>, vector<9x32xbf16>
    %cst = arith.constant dense<0.000000e+00> : vector<56x32xf32>
    %3 = tpu.matmul %1, %2, %cst {dimension_numbers = #tpu.dot_dimension_numbers<[1], [0], [0], [1], [0, 0, 1, 1], [], []>} : vector<56x9xbf16>, vector<9x32xbf16>, vector<56x32xf32> -> vector<56x32xf32>
    %c0_3 = arith.constant 0 : index
    %c0_4 = arith.constant 0 : index
    %4 = vector.load %arg3[%c0_3, %c0_4] : memref<1x32xf32, #tpu.memory_space<vmem>>, vector<1x32xf32>
    %5 = vector.broadcast %4 : vector<1x32xf32> to vector<56x32xf32>
    %6 = arith.addf %3, %5 : vector<56x32xf32>
    %cst_5 = arith.constant 0.000000e+00 : f32
    %7 = vector.broadcast %cst_5 : f32 to vector<56x32xf32>
    %8 = arith.maximumf %6, %7 : vector<56x32xf32>
    %c0_6 = arith.constant 0 : index
    %c0_7 = arith.constant 0 : index
    %9 = vector.load %arg4[%c0_6, %c0_7] : memref<56x32xf32, #tpu.memory_space<vmem>>, vector<56x32xf32>
    tpu.vector_store %arg4[%c0_6, %c0_7], %8 {strides = array<i32>} : memref<56x32xf32, #tpu.memory_space<vmem>>, vector<56x32xf32>,
    return
  }
  func.func @transform_0(%arg0: i32) -> (i32, i32) {
    %c0_i32 = arith.constant 0 : i32
    %c0_i32_0 = arith.constant 0 : i32
    return %arg0, %c0_i32 : i32, i32
  }
  func.func @transform_1(%arg0: i32) -> (i32, i32) {
    %c0_i32 = arith.constant 0 : i32
    %c0_i32_0 = arith.constant 0 : i32
    %c0_i32_1 = arith.constant 0 : i32
    return %c0_i32, %c0_i32_0 : i32, i32
  }
  func.func @transform_2(%arg0: i32) -> (i32, i32) {
    %c0_i32 = arith.constant 0 : i32
    %c0_i32_0 = arith.constant 0 : i32
    %c0_i32_1 = arith.constant 0 : i32
    return %c0_i32, %c0_i32_0 : i32, i32
  }
  func.func @transform_3(%arg0: i32) -> (i32, i32) {
    %c0_i32 = arith.constant 0 : i32
    %c0_i32_0 = arith.constant 0 : i32
    return %arg0, %c0_i32 : i32, i32
  }
}

module attributes {stable_mosaic.version = 11 : i64} {
  func.func @_linear_kernel(%arg0: i32, %arg1: memref<32x288xf32, #tpu.memory_space<vmem>>, %arg2: memref<288x32xbf16, #tpu.memory_space<vmem>>, %arg3: memref<1x32xf32, #tpu.memory_space<vmem>>, %arg4: memref<32x32xf32, #tpu.memory_space<vmem>>) attributes {dimension_semantics = [#tpu.dimension_semantics<parallel>], iteration_bounds = array<i64: 2>, scalar_prefetch = 0 : i64, scratch_operands = 0 : i64, tpu.core_type = #tpu.core_type<tc>, window_params = [{transform_indices = @transform_0, window_bounds = array<i64: 32, 288>}, {pipeline_mode = #tpu.pipeline_mode<synchronous>, transform_indices = @transform_1, window_bounds = array<i64: 288, 32>}, {pipeline_mode = #tpu.pipeline_mode<synchronous>, transform_indices = @transform_2, window_bounds = array<i64: 1, 32>}, {transform_indices = @transform_3, window_bounds = array<i64: 32, 32>}]} {
    %c0 = arith.constant 0 : index
    %c0_0 = arith.constant 0 : index
    %0 = vector.load %arg1[%c0, %c0_0] : memref<32x288xf32, #tpu.memory_space<vmem>>, vector<32x288xf32>
    %1 = arith.truncf %0 : vector<32x288xf32> to vector<32x288xbf16>
    %c0_1 = arith.constant 0 : index
    %c0_2 = arith.constant 0 : index
    %2 = vector.load %arg2[%c0_1, %c0_2] : memref<288x32xbf16, #tpu.memory_space<vmem>>, vector<288x32xbf16>
    %cst = arith.constant dense<0.000000e+00> : vector<32x32xf32>
    %3 = tpu.matmul %1, %2, %cst {dimension_numbers = #tpu.dot_dimension_numbers<[1], [0], [0], [1], [0, 0, 1, 1], [], []>} : vector<32x288xbf16>, vector<288x32xbf16>, vector<32x32xf32> -> vector<32x32xf32>
    %c0_3 = arith.constant 0 : index
    %c0_4 = arith.constant 0 : index
    %4 = vector.load %arg3[%c0_3, %c0_4] : memref<1x32xf32, #tpu.memory_space<vmem>>, vector<1x32xf32>
    %5 = vector.broadcast %4 : vector<1x32xf32> to vector<32x32xf32>
    %6 = arith.addf %3, %5 : vector<32x32xf32>
    %cst_5 = arith.constant 0.000000e+00 : f32
    %7 = vector.broadcast %cst_5 : f32 to vector<32x32xf32>
    %8 = arith.maximumf %6, %7 : vector<32x32xf32>
    %c0_6 = arith.constant 0 : index
    %c0_7 = arith.constant 0 : index
    %9 = vector.load %arg4[%c0_6, %c0_7] : memref<32x32xf32, #tpu.memory_space<vmem>>, vector<32x32xf32>
    tpu.vector_store %arg4[%c0_6, %c0_7], %8 {strides = array<i32>} : memref<32x32xf32, #tpu.memory_space<vmem>>, vector<32x32xf32>,
    return
  }
  func.func @transform_0(%arg0: i32) -> (i32, i32) {
    %c0_i32 = arith.constant 0 : i32
    %c0_i32_0 = arith.constant 0 : i32
    return %arg0, %c0_i32 : i32, i32
  }
  func.func @transform_1(%arg0: i32) -> (i32, i32) {
    %c0_i32 = arith.constant 0 : i32
    %c0_i32_0 = arith.constant 0 : i32
    %c0_i32_1 = arith.constant 0 : i32
    return %c0_i32, %c0_i32_0 : i32, i32
  }
  func.func @transform_2(%arg0: i32) -> (i32, i32) {
    %c0_i32 = arith.constant 0 : i32
    %c0_i32_0 = arith.constant 0 : i32
    %c0_i32_1 = arith.constant 0 : i32
    return %c0_i32, %c0_i32_0 : i32, i32
  }
  func.func @transform_3(%arg0: i32) -> (i32, i32) {
    %c0_i32 = arith.constant 0 : i32
    %c0_i32_0 = arith.constant 0 : i32
    return %arg0, %c0_i32 : i32, i32
  }
}

module attributes {stable_mosaic.version = 11 : i64} {
  func.func @_linear_kernel(%arg0: i32, %arg1: memref<8x160xf32, #tpu.memory_space<vmem>>, %arg2: memref<160x32xbf16, #tpu.memory_space<vmem>>, %arg3: memref<1x32xf32, #tpu.memory_space<vmem>>, %arg4: memref<8x32xf32, #tpu.memory_space<vmem>>) attributes {dimension_semantics = [#tpu.dimension_semantics<parallel>], iteration_bounds = array<i64: 2>, scalar_prefetch = 0 : i64, scratch_operands = 0 : i64, tpu.core_type = #tpu.core_type<tc>, window_params = [{transform_indices = @transform_0, window_bounds = array<i64: 8, 160>}, {pipeline_mode = #tpu.pipeline_mode<synchronous>, transform_indices = @transform_1, window_bounds = array<i64: 160, 32>}, {pipeline_mode = #tpu.pipeline_mode<synchronous>, transform_indices = @transform_2, window_bounds = array<i64: 1, 32>}, {transform_indices = @transform_3, window_bounds = array<i64: 8, 32>}]} {
    %c0 = arith.constant 0 : index
    %c0_0 = arith.constant 0 : index
    %0 = vector.load %arg1[%c0, %c0_0] : memref<8x160xf32, #tpu.memory_space<vmem>>, vector<8x160xf32>
    %1 = arith.truncf %0 : vector<8x160xf32> to vector<8x160xbf16>
    %c0_1 = arith.constant 0 : index
    %c0_2 = arith.constant 0 : index
    %2 = vector.load %arg2[%c0_1, %c0_2] : memref<160x32xbf16, #tpu.memory_space<vmem>>, vector<160x32xbf16>
    %cst = arith.constant dense<0.000000e+00> : vector<8x32xf32>
    %3 = tpu.matmul %1, %2, %cst {dimension_numbers = #tpu.dot_dimension_numbers<[1], [0], [0], [1], [0, 0, 1, 1], [], []>} : vector<8x160xbf16>, vector<160x32xbf16>, vector<8x32xf32> -> vector<8x32xf32>
    %c0_3 = arith.constant 0 : index
    %c0_4 = arith.constant 0 : index
    %4 = vector.load %arg3[%c0_3, %c0_4] : memref<1x32xf32, #tpu.memory_space<vmem>>, vector<1x32xf32>
    %5 = vector.broadcast %4 : vector<1x32xf32> to vector<8x32xf32>
    %6 = arith.addf %3, %5 : vector<8x32xf32>
    %c0_5 = arith.constant 0 : index
    %c0_6 = arith.constant 0 : index
    %7 = vector.load %arg4[%c0_5, %c0_6] : memref<8x32xf32, #tpu.memory_space<vmem>>, vector<8x32xf32>
    tpu.vector_store %arg4[%c0_5, %c0_6], %6 {strides = array<i32>} : memref<8x32xf32, #tpu.memory_space<vmem>>, vector<8x32xf32>,
    return
  }
  func.func @transform_0(%arg0: i32) -> (i32, i32) {
    %c0_i32 = arith.constant 0 : i32
    %c0_i32_0 = arith.constant 0 : i32
    return %arg0, %c0_i32 : i32, i32
  }
  func.func @transform_1(%arg0: i32) -> (i32, i32) {
    %c0_i32 = arith.constant 0 : i32
    %c0_i32_0 = arith.constant 0 : i32
    %c0_i32_1 = arith.constant 0 : i32
    return %c0_i32, %c0_i32_0 : i32, i32
  }
  func.func @transform_2(%arg0: i32) -> (i32, i32) {
    %c0_i32 = arith.constant 0 : i32
    %c0_i32_0 = arith.constant 0 : i32
    %c0_i32_1 = arith.constant 0 : i32
    return %c0_i32, %c0_i32_0 : i32, i32
  }
  func.func @transform_3(%arg0: i32) -> (i32, i32) {
    %c0_i32 = arith.constant 0 : i32
    %c0_i32_0 = arith.constant 0 : i32
    return %arg0, %c0_i32 : i32, i32
  }
}

module attributes {stable_mosaic.version = 11 : i64} {
  func.func @_encoder_layer_kernel(%arg0: i32, %arg1: memref<2xi32, #tpu.memory_space<smem>>, %arg2: memref<1x5x32xf32, #tpu.memory_space<vmem>>, %arg3: memref<1x32xf32, #tpu.memory_space<vmem>>, %arg4: memref<1x32xf32, #tpu.memory_space<vmem>>, %arg5: memref<32x96xbf16, #tpu.memory_space<vmem>>, %arg6: memref<1x96xf32, #tpu.memory_space<vmem>>, %arg7: memref<32x32xbf16, #tpu.memory_space<vmem>>, %arg8: memref<1x32xf32, #tpu.memory_space<vmem>>, %arg9: memref<1x32xf32, #tpu.memory_space<vmem>>, %arg10: memref<1x32xf32, #tpu.memory_space<vmem>>, %arg11: memref<32x64xbf16, #tpu.memory_space<vmem>>, %arg12: memref<1x64xf32, #tpu.memory_space<vmem>>, %arg13: memref<64x32xbf16, #tpu.memory_space<vmem>>, %arg14: memref<1x32xf32, #tpu.memory_space<vmem>>, %arg15: memref<1x32xf32, #tpu.memory_space<vmem>>, %arg16: memref<1x32xf32, #tpu.memory_space<vmem>>, %arg17: memref<1x5x32xf32, #tpu.memory_space<vmem>>) attributes {dimension_semantics = [#tpu.dimension_semantics<parallel>], iteration_bounds = array<i64: 2>, scalar_prefetch = 1 : i64, scratch_operands = 0 : i64, tpu.core_type = #tpu.core_type<tc>, window_params = [{transform_indices = @transform_0, window_bounds = array<i64: 1, 5, 32>}, {pipeline_mode = #tpu.pipeline_mode<synchronous>, transform_indices = @transform_1, window_bounds = array<i64: 1, 32>}, {pipeline_mode = #tpu.pipeline_mode<synchronous>, transform_indices = @transform_2, window_bounds = array<i64: 1, 32>}, {pipeline_mode = #tpu.pipeline_mode<synchronous>, transform_indices = @transform_3, window_bounds = array<i64: 32, 96>}, {pipeline_mode = #tpu.pipeline_mode<synchronous>, transform_indices = @transform_4, window_bounds = array<i64: 1, 96>}, {pipeline_mode = #tpu.pipeline_mode<synchronous>, transform_indices = @transform_5, window_bounds = array<i64: 32, 32>}, {pipeline_mode = #tpu.pipeline_mode<synchronous>, transform_indices = @transform_6, window_bounds = array<i64: 1, 32>}, {pipeline_mode = #tpu.pipeline_mode<synchronous>, transform_indices = @transform_7, window_bounds = array<i64: 1, 32>}, {pipeline_mode = #tpu.pipeline_mode<synchronous>, transform_indices = @transform_8, window_bounds = array<i64: 1, 32>}, {pipeline_mode = #tpu.pipeline_mode<synchronous>, transform_indices = @transform_9, window_bounds = array<i64: 32, 64>}, {pipeline_mode = #tpu.pipeline_mode<synchronous>, transform_indices = @transform_10, window_bounds = array<i64: 1, 64>}, {pipeline_mode = #tpu.pipeline_mode<synchronous>, transform_indices = @transform_11, window_bounds = array<i64: 64, 32>}, {pipeline_mode = #tpu.pipeline_mode<synchronous>, transform_indices = @transform_12, window_bounds = array<i64: 1, 32>}, {pipeline_mode = #tpu.pipeline_mode<synchronous>, transform_indices = @transform_13, window_bounds = array<i64: 1, 32>}, {pipeline_mode = #tpu.pipeline_mode<synchronous>, transform_indices = @transform_14, window_bounds = array<i64: 1, 32>}, {transform_indices = @transform_15, window_bounds = array<i64: 1, 5, 32>}]} {
    %0 = arith.index_cast %arg0 : i32 to index
    %1 = memref.load %arg1[%0] : memref<2xi32, #tpu.memory_space<smem>>
    %c0 = arith.constant 0 : index
    %c0_0 = arith.constant 0 : index
    %c0_1 = arith.constant 0 : index
    %2 = vector.load %arg2[%c0, %c0_0, %c0_1] : memref<1x5x32xf32, #tpu.memory_space<vmem>>, vector<1x5x32xf32>
    %3 = vector.shape_cast %2 : vector<1x5x32xf32> to vector<5x32xf32>
    %c0_2 = arith.constant 0 : index
    %c0_3 = arith.constant 0 : index
    %4 = vector.load %arg3[%c0_2, %c0_3] : memref<1x32xf32, #tpu.memory_space<vmem>>, vector<1x32xf32>
    %c0_4 = arith.constant 0 : index
    %c0_5 = arith.constant 0 : index
    %5 = vector.load %arg4[%c0_4, %c0_5] : memref<1x32xf32, #tpu.memory_space<vmem>>, vector<1x32xf32>
    %cst = arith.constant dense<0.000000e+00> : vector<5xf32>
    %6 = vector.multi_reduction <add>, %3, %cst [1] : vector<5x32xf32> to vector<5xf32>
    %7 = vector.shape_cast %6 : vector<5xf32> to vector<5x1xf32>
    %cst_6 = arith.constant 3.200000e+01 : f32
    %8 = vector.broadcast %cst_6 : f32 to vector<5x1xf32>
    %9 = arith.divf %7, %8 : vector<5x1xf32>
    %10 = vector.broadcast %9 : vector<5x1xf32> to vector<5x32xf32>
    %11 = arith.subf %3, %10 : vector<5x32xf32>
    %12 = arith.mulf %11, %11 : vector<5x32xf32>
    %cst_7 = arith.constant dense<0.000000e+00> : vector<5xf32>
    %13 = vector.multi_reduction <add>, %12, %cst_7 [1] : vector<5x32xf32> to vector<5xf32>
    %14 = vector.shape_cast %13 : vector<5xf32> to vector<5x1xf32>
    %cst_8 = arith.constant 3.200000e+01 : f32
    %15 = vector.broadcast %cst_8 : f32 to vector<5x1xf32>
    %16 = arith.divf %14, %15 : vector<5x1xf32>
    %17 = vector.broadcast %9 : vector<5x1xf32> to vector<5x32xf32>
    %18 = arith.subf %3, %17 : vector<5x32xf32>
    %cst_9 = arith.constant 9.99999974E-6 : f32
    %19 = vector.broadcast %cst_9 : f32 to vector<5x1xf32>
    %20 = arith.addf %16, %19 : vector<5x1xf32>
    %21 = math.rsqrt %20 : vector<5x1xf32>
    %22 = vector.broadcast %21 : vector<5x1xf32> to vector<5x32xf32>
    %23 = arith.mulf %18, %22 : vector<5x32xf32>
    %24 = vector.broadcast %4 : vector<1x32xf32> to vector<5x32xf32>
    %25 = arith.mulf %23, %24 : vector<5x32xf32>
    %26 = vector.broadcast %5 : vector<1x32xf32> to vector<5x32xf32>
    %27 = arith.addf %25, %26 : vector<5x32xf32>
    %c0_10 = arith.constant 0 : index
    %c0_11 = arith.constant 0 : index
    %28 = vector.load %arg5[%c0_10, %c0_11] : memref<32x96xbf16, #tpu.memory_space<vmem>>, vector<32x96xbf16>
    %c0_12 = arith.constant 0 : index
    %c0_13 = arith.constant 0 : index
    %29 = vector.load %arg6[%c0_12, %c0_13] : memref<1x96xf32, #tpu.memory_space<vmem>>, vector<1x96xf32>
    %c0_14 = arith.constant 0 : index
    %c0_15 = arith.constant 0 : index
    %30 = vector.load %arg7[%c0_14, %c0_15] : memref<32x32xbf16, #tpu.memory_space<vmem>>, vector<32x32xbf16>
    %c0_16 = arith.constant 0 : index
    %c0_17 = arith.constant 0 : index
    %31 = vector.load %arg8[%c0_16, %c0_17] : memref<1x32xf32, #tpu.memory_space<vmem>>, vector<1x32xf32>
    %32 = arith.truncf %27 : vector<5x32xf32> to vector<5x32xbf16>
    %cst_18 = arith.constant dense<0.000000e+00> : vector<5x96xf32>
    %33 = tpu.matmul %32, %28, %cst_18 {dimension_numbers = #tpu.dot_dimension_numbers<[1], [0], [0], [1], [0, 0, 1, 1], [], []>} : vector<5x32xbf16>, vector<32x96xbf16>, vector<5x96xf32> -> vector<5x96xf32>
    %34 = vector.broadcast %29 : vector<1x96xf32> to vector<5x96xf32>
    %35 = arith.addf %33, %34 : vector<5x96xf32>
    %36 = vector.extract_strided_slice %35 {offsets = [0, 0], sizes = [5, 32], strides = [1, 1]} : vector<5x96xf32> to vector<5x32xf32>
    %37 = vector.extract_strided_slice %35 {offsets = [0, 32], sizes = [5, 32], strides = [1, 1]} : vector<5x96xf32> to vector<5x32xf32>
    %38 = vector.extract_strided_slice %35 {offsets = [0, 64], sizes = [5, 32], strides = [1, 1]} : vector<5x96xf32> to vector<5x32xf32>
    %39 = tpu.iota {dimensions = array<i32: 1>} : vector<5x5xi32>
    %40 = vector.broadcast %1 : i32 to vector<5x5xi32>
    %41 = arith.cmpi sge, %39, %40 : vector<5x5xi32>
    %cst_19 = arith.constant 0.000000e+00 : f32
    %42 = vector.broadcast %cst_19 : f32 to vector<5x32xf32>
    %43 = vector.extract_strided_slice %36 {offsets = [0, 0], sizes = [5, 16], strides = [1, 1]} : vector<5x32xf32> to vector<5x16xf32>
    %44 = arith.truncf %43 : vector<5x16xf32> to vector<5x16xbf16>
    %45 = vector.extract_strided_slice %37 {offsets = [0, 0], sizes = [5, 16], strides = [1, 1]} : vector<5x32xf32> to vector<5x16xf32>
    %46 = arith.truncf %45 : vector<5x16xf32> to vector<5x16xbf16>
    %cst_20 = arith.constant dense<0.000000e+00> : vector<5x5xf32>
    %47 = tpu.matmul %44, %46, %cst_20 {dimension_numbers = #tpu.dot_dimension_numbers<[1], [1], [0], [0], [0, 0, 1, 0], [], []>} : vector<5x16xbf16>, vector<5x16xbf16>, vector<5x5xf32> -> vector<5x5xf32>
    %cst_21 = arith.constant 2.500000e-01 : f32
    %48 = vector.broadcast %cst_21 : f32 to vector<5x5xf32>
    %49 = arith.mulf %47, %48 : vector<5x5xf32>
    %cst_22 = arith.constant -1.000000e+30 : f32
    %50 = vector.broadcast %cst_22 : f32 to vector<5x5xf32>
    %51 = arith.select %41, %50, %49 : vector<5x5xi1>, vector<5x5xf32>
    %cst_23 = arith.constant dense<0xFF800000> : vector<5xf32>
    %52 = vector.multi_reduction <maximumf>, %51, %cst_23 [1] : vector<5x5xf32> to vector<5xf32>
    %53 = vector.shape_cast %52 : vector<5xf32> to vector<5x1xf32>
    %54 = vector.broadcast %53 : vector<5x1xf32> to vector<5x5xf32>
    %55 = arith.subf %51, %54 : vector<5x5xf32>
    %56 = math.exp %55 : vector<5x5xf32>
    %cst_24 = arith.constant dense<0.000000e+00> : vector<5xf32>
    %57 = vector.multi_reduction <add>, %56, %cst_24 [1] : vector<5x5xf32> to vector<5xf32>
    %58 = vector.shape_cast %57 : vector<5xf32> to vector<5x1xf32>
    %59 = tpu.reciprocal %58 {approx = true} : vector<5x1xf32> -> vector<5x1xf32>
    %60 = vector.broadcast %59 : vector<5x1xf32> to vector<5x5xf32>
    %61 = arith.mulf %56, %60 : vector<5x5xf32>
    %62 = arith.truncf %61 : vector<5x5xf32> to vector<5x5xbf16>
    %63 = vector.extract_strided_slice %38 {offsets = [0, 0], sizes = [5, 16], strides = [1, 1]} : vector<5x32xf32> to vector<5x16xf32>
    %64 = arith.truncf %63 : vector<5x16xf32> to vector<5x16xbf16>
    %cst_25 = arith.constant dense<0.000000e+00> : vector<5x16xf32>
    %65 = tpu.matmul %62, %64, %cst_25 {dimension_numbers = #tpu.dot_dimension_numbers<[1], [0], [0], [1], [0, 0, 1, 1], [], []>} : vector<5x5xbf16>, vector<5x16xbf16>, vector<5x16xf32> -> vector<5x16xf32>
    %66 = arith.truncf %65 : vector<5x16xf32> to vector<5x16xbf16>
    %67 = vector.extract_strided_slice %30 {offsets = [0, 0], sizes = [16, 32], strides = [1, 1]} : vector<32x32xbf16> to vector<16x32xbf16>
    %cst_26 = arith.constant dense<0.000000e+00> : vector<5x32xf32>
    %68 = tpu.matmul %66, %67, %cst_26 {dimension_numbers = #tpu.dot_dimension_numbers<[1], [0], [0], [1], [0, 0, 1, 1], [], []>} : vector<5x16xbf16>, vector<16x32xbf16>, vector<5x32xf32> -> vector<5x32xf32>
    %69 = arith.addf %42, %68 : vector<5x32xf32>
    %70 = vector.extract_strided_slice %36 {offsets = [0, 16], sizes = [5, 16], strides = [1, 1]} : vector<5x32xf32> to vector<5x16xf32>
    %71 = arith.truncf %70 : vector<5x16xf32> to vector<5x16xbf16>
    %72 = vector.extract_strided_slice %37 {offsets = [0, 16], sizes = [5, 16], strides = [1, 1]} : vector<5x32xf32> to vector<5x16xf32>
    %73 = arith.truncf %72 : vector<5x16xf32> to vector<5x16xbf16>
    %cst_27 = arith.constant dense<0.000000e+00> : vector<5x5xf32>
    %74 = tpu.matmul %71, %73, %cst_27 {dimension_numbers = #tpu.dot_dimension_numbers<[1], [1], [0], [0], [0, 0, 1, 0], [], []>} : vector<5x16xbf16>, vector<5x16xbf16>, vector<5x5xf32> -> vector<5x5xf32>
    %cst_28 = arith.constant 2.500000e-01 : f32
    %75 = vector.broadcast %cst_28 : f32 to vector<5x5xf32>
    %76 = arith.mulf %74, %75 : vector<5x5xf32>
    %cst_29 = arith.constant -1.000000e+30 : f32
    %77 = vector.broadcast %cst_29 : f32 to vector<5x5xf32>
    %78 = arith.select %41, %77, %76 : vector<5x5xi1>, vector<5x5xf32>
    %cst_30 = arith.constant dense<0xFF800000> : vector<5xf32>
    %79 = vector.multi_reduction <maximumf>, %78, %cst_30 [1] : vector<5x5xf32> to vector<5xf32>
    %80 = vector.shape_cast %79 : vector<5xf32> to vector<5x1xf32>
    %81 = vector.broadcast %80 : vector<5x1xf32> to vector<5x5xf32>
    %82 = arith.subf %78, %81 : vector<5x5xf32>
    %83 = math.exp %82 : vector<5x5xf32>
    %cst_31 = arith.constant dense<0.000000e+00> : vector<5xf32>
    %84 = vector.multi_reduction <add>, %83, %cst_31 [1] : vector<5x5xf32> to vector<5xf32>
    %85 = vector.shape_cast %84 : vector<5xf32> to vector<5x1xf32>
    %86 = tpu.reciprocal %85 {approx = true} : vector<5x1xf32> -> vector<5x1xf32>
    %87 = vector.broadcast %86 : vector<5x1xf32> to vector<5x5xf32>
    %88 = arith.mulf %83, %87 : vector<5x5xf32>
    %89 = arith.truncf %88 : vector<5x5xf32> to vector<5x5xbf16>
    %90 = vector.extract_strided_slice %38 {offsets = [0, 16], sizes = [5, 16], strides = [1, 1]} : vector<5x32xf32> to vector<5x16xf32>
    %91 = arith.truncf %90 : vector<5x16xf32> to vector<5x16xbf16>
    %cst_32 = arith.constant dense<0.000000e+00> : vector<5x16xf32>
    %92 = tpu.matmul %89, %91, %cst_32 {dimension_numbers = #tpu.dot_dimension_numbers<[1], [0], [0], [1], [0, 0, 1, 1], [], []>} : vector<5x5xbf16>, vector<5x16xbf16>, vector<5x16xf32> -> vector<5x16xf32>
    %93 = arith.truncf %92 : vector<5x16xf32> to vector<5x16xbf16>
    %94 = vector.extract_strided_slice %30 {offsets = [16, 0], sizes = [16, 32], strides = [1, 1]} : vector<32x32xbf16> to vector<16x32xbf16>
    %cst_33 = arith.constant dense<0.000000e+00> : vector<5x32xf32>
    %95 = tpu.matmul %93, %94, %cst_33 {dimension_numbers = #tpu.dot_dimension_numbers<[1], [0], [0], [1], [0, 0, 1, 1], [], []>} : vector<5x16xbf16>, vector<16x32xbf16>, vector<5x32xf32> -> vector<5x32xf32>
    %96 = arith.addf %69, %95 : vector<5x32xf32>
    %97 = vector.broadcast %31 : vector<1x32xf32> to vector<5x32xf32>
    %98 = arith.addf %96, %97 : vector<5x32xf32>
    %99 = arith.addf %3, %98 : vector<5x32xf32>
    %c0_34 = arith.constant 0 : index
    %c0_35 = arith.constant 0 : index
    %100 = vector.load %arg9[%c0_34, %c0_35] : memref<1x32xf32, #tpu.memory_space<vmem>>, vector<1x32xf32>
    %c0_36 = arith.constant 0 : index
    %c0_37 = arith.constant 0 : index
    %101 = vector.load %arg10[%c0_36, %c0_37] : memref<1x32xf32, #tpu.memory_space<vmem>>, vector<1x32xf32>
    %cst_38 = arith.constant dense<0.000000e+00> : vector<5xf32>
    %102 = vector.multi_reduction <add>, %99, %cst_38 [1] : vector<5x32xf32> to vector<5xf32>
    %103 = vector.shape_cast %102 : vector<5xf32> to vector<5x1xf32>
    %cst_39 = arith.constant 3.200000e+01 : f32
    %104 = vector.broadcast %cst_39 : f32 to vector<5x1xf32>
    %105 = arith.divf %103, %104 : vector<5x1xf32>
    %106 = vector.broadcast %105 : vector<5x1xf32> to vector<5x32xf32>
    %107 = arith.subf %99, %106 : vector<5x32xf32>
    %108 = arith.mulf %107, %107 : vector<5x32xf32>
    %cst_40 = arith.constant dense<0.000000e+00> : vector<5xf32>
    %109 = vector.multi_reduction <add>, %108, %cst_40 [1] : vector<5x32xf32> to vector<5xf32>
    %110 = vector.shape_cast %109 : vector<5xf32> to vector<5x1xf32>
    %cst_41 = arith.constant 3.200000e+01 : f32
    %111 = vector.broadcast %cst_41 : f32 to vector<5x1xf32>
    %112 = arith.divf %110, %111 : vector<5x1xf32>
    %113 = vector.broadcast %105 : vector<5x1xf32> to vector<5x32xf32>
    %114 = arith.subf %99, %113 : vector<5x32xf32>
    %cst_42 = arith.constant 9.99999974E-6 : f32
    %115 = vector.broadcast %cst_42 : f32 to vector<5x1xf32>
    %116 = arith.addf %112, %115 : vector<5x1xf32>
    %117 = math.rsqrt %116 : vector<5x1xf32>
    %118 = vector.broadcast %117 : vector<5x1xf32> to vector<5x32xf32>
    %119 = arith.mulf %114, %118 : vector<5x32xf32>
    %120 = vector.broadcast %100 : vector<1x32xf32> to vector<5x32xf32>
    %121 = arith.mulf %119, %120 : vector<5x32xf32>
    %122 = vector.broadcast %101 : vector<1x32xf32> to vector<5x32xf32>
    %123 = arith.addf %121, %122 : vector<5x32xf32>
    %c0_43 = arith.constant 0 : index
    %c0_44 = arith.constant 0 : index
    %124 = vector.load %arg11[%c0_43, %c0_44] : memref<32x64xbf16, #tpu.memory_space<vmem>>, vector<32x64xbf16>
    %c0_45 = arith.constant 0 : index
    %c0_46 = arith.constant 0 : index
    %125 = vector.load %arg12[%c0_45, %c0_46] : memref<1x64xf32, #tpu.memory_space<vmem>>, vector<1x64xf32>
    %c0_47 = arith.constant 0 : index
    %c0_48 = arith.constant 0 : index
    %126 = vector.load %arg13[%c0_47, %c0_48] : memref<64x32xbf16, #tpu.memory_space<vmem>>, vector<64x32xbf16>
    %c0_49 = arith.constant 0 : index
    %c0_50 = arith.constant 0 : index
    %127 = vector.load %arg14[%c0_49, %c0_50] : memref<1x32xf32, #tpu.memory_space<vmem>>, vector<1x32xf32>
    %128 = arith.truncf %123 : vector<5x32xf32> to vector<5x32xbf16>
    %cst_51 = arith.constant dense<0.000000e+00> : vector<5x64xf32>
    %129 = tpu.matmul %128, %124, %cst_51 {dimension_numbers = #tpu.dot_dimension_numbers<[1], [0], [0], [1], [0, 0, 1, 1], [], []>} : vector<5x32xbf16>, vector<32x64xbf16>, vector<5x64xf32> -> vector<5x64xf32>
    %130 = vector.broadcast %125 : vector<1x64xf32> to vector<5x64xf32>
    %131 = arith.addf %129, %130 : vector<5x64xf32>
    %cst_52 = arith.constant 0.707106769 : f32
    %132 = vector.broadcast %cst_52 : f32 to vector<5x64xf32>
    %133 = arith.mulf %131, %132 : vector<5x64xf32>
    %134 = math.absf %133 : vector<5x64xf32>
    %cst_53 = arith.constant 0.327591091 : f32
    %135 = vector.broadcast %cst_53 : f32 to vector<5x64xf32>
    %136 = arith.mulf %135, %134 : vector<5x64xf32>
    %cst_54 = arith.constant 1.000000e+00 : f32
    %137 = vector.broadcast %cst_54 : f32 to vector<5x64xf32>
    %138 = arith.addf %137, %136 : vector<5x64xf32>
    %cst_55 = arith.constant 1.000000e+00 : f32
    %139 = vector.broadcast %cst_55 : f32 to vector<5x64xf32>
    %140 = arith.divf %139, %138 : vector<5x64xf32>
    %cst_56 = arith.constant 1.06140542 : f32
    %141 = vector.broadcast %cst_56 : f32 to vector<5x64xf32>
    %142 = arith.mulf %140, %141 : vector<5x64xf32>
    %cst_57 = arith.constant -1.45315206 : f32
    %143 = vector.broadcast %cst_57 : f32 to vector<5x64xf32>
    %144 = arith.addf %143, %142 : vector<5x64xf32>
    %145 = arith.mulf %140, %144 : vector<5x64xf32>
    %cst_58 = arith.constant 1.42141378 : f32
    %146 = vector.broadcast %cst_58 : f32 to vector<5x64xf32>
    %147 = arith.addf %146, %145 : vector<5x64xf32>
    %148 = arith.mulf %140, %147 : vector<5x64xf32>
    %cst_59 = arith.constant -0.284496725 : f32
    %149 = vector.broadcast %cst_59 : f32 to vector<5x64xf32>
    %150 = arith.addf %149, %148 : vector<5x64xf32>
    %151 = arith.mulf %140, %150 : vector<5x64xf32>
    %cst_60 = arith.constant 0.254829586 : f32
    %152 = vector.broadcast %cst_60 : f32 to vector<5x64xf32>
    %153 = arith.addf %152, %151 : vector<5x64xf32>
    %154 = arith.mulf %140, %153 : vector<5x64xf32>
    %cst_61 = arith.constant 0.000000e+00 : f32
    %155 = vector.broadcast %cst_61 : f32 to vector<5x64xf32>
    %156 = arith.subf %155, %134 : vector<5x64xf32>
    %157 = arith.mulf %156, %134 : vector<5x64xf32>
    %158 = math.exp %157 : vector<5x64xf32>
    %159 = arith.mulf %154, %158 : vector<5x64xf32>
    %cst_62 = arith.constant 1.000000e+00 : f32
    %160 = vector.broadcast %cst_62 : f32 to vector<5x64xf32>
    %161 = arith.subf %160, %159 : vector<5x64xf32>
    %cst_63 = arith.constant 0.000000e+00 : f32
    %162 = vector.broadcast %cst_63 : f32 to vector<5x64xf32>
    %163 = arith.cmpf olt, %133, %162 : vector<5x64xf32>
    %cst_64 = arith.constant 0.000000e+00 : f32
    %164 = vector.broadcast %cst_64 : f32 to vector<5x64xf32>
    %165 = arith.subf %164, %161 : vector<5x64xf32>
    %166 = arith.select %163, %165, %161 : vector<5x64xi1>, vector<5x64xf32>
    %cst_65 = arith.constant 5.000000e-01 : f32
    %167 = vector.broadcast %cst_65 : f32 to vector<5x64xf32>
    %168 = arith.mulf %167, %131 : vector<5x64xf32>
    %cst_66 = arith.constant 1.000000e+00 : f32
    %169 = vector.broadcast %cst_66 : f32 to vector<5x64xf32>
    %170 = arith.addf %169, %166 : vector<5x64xf32>
    %171 = arith.mulf %168, %170 : vector<5x64xf32>
    %172 = arith.truncf %171 : vector<5x64xf32> to vector<5x64xbf16>
    %cst_67 = arith.constant dense<0.000000e+00> : vector<5x32xf32>
    %173 = tpu.matmul %172, %126, %cst_67 {dimension_numbers = #tpu.dot_dimension_numbers<[1], [0], [0], [1], [0, 0, 1, 1], [], []>} : vector<5x64xbf16>, vector<64x32xbf16>, vector<5x32xf32> -> vector<5x32xf32>
    %174 = arith.addf %99, %173 : vector<5x32xf32>
    %175 = vector.broadcast %127 : vector<1x32xf32> to vector<5x32xf32>
    %176 = arith.addf %174, %175 : vector<5x32xf32>
    %c0_68 = arith.constant 0 : index
    %c0_69 = arith.constant 0 : index
    %177 = vector.load %arg15[%c0_68, %c0_69] : memref<1x32xf32, #tpu.memory_space<vmem>>, vector<1x32xf32>
    %c0_70 = arith.constant 0 : index
    %c0_71 = arith.constant 0 : index
    %178 = vector.load %arg16[%c0_70, %c0_71] : memref<1x32xf32, #tpu.memory_space<vmem>>, vector<1x32xf32>
    %cst_72 = arith.constant dense<0.000000e+00> : vector<5xf32>
    %179 = vector.multi_reduction <add>, %176, %cst_72 [1] : vector<5x32xf32> to vector<5xf32>
    %180 = vector.shape_cast %179 : vector<5xf32> to vector<5x1xf32>
    %cst_73 = arith.constant 3.200000e+01 : f32
    %181 = vector.broadcast %cst_73 : f32 to vector<5x1xf32>
    %182 = arith.divf %180, %181 : vector<5x1xf32>
    %183 = vector.broadcast %182 : vector<5x1xf32> to vector<5x32xf32>
    %184 = arith.subf %176, %183 : vector<5x32xf32>
    %185 = arith.mulf %184, %184 : vector<5x32xf32>
    %cst_74 = arith.constant dense<0.000000e+00> : vector<5xf32>
    %186 = vector.multi_reduction <add>, %185, %cst_74 [1] : vector<5x32xf32> to vector<5xf32>
    %187 = vector.shape_cast %186 : vector<5xf32> to vector<5x1xf32>
    %cst_75 = arith.constant 3.200000e+01 : f32
    %188 = vector.broadcast %cst_75 : f32 to vector<5x1xf32>
    %189 = arith.divf %187, %188 : vector<5x1xf32>
    %190 = vector.broadcast %182 : vector<5x1xf32> to vector<5x32xf32>
    %191 = arith.subf %176, %190 : vector<5x32xf32>
    %cst_76 = arith.constant 9.99999974E-6 : f32
    %192 = vector.broadcast %cst_76 : f32 to vector<5x1xf32>
    %193 = arith.addf %189, %192 : vector<5x1xf32>
    %194 = math.rsqrt %193 : vector<5x1xf32>
    %195 = vector.broadcast %194 : vector<5x1xf32> to vector<5x32xf32>
    %196 = arith.mulf %191, %195 : vector<5x32xf32>
    %197 = vector.broadcast %177 : vector<1x32xf32> to vector<5x32xf32>
    %198 = arith.mulf %196, %197 : vector<5x32xf32>
    %199 = vector.broadcast %178 : vector<1x32xf32> to vector<5x32xf32>
    %200 = arith.addf %198, %199 : vector<5x32xf32>
    %c0_77 = arith.constant 0 : index
    %c0_78 = arith.constant 0 : index
    %c0_79 = arith.constant 0 : index
    %201 = vector.load %arg17[%c0_77, %c0_78, %c0_79] : memref<1x5x32xf32, #tpu.memory_space<vmem>>, vector<1x5x32xf32>
    %202 = vector.shape_cast %201 : vector<1x5x32xf32> to vector<5x32xf32>
    %203 = vector.shape_cast %200 : vector<5x32xf32> to vector<1x5x32xf32>
    tpu.vector_store %arg17[%c0_77, %c0_78, %c0_79], %203 {strides = array<i32>} : memref<1x5x32xf32, #tpu.memory_space<vmem>>, vector<1x5x32xf32>,
    return
  }
  func.func @transform_0(%arg0: i32, %arg1: memref<2xi32, #tpu.memory_space<smem>>) -> (i32, i32, i32) {
    %c0_i32 = arith.constant 0 : i32
    %c0_i32_0 = arith.constant 0 : i32
    %c0_i32_1 = arith.constant 0 : i32
    return %arg0, %c0_i32, %c0_i32_0 : i32, i32, i32
  }
  func.func @transform_1(%arg0: i32, %arg1: memref<2xi32, #tpu.memory_space<smem>>) -> (i32, i32) {
    %c0_i32 = arith.constant 0 : i32
    %c0_i32_0 = arith.constant 0 : i32
    %c0_i32_1 = arith.constant 0 : i32
    return %c0_i32, %c0_i32_0 : i32, i32
  }
  func.func @transform_2(%arg0: i32, %arg1: memref<2xi32, #tpu.memory_space<smem>>) -> (i32, i32) {
    %c0_i32 = arith.constant 0 : i32
    %c0_i32_0 = arith.constant 0 : i32
    %c0_i32_1 = arith.constant 0 : i32
    return %c0_i32, %c0_i32_0 : i32, i32
  }
  func.func @transform_3(%arg0: i32, %arg1: memref<2xi32, #tpu.memory_space<smem>>) -> (i32, i32) {
    %c0_i32 = arith.constant 0 : i32
    %c0_i32_0 = arith.constant 0 : i32
    %c0_i32_1 = arith.constant 0 : i32
    return %c0_i32, %c0_i32_0 : i32, i32
  }
  func.func @transform_4(%arg0: i32, %arg1: memref<2xi32, #tpu.memory_space<smem>>) -> (i32, i32) {
    %c0_i32 = arith.constant 0 : i32
    %c0_i32_0 = arith.constant 0 : i32
    %c0_i32_1 = arith.constant 0 : i32
    return %c0_i32, %c0_i32_0 : i32, i32
  }
  func.func @transform_5(%arg0: i32, %arg1: memref<2xi32, #tpu.memory_space<smem>>) -> (i32, i32) {
    %c0_i32 = arith.constant 0 : i32
    %c0_i32_0 = arith.constant 0 : i32
    %c0_i32_1 = arith.constant 0 : i32
    return %c0_i32, %c0_i32_0 : i32, i32
  }
  func.func @transform_6(%arg0: i32, %arg1: memref<2xi32, #tpu.memory_space<smem>>) -> (i32, i32) {
    %c0_i32 = arith.constant 0 : i32
    %c0_i32_0 = arith.constant 0 : i32
    %c0_i32_1 = arith.constant 0 : i32
    return %c0_i32, %c0_i32_0 : i32, i32
  }
  func.func @transform_7(%arg0: i32, %arg1: memref<2xi32, #tpu.memory_space<smem>>) -> (i32, i32) {
    %c0_i32 = arith.constant 0 : i32
    %c0_i32_0 = arith.constant 0 : i32
    %c0_i32_1 = arith.constant 0 : i32
    return %c0_i32, %c0_i32_0 : i32, i32
  }
  func.func @transform_8(%arg0: i32, %arg1: memref<2xi32, #tpu.memory_space<smem>>) -> (i32, i32) {
    %c0_i32 = arith.constant 0 : i32
    %c0_i32_0 = arith.constant 0 : i32
    %c0_i32_1 = arith.constant 0 : i32
    return %c0_i32, %c0_i32_0 : i32, i32
  }
  func.func @transform_9(%arg0: i32, %arg1: memref<2xi32, #tpu.memory_space<smem>>) -> (i32, i32) {
    %c0_i32 = arith.constant 0 : i32
    %c0_i32_0 = arith.constant 0 : i32
    %c0_i32_1 = arith.constant 0 : i32
    return %c0_i32, %c0_i32_0 : i32, i32
  }
  func.func @transform_10(%arg0: i32, %arg1: memref<2xi32, #tpu.memory_space<smem>>) -> (i32, i32) {
    %c0_i32 = arith.constant 0 : i32
    %c0_i32_0 = arith.constant 0 : i32
    %c0_i32_1 = arith.constant 0 : i32
    return %c0_i32, %c0_i32_0 : i32, i32
  }
  func.func @transform_11(%arg0: i32, %arg1: memref<2xi32, #tpu.memory_space<smem>>) -> (i32, i32) {
    %c0_i32 = arith.constant 0 : i32
    %c0_i32_0 = arith.constant 0 : i32
    %c0_i32_1 = arith.constant 0 : i32
    return %c0_i32, %c0_i32_0 : i32, i32
  }
  func.func @transform_12(%arg0: i32, %arg1: memref<2xi32, #tpu.memory_space<smem>>) -> (i32, i32) {
    %c0_i32 = arith.constant 0 : i32
    %c0_i32_0 = arith.constant 0 : i32
    %c0_i32_1 = arith.constant 0 : i32
    return %c0_i32, %c0_i32_0 : i32, i32
  }
  func.func @transform_13(%arg0: i32, %arg1: memref<2xi32, #tpu.memory_space<smem>>) -> (i32, i32) {
    %c0_i32 = arith.constant 0 : i32
    %c0_i32_0 = arith.constant 0 : i32
    %c0_i32_1 = arith.constant 0 : i32
    return %c0_i32, %c0_i32_0 : i32, i32
  }
  func.func @transform_14(%arg0: i32, %arg1: memref<2xi32, #tpu.memory_space<smem>>) -> (i32, i32) {
    %c0_i32 = arith.constant 0 : i32
    %c0_i32_0 = arith.constant 0 : i32
    %c0_i32_1 = arith.constant 0 : i32
    return %c0_i32, %c0_i32_0 : i32, i32
  }
  func.func @transform_15(%arg0: i32, %arg1: memref<2xi32, #tpu.memory_space<smem>>) -> (i32, i32, i32) {
    %c0_i32 = arith.constant 0 : i32
    %c0_i32_0 = arith.constant 0 : i32
    %c0_i32_1 = arith.constant 0 : i32
    return %arg0, %c0_i32, %c0_i32_0 : i32, i32, i32
  }
}

module attributes {stable_mosaic.version = 11 : i64} {
  func.func @_encoder_head_kernel(%arg0: i32, %arg1: memref<8x32xf32, #tpu.memory_space<vmem>>, %arg2: memref<1x32xf32, #tpu.memory_space<vmem>>, %arg3: memref<1x32xf32, #tpu.memory_space<vmem>>, %arg4: memref<32x128xbf16, #tpu.memory_space<vmem>>, %arg5: memref<1x128xf32, #tpu.memory_space<vmem>>, %arg6: memref<8x32xf32, #tpu.memory_space<vmem>>, %arg7: memref<8x128xf32, #tpu.memory_space<vmem>>) attributes {dimension_semantics = [#tpu.dimension_semantics<parallel>], iteration_bounds = array<i64: 2>, scalar_prefetch = 0 : i64, scratch_operands = 0 : i64, tpu.core_type = #tpu.core_type<tc>, window_params = [{transform_indices = @transform_0, window_bounds = array<i64: 8, 32>}, {pipeline_mode = #tpu.pipeline_mode<synchronous>, transform_indices = @transform_1, window_bounds = array<i64: 1, 32>}, {pipeline_mode = #tpu.pipeline_mode<synchronous>, transform_indices = @transform_2, window_bounds = array<i64: 1, 32>}, {pipeline_mode = #tpu.pipeline_mode<synchronous>, transform_indices = @transform_3, window_bounds = array<i64: 32, 128>}, {pipeline_mode = #tpu.pipeline_mode<synchronous>, transform_indices = @transform_4, window_bounds = array<i64: 1, 128>}, {transform_indices = @transform_5, window_bounds = array<i64: 8, 32>}, {transform_indices = @transform_6, window_bounds = array<i64: 8, 128>}]} {
    %c0 = arith.constant 0 : index
    %c0_0 = arith.constant 0 : index
    %0 = vector.load %arg1[%c0, %c0_0] : memref<8x32xf32, #tpu.memory_space<vmem>>, vector<8x32xf32>
    %c0_1 = arith.constant 0 : index
    %c0_2 = arith.constant 0 : index
    %1 = vector.load %arg2[%c0_1, %c0_2] : memref<1x32xf32, #tpu.memory_space<vmem>>, vector<1x32xf32>
    %c0_3 = arith.constant 0 : index
    %c0_4 = arith.constant 0 : index
    %2 = vector.load %arg3[%c0_3, %c0_4] : memref<1x32xf32, #tpu.memory_space<vmem>>, vector<1x32xf32>
    %cst = arith.constant dense<0.000000e+00> : vector<8xf32>
    %3 = vector.multi_reduction <add>, %0, %cst [1] : vector<8x32xf32> to vector<8xf32>
    %4 = vector.shape_cast %3 : vector<8xf32> to vector<8x1xf32>
    %cst_5 = arith.constant 3.200000e+01 : f32
    %5 = vector.broadcast %cst_5 : f32 to vector<8x1xf32>
    %6 = arith.divf %4, %5 : vector<8x1xf32>
    %7 = vector.broadcast %6 : vector<8x1xf32> to vector<8x32xf32>
    %8 = arith.subf %0, %7 : vector<8x32xf32>
    %9 = arith.mulf %8, %8 : vector<8x32xf32>
    %cst_6 = arith.constant dense<0.000000e+00> : vector<8xf32>
    %10 = vector.multi_reduction <add>, %9, %cst_6 [1] : vector<8x32xf32> to vector<8xf32>
    %11 = vector.shape_cast %10 : vector<8xf32> to vector<8x1xf32>
    %cst_7 = arith.constant 3.200000e+01 : f32
    %12 = vector.broadcast %cst_7 : f32 to vector<8x1xf32>
    %13 = arith.divf %11, %12 : vector<8x1xf32>
    %14 = vector.broadcast %6 : vector<8x1xf32> to vector<8x32xf32>
    %15 = arith.subf %0, %14 : vector<8x32xf32>
    %cst_8 = arith.constant 9.99999974E-6 : f32
    %16 = vector.broadcast %cst_8 : f32 to vector<8x1xf32>
    %17 = arith.addf %13, %16 : vector<8x1xf32>
    %18 = math.rsqrt %17 : vector<8x1xf32>
    %19 = vector.broadcast %18 : vector<8x1xf32> to vector<8x32xf32>
    %20 = arith.mulf %15, %19 : vector<8x32xf32>
    %21 = vector.broadcast %1 : vector<1x32xf32> to vector<8x32xf32>
    %22 = arith.mulf %20, %21 : vector<8x32xf32>
    %23 = vector.broadcast %2 : vector<1x32xf32> to vector<8x32xf32>
    %24 = arith.addf %22, %23 : vector<8x32xf32>
    %c0_9 = arith.constant 0 : index
    %c0_10 = arith.constant 0 : index
    %25 = vector.load %arg6[%c0_9, %c0_10] : memref<8x32xf32, #tpu.memory_space<vmem>>, vector<8x32xf32>
    tpu.vector_store %arg6[%c0_9, %c0_10], %24 {strides = array<i32>} : memref<8x32xf32, #tpu.memory_space<vmem>>, vector<8x32xf32>,
    %26 = arith.truncf %24 : vector<8x32xf32> to vector<8x32xbf16>
    %c0_11 = arith.constant 0 : index
    %c0_12 = arith.constant 0 : index
    %27 = vector.load %arg4[%c0_11, %c0_12] : memref<32x128xbf16, #tpu.memory_space<vmem>>, vector<32x128xbf16>
    %cst_13 = arith.constant dense<0.000000e+00> : vector<8x128xf32>
    %28 = tpu.matmul %26, %27, %cst_13 {dimension_numbers = #tpu.dot_dimension_numbers<[1], [0], [0], [1], [0, 0, 1, 1], [], []>} : vector<8x32xbf16>, vector<32x128xbf16>, vector<8x128xf32> -> vector<8x128xf32>
    %c0_14 = arith.constant 0 : index
    %c0_15 = arith.constant 0 : index
    %29 = vector.load %arg5[%c0_14, %c0_15] : memref<1x128xf32, #tpu.memory_space<vmem>>, vector<1x128xf32>
    %30 = vector.broadcast %29 : vector<1x128xf32> to vector<8x128xf32>
    %31 = arith.addf %28, %30 : vector<8x128xf32>
    %32 = tpu.iota {dimensions = array<i32: 1>} : vector<8x128xi32>
    %c40_i32 = arith.constant 40 : i32
    %33 = vector.broadcast %c40_i32 : i32 to vector<8x128xi32>
    %34 = arith.cmpi slt, %32, %33 : vector<8x128xi32>
    %cst_16 = arith.constant -1.000000e+30 : f32
    %35 = vector.broadcast %cst_16 : f32 to vector<8x128xf32>
    %36 = arith.select %34, %31, %35 : vector<8x128xi1>, vector<8x128xf32>
    %cst_17 = arith.constant dense<0xFF800000> : vector<8xf32>
    %37 = vector.multi_reduction <maximumf>, %36, %cst_17 [1] : vector<8x128xf32> to vector<8xf32>
    %38 = vector.shape_cast %37 : vector<8xf32> to vector<8x1xf32>
    %39 = vector.broadcast %38 : vector<8x1xf32> to vector<8x128xf32>
    %40 = arith.subf %36, %39 : vector<8x128xf32>
    %41 = math.exp %40 : vector<8x128xf32>
    %cst_18 = arith.constant dense<0.000000e+00> : vector<8xf32>
    %42 = vector.multi_reduction <add>, %41, %cst_18 [1] : vector<8x128xf32> to vector<8xf32>
    %43 = vector.shape_cast %42 : vector<8xf32> to vector<8x1xf32>
    %44 = math.log %43 : vector<8x1xf32>
    %45 = vector.broadcast %44 : vector<8x1xf32> to vector<8x128xf32>
    %46 = arith.subf %40, %45 : vector<8x128xf32>
    %c0_19 = arith.constant 0 : index
    %c0_20 = arith.constant 0 : index
    %47 = vector.load %arg7[%c0_19, %c0_20] : memref<8x128xf32, #tpu.memory_space<vmem>>, vector<8x128xf32>
    tpu.vector_store %arg7[%c0_19, %c0_20], %46 {strides = array<i32>} : memref<8x128xf32, #tpu.memory_space<vmem>>, vector<8x128xf32>,
    return
  }
  func.func @transform_0(%arg0: i32) -> (i32, i32) {
    %c0_i32 = arith.constant 0 : i32
    %c0_i32_0 = arith.constant 0 : i32
    return %arg0, %c0_i32 : i32, i32
  }
  func.func @transform_1(%arg0: i32) -> (i32, i32) {
    %c0_i32 = arith.constant 0 : i32
    %c0_i32_0 = arith.constant 0 : i32
    %c0_i32_1 = arith.constant 0 : i32
    return %c0_i32, %c0_i32_0 : i32, i32
  }
  func.func @transform_2(%arg0: i32) -> (i32, i32) {
    %c0_i32 = arith.constant 0 : i32
    %c0_i32_0 = arith.constant 0 : i32
    %c0_i32_1 = arith.constant 0 : i32
    return %c0_i32, %c0_i32_0 : i32, i32
  }
  func.func @transform_3(%arg0: i32) -> (i32, i32) {
    %c0_i32 = arith.constant 0 : i32
    %c0_i32_0 = arith.constant 0 : i32
    %c0_i32_1 = arith.constant 0 : i32
    return %c0_i32, %c0_i32_0 : i32, i32
  }
  func.func @transform_4(%arg0: i32) -> (i32, i32) {
    %c0_i32 = arith.constant 0 : i32
    %c0_i32_0 = arith.constant 0 : i32
    %c0_i32_1 = arith.constant 0 : i32
    return %c0_i32, %c0_i32_0 : i32, i32
  }
  func.func @transform_5(%arg0: i32) -> (i32, i32) {
    %c0_i32 = arith.constant 0 : i32
    %c0_i32_0 = arith.constant 0 : i32
    return %arg0, %c0_i32 : i32, i32
  }
  func.func @transform_6(%arg0: i32) -> (i32, i32) {
    %c0_i32 = arith.constant 0 : i32
    %c0_i32_0 = arith.constant 0 : i32
    return %arg0, %c0_i32 : i32, i32
  }
}

module attributes {stable_mosaic.version = 11 : i64} {
  func.func @_decoder_layer_kernel(%arg0: i32, %arg1: memref<2xi32, #tpu.memory_space<smem>>, %arg2: memref<2xi32, #tpu.memory_space<smem>>, %arg3: memref<1x8x32xf32, #tpu.memory_space<vmem>>, %arg4: memref<1x5x32xf32, #tpu.memory_space<vmem>>, %arg5: memref<1x32xf32, #tpu.memory_space<vmem>>, %arg6: memref<1x32xf32, #tpu.memory_space<vmem>>, %arg7: memref<32x96xbf16, #tpu.memory_space<vmem>>, %arg8: memref<1x96xf32, #tpu.memory_space<vmem>>, %arg9: memref<32x32xbf16, #tpu.memory_space<vmem>>, %arg10: memref<1x32xf32, #tpu.memory_space<vmem>>, %arg11: memref<1x32xf32, #tpu.memory_space<vmem>>, %arg12: memref<1x32xf32, #tpu.memory_space<vmem>>, %arg13: memref<32x96xbf16, #tpu.memory_space<vmem>>, %arg14: memref<1x96xf32, #tpu.memory_space<vmem>>, %arg15: memref<32x32xbf16, #tpu.memory_space<vmem>>, %arg16: memref<1x32xf32, #tpu.memory_space<vmem>>, %arg17: memref<32x64xbf16, #tpu.memory_space<vmem>>, %arg18: memref<1x64xf32, #tpu.memory_space<vmem>>, %arg19: memref<64x32xbf16, #tpu.memory_space<vmem>>, %arg20: memref<1x32xf32, #tpu.memory_space<vmem>>, %arg21: memref<1x32xf32, #tpu.memory_space<vmem>>, %arg22: memref<1x32xf32, #tpu.memory_space<vmem>>, %arg23: memref<1x8x32xf32, #tpu.memory_space<vmem>>, %arg24: memref<1x8x8xf32, #tpu.memory_space<vmem>>, %arg25: memref<1x8x5xf32, #tpu.memory_space<vmem>>) attributes {dimension_semantics = [#tpu.dimension_semantics<parallel>], iteration_bounds = array<i64: 2>, scalar_prefetch = 2 : i64, scratch_operands = 0 : i64, tpu.core_type = #tpu.core_type<tc>, window_params = [{transform_indices = @transform_0, window_bounds = array<i64: 1, 8, 32>}, {transform_indices = @transform_1, window_bounds = array<i64: 1, 5, 32>}, {pipeline_mode = #tpu.pipeline_mode<synchronous>, transform_indices = @transform_2, window_bounds = array<i64: 1, 32>}, {pipeline_mode = #tpu.pipeline_mode<synchronous>, transform_indices = @transform_3, window_bounds = array<i64: 1, 32>}, {pipeline_mode = #tpu.pipeline_mode<synchronous>, transform_indices = @transform_4, window_bounds = array<i64: 32, 96>}, {pipeline_mode = #tpu.pipeline_mode<synchronous>, transform_indices = @transform_5, window_bounds = array<i64: 1, 96>}, {pipeline_mode = #tpu.pipeline_mode<synchronous>, transform_indices = @transform_6, window_bounds = array<i64: 32, 32>}, {pipeline_mode = #tpu.pipeline_mode<synchronous>, transform_indices = @transform_7, window_bounds = array<i64: 1, 32>}, {pipeline_mode = #tpu.pipeline_mode<synchronous>, transform_indices = @transform_8, window_bounds = array<i64: 1, 32>}, {pipeline_mode = #tpu.pipeline_mode<synchronous>, transform_indices = @transform_9, window_bounds = array<i64: 1, 32>}, {pipeline_mode = #tpu.pipeline_mode<synchronous>, transform_indices = @transform_10, window_bounds = array<i64: 32, 96>}, {pipeline_mode = #tpu.pipeline_mode<synchronous>, transform_indices = @transform_11, window_bounds = array<i64: 1, 96>}, {pipeline_mode = #tpu.pipeline_mode<synchronous>, transform_indices = @transform_12, window_bounds = array<i64: 32, 32>}, {pipeline_mode = #tpu.pipeline_mode<synchronous>, transform_indices = @transform_13, window_bounds = array<i64: 1, 32>}, {pipeline_mode = #tpu.pipeline_mode<synchronous>, transform_indices = @transform_14, window_bounds = array<i64: 32, 64>}, {pipeline_mode = #tpu.pipeline_mode<synchronous>, transform_indices = @transform_15, window_bounds = array<i64: 1, 64>}, {pipeline_mode = #tpu.pipeline_mode<synchronous>, transform_indices = @transform_16, window_bounds = array<i64: 64, 32>}, {pipeline_mode = #tpu.pipeline_mode<synchronous>, transform_indices = @transform_17, window_bounds = array<i64: 1, 32>}, {pipeline_mode = #tpu.pipeline_mode<synchronous>, transform_indices = @transform_18, window_bounds = array<i64: 1, 32>}, {pipeline_mode = #tpu.pipeline_mode<synchronous>, transform_indices = @transform_19, window_bounds = array<i64: 1, 32>}, {transform_indices = @transform_20, window_bounds = array<i64: 1, 8, 32>}, {transform_indices = @transform_21, window_bounds = array<i64: 1, 8, 8>}, {transform_indices = @transform_22, window_bounds = array<i64: 1, 8, 5>}]} {
    %0 = arith.index_cast %arg0 : i32 to index
    %1 = memref.load %arg2[%0] : memref<2xi32, #tpu.memory_space<smem>>
    %2 = arith.index_cast %arg0 : i32 to index
    %3 = memref.load %arg1[%2] : memref<2xi32, #tpu.memory_space<smem>>
    %c0 = arith.constant 0 : index
    %c0_0 = arith.constant 0 : index
    %c0_1 = arith.constant 0 : index
    %4 = vector.load %arg3[%c0, %c0_0, %c0_1] : memref<1x8x32xf32, #tpu.memory_space<vmem>>, vector<1x8x32xf32>
    %5 = vector.shape_cast %4 : vector<1x8x32xf32> to vector<8x32xf32>
    %c0_2 = arith.constant 0 : index
    %c0_3 = arith.constant 0 : index
    %c0_4 = arith.constant 0 : index
    %6 = vector.load %arg4[%c0_2, %c0_3, %c0_4] : memref<1x5x32xf32, #tpu.memory_space<vmem>>, vector<1x5x32xf32>
    %7 = vector.shape_cast %6 : vector<1x5x32xf32> to vector<5x32xf32>
    %c0_5 = arith.constant 0 : index
    %c0_6 = arith.constant 0 : index
    %8 = vector.load %arg5[%c0_5, %c0_6] : memref<1x32xf32, #tpu.memory_space<vmem>>, vector<1x32xf32>
    %c0_7 = arith.constant 0 : index
    %c0_8 = arith.constant 0 : index
    %9 = vector.load %arg6[%c0_7, %c0_8] : memref<1x32xf32, #tpu.memory_space<vmem>>, vector<1x32xf32>
    %cst = arith.constant dense<0.000000e+00> : vector<8xf32>
    %10 = vector.multi_reduction <add>, %5, %cst [1] : vector<8x32xf32> to vector<8xf32>
    %11 = vector.shape_cast %10 : vector<8xf32> to vector<8x1xf32>
    %cst_9 = arith.constant 3.200000e+01 : f32
    %12 = vector.broadcast %cst_9 : f32 to vector<8x1xf32>
    %13 = arith.divf %11, %12 : vector<8x1xf32>
    %14 = vector.broadcast %13 : vector<8x1xf32> to vector<8x32xf32>
    %15 = arith.subf %5, %14 : vector<8x32xf32>
    %16 = arith.mulf %15, %15 : vector<8x32xf32>
    %cst_10 = arith.constant dense<0.000000e+00> : vector<8xf32>
    %17 = vector.multi_reduction <add>, %16, %cst_10 [1] : vector<8x32xf32> to vector<8xf32>
    %18 = vector.shape_cast %17 : vector<8xf32> to vector<8x1xf32>
    %cst_11 = arith.constant 3.200000e+01 : f32
    %19 = vector.broadcast %cst_11 : f32 to vector<8x1xf32>
    %20 = arith.divf %18, %19 : vector<8x1xf32>
    %21 = vector.broadcast %13 : vector<8x1xf32> to vector<8x32xf32>
    %22 = arith.subf %5, %21 : vector<8x32xf32>
    %cst_12 = arith.constant 9.99999974E-6 : f32
    %23 = vector.broadcast %cst_12 : f32 to vector<8x1xf32>
    %24 = arith.addf %20, %23 : vector<8x1xf32>
    %25 = math.rsqrt %24 : vector<8x1xf32>
    %26 = vector.broadcast %25 : vector<8x1xf32> to vector<8x32xf32>
    %27 = arith.mulf %22, %26 : vector<8x32xf32>
    %28 = vector.broadcast %8 : vector<1x32xf32> to vector<8x32xf32>
    %29 = arith.mulf %27, %28 : vector<8x32xf32>
    %30 = vector.broadcast %9 : vector<1x32xf32> to vector<8x32xf32>
    %31 = arith.addf %29, %30 : vector<8x32xf32>
    %c0_13 = arith.constant 0 : index
    %c0_14 = arith.constant 0 : index
    %32 = vector.load %arg7[%c0_13, %c0_14] : memref<32x96xbf16, #tpu.memory_space<vmem>>, vector<32x96xbf16>
    %c0_15 = arith.constant 0 : index
    %c0_16 = arith.constant 0 : index
    %33 = vector.load %arg8[%c0_15, %c0_16] : memref<1x96xf32, #tpu.memory_space<vmem>>, vector<1x96xf32>
    %c0_17 = arith.constant 0 : index
    %c0_18 = arith.constant 0 : index
    %34 = vector.load %arg9[%c0_17, %c0_18] : memref<32x32xbf16, #tpu.memory_space<vmem>>, vector<32x32xbf16>
    %c0_19 = arith.constant 0 : index
    %c0_20 = arith.constant 0 : index
    %35 = vector.load %arg10[%c0_19, %c0_20] : memref<1x32xf32, #tpu.memory_space<vmem>>, vector<1x32xf32>
    %36 = arith.truncf %31 : vector<8x32xf32> to vector<8x32xbf16>
    %cst_21 = arith.constant dense<0.000000e+00> : vector<8x96xf32>
    %37 = tpu.matmul %36, %32, %cst_21 {dimension_numbers = #tpu.dot_dimension_numbers<[1], [0], [0], [1], [0, 0, 1, 1], [], []>} : vector<8x32xbf16>, vector<32x96xbf16>, vector<8x96xf32> -> vector<8x96xf32>
    %38 = vector.broadcast %33 : vector<1x96xf32> to vector<8x96xf32>
    %39 = arith.addf %37, %38 : vector<8x96xf32>
    %40 = vector.extract_strided_slice %39 {offsets = [0, 0], sizes = [8, 32], strides = [1, 1]} : vector<8x96xf32> to vector<8x32xf32>
    %41 = vector.extract_strided_slice %39 {offsets = [0, 32], sizes = [8, 32], strides = [1, 1]} : vector<8x96xf32> to vector<8x32xf32>
    %42 = vector.extract_strided_slice %39 {offsets = [0, 64], sizes = [8, 32], strides = [1, 1]} : vector<8x96xf32> to vector<8x32xf32>
    %43 = tpu.iota {dimensions = array<i32: 1>} : vector<8x8xi32>
    %44 = vector.broadcast %1 : i32 to vector<8x8xi32>
    %45 = arith.cmpi sge, %43, %44 : vector<8x8xi32>
    %46 = tpu.iota {dimensions = array<i32: 0>} : vector<8x8xi32>
    %47 = arith.cmpi sgt, %43, %46 : vector<8x8xi32>
    %48 = arith.ori %45, %47 : vector<8x8xi1>
    %cst_22 = arith.constant 0.000000e+00 : f32
    %49 = vector.broadcast %cst_22 : f32 to vector<8x32xf32>
    %cst_23 = arith.constant 0.000000e+00 : f32
    %50 = vector.broadcast %cst_23 : f32 to vector<8x8xf32>
    %51 = vector.extract_strided_slice %40 {offsets = [0, 0], sizes = [8, 16], strides = [1, 1]} : vector<8x32xf32> to vector<8x16xf32>
    %52 = arith.truncf %51 : vector<8x16xf32> to vector<8x16xbf16>
    %53 = vector.extract_strided_slice %41 {offsets = [0, 0], sizes = [8, 16], strides = [1, 1]} : vector<8x32xf32> to vector<8x16xf32>
    %54 = arith.truncf %53 : vector<8x16xf32> to vector<8x16xbf16>
    %cst_24 = arith.constant dense<0.000000e+00> : vector<8x8xf32>
    %55 = tpu.matmul %52, %54, %cst_24 {dimension_numbers = #tpu.dot_dimension_numbers<[1], [1], [0], [0], [0, 0, 1, 0], [], []>} : vector<8x16xbf16>, vector<8x16xbf16>, vector<8x8xf32> -> vector<8x8xf32>
    %cst_25 = arith.constant 2.500000e-01 : f32
    %56 = vector.broadcast %cst_25 : f32 to vector<8x8xf32>
    %57 = arith.mulf %55, %56 : vector<8x8xf32>
    %cst_26 = arith.constant -1.000000e+30 : f32
    %58 = vector.broadcast %cst_26 : f32 to vector<8x8xf32>
    %59 = arith.select %48, %58, %57 : vector<8x8xi1>, vector<8x8xf32>
    %cst_27 = arith.constant dense<0xFF800000> : vector<8xf32>
    %60 = vector.multi_reduction <maximumf>, %59, %cst_27 [1] : vector<8x8xf32> to vector<8xf32>
    %61 = vector.shape_cast %60 : vector<8xf32> to vector<8x1xf32>
    %62 = vector.broadcast %61 : vector<8x1xf32> to vector<8x8xf32>
    %63 = arith.subf %59, %62 : vector<8x8xf32>
    %64 = math.exp %63 : vector<8x8xf32>
    %cst_28 = arith.constant dense<0.000000e+00> : vector<8xf32>
    %65 = vector.multi_reduction <add>, %64, %cst_28 [1] : vector<8x8xf32> to vector<8xf32>
    %66 = vector.shape_cast %65 : vector<8xf32> to vector<8x1xf32>
    %67 = tpu.reciprocal %66 {approx = true} : vector<8x1xf32> -> vector<8x1xf32>
    %68 = vector.broadcast %67 : vector<8x1xf32> to vector<8x8xf32>
    %69 = arith.mulf %64, %68 : vector<8x8xf32>
    %70 = arith.truncf %69 : vector<8x8xf32> to vector<8x8xbf16>
    %71 = vector.extract_strided_slice %42 {offsets = [0, 0], sizes = [8, 16], strides = [1, 1]} : vector<8x32xf32> to vector<8x16xf32>
    %72 = arith.truncf %71 : vector<8x16xf32> to vector<8x16xbf16>
    %cst_29 = arith.constant dense<0.000000e+00> : vector<8x16xf32>
    %73 = tpu.matmul %70, %72, %cst_29 {dimension_numbers = #tpu.dot_dimension_numbers<[1], [0], [0], [1], [0, 0, 1, 1], [], []>} : vector<8x8xbf16>, vector<8x16xbf16>, vector<8x16xf32> -> vector<8x16xf32>
    %74 = arith.truncf %73 : vector<8x16xf32> to vector<8x16xbf16>
    %75 = vector.extract_strided_slice %34 {offsets = [0, 0], sizes = [16, 32], strides = [1, 1]} : vector<32x32xbf16> to vector<16x32xbf16>
    %cst_30 = arith.constant dense<0.000000e+00> : vector<8x32xf32>
    %76 = tpu.matmul %74, %75, %cst_30 {dimension_numbers = #tpu.dot_dimension_numbers<[1], [0], [0], [1], [0, 0, 1, 1], [], []>} : vector<8x16xbf16>, vector<16x32xbf16>, vector<8x32xf32> -> vector<8x32xf32>
    %77 = arith.addf %49, %76 : vector<8x32xf32>
    %78 = arith.addf %50, %69 : vector<8x8xf32>
    %79 = vector.extract_strided_slice %40 {offsets = [0, 16], sizes = [8, 16], strides = [1, 1]} : vector<8x32xf32> to vector<8x16xf32>
    %80 = arith.truncf %79 : vector<8x16xf32> to vector<8x16xbf16>
    %81 = vector.extract_strided_slice %41 {offsets = [0, 16], sizes = [8, 16], strides = [1, 1]} : vector<8x32xf32> to vector<8x16xf32>
    %82 = arith.truncf %81 : vector<8x16xf32> to vector<8x16xbf16>
    %cst_31 = arith.constant dense<0.000000e+00> : vector<8x8xf32>
    %83 = tpu.matmul %80, %82, %cst_31 {dimension_numbers = #tpu.dot_dimension_numbers<[1], [1], [0], [0], [0, 0, 1, 0], [], []>} : vector<8x16xbf16>, vector<8x16xbf16>, vector<8x8xf32> -> vector<8x8xf32>
    %cst_32 = arith.constant 2.500000e-01 : f32
    %84 = vector.broadcast %cst_32 : f32 to vector<8x8xf32>
    %85 = arith.mulf %83, %84 : vector<8x8xf32>
    %cst_33 = arith.constant -1.000000e+30 : f32
    %86 = vector.broadcast %cst_33 : f32 to vector<8x8xf32>
    %87 = arith.select %48, %86, %85 : vector<8x8xi1>, vector<8x8xf32>
    %cst_34 = arith.constant dense<0xFF800000> : vector<8xf32>
    %88 = vector.multi_reduction <maximumf>, %87, %cst_34 [1] : vector<8x8xf32> to vector<8xf32>
    %89 = vector.shape_cast %88 : vector<8xf32> to vector<8x1xf32>
    %90 = vector.broadcast %89 : vector<8x1xf32> to vector<8x8xf32>
    %91 = arith.subf %87, %90 : vector<8x8xf32>
    %92 = math.exp %91 : vector<8x8xf32>
    %cst_35 = arith.constant dense<0.000000e+00> : vector<8xf32>
    %93 = vector.multi_reduction <add>, %92, %cst_35 [1] : vector<8x8xf32> to vector<8xf32>
    %94 = vector.shape_cast %93 : vector<8xf32> to vector<8x1xf32>
    %95 = tpu.reciprocal %94 {approx = true} : vector<8x1xf32> -> vector<8x1xf32>
    %96 = vector.broadcast %95 : vector<8x1xf32> to vector<8x8xf32>
    %97 = arith.mulf %92, %96 : vector<8x8xf32>
    %98 = arith.truncf %97 : vector<8x8xf32> to vector<8x8xbf16>
    %99 = vector.extract_strided_slice %42 {offsets = [0, 16], sizes = [8, 16], strides = [1, 1]} : vector<8x32xf32> to vector<8x16xf32>
    %100 = arith.truncf %99 : vector<8x16xf32> to vector<8x16xbf16>
    %cst_36 = arith.constant dense<0.000000e+00> : vector<8x16xf32>
    %101 = tpu.matmul %98, %100, %cst_36 {dimension_numbers = #tpu.dot_dimension_numbers<[1], [0], [0], [1], [0, 0, 1, 1], [], []>} : vector<8x8xbf16>, vector<8x16xbf16>, vector<8x16xf32> -> vector<8x16xf32>
    %102 = arith.truncf %101 : vector<8x16xf32> to vector<8x16xbf16>
    %103 = vector.extract_strided_slice %34 {offsets = [16, 0], sizes = [16, 32], strides = [1, 1]} : vector<32x32xbf16> to vector<16x32xbf16>
    %cst_37 = arith.constant dense<0.000000e+00> : vector<8x32xf32>
    %104 = tpu.matmul %102, %103, %cst_37 {dimension_numbers = #tpu.dot_dimension_numbers<[1], [0], [0], [1], [0, 0, 1, 1], [], []>} : vector<8x16xbf16>, vector<16x32xbf16>, vector<8x32xf32> -> vector<8x32xf32>
    %105 = arith.addf %77, %104 : vector<8x32xf32>
    %106 = arith.addf %78, %97 : vector<8x8xf32>
    %107 = vector.broadcast %35 : vector<1x32xf32> to vector<8x32xf32>
    %108 = arith.addf %105, %107 : vector<8x32xf32>
    %cst_38 = arith.constant 5.000000e-01 : f32
    %109 = vector.broadcast %cst_38 : f32 to vector<8x8xf32>
    %110 = arith.mulf %106, %109 : vector<8x8xf32>
    %111 = arith.addf %5, %108 : vector<8x32xf32>
    %c0_39 = arith.constant 0 : index
    %c0_40 = arith.constant 0 : index
    %112 = vector.load %arg11[%c0_39, %c0_40] : memref<1x32xf32, #tpu.memory_space<vmem>>, vector<1x32xf32>
    %c0_41 = arith.constant 0 : index
    %c0_42 = arith.constant 0 : index
    %113 = vector.load %arg12[%c0_41, %c0_42] : memref<1x32xf32, #tpu.memory_space<vmem>>, vector<1x32xf32>
    %cst_43 = arith.constant dense<0.000000e+00> : vector<8xf32>
    %114 = vector.multi_reduction <add>, %111, %cst_43 [1] : vector<8x32xf32> to vector<8xf32>
    %115 = vector.shape_cast %114 : vector<8xf32> to vector<8x1xf32>
    %cst_44 = arith.constant 3.200000e+01 : f32
    %116 = vector.broadcast %cst_44 : f32 to vector<8x1xf32>
    %117 = arith.divf %115, %116 : vector<8x1xf32>
    %118 = vector.broadcast %117 : vector<8x1xf32> to vector<8x32xf32>
    %119 = arith.subf %111, %118 : vector<8x32xf32>
    %120 = arith.mulf %119, %119 : vector<8x32xf32>
    %cst_45 = arith.constant dense<0.000000e+00> : vector<8xf32>
    %121 = vector.multi_reduction <add>, %120, %cst_45 [1] : vector<8x32xf32> to vector<8xf32>
    %122 = vector.shape_cast %121 : vector<8xf32> to vector<8x1xf32>
    %cst_46 = arith.constant 3.200000e+01 : f32
    %123 = vector.broadcast %cst_46 : f32 to vector<8x1xf32>
    %124 = arith.divf %122, %123 : vector<8x1xf32>
    %125 = vector.broadcast %117 : vector<8x1xf32> to vector<8x32xf32>
    %126 = arith.subf %111, %125 : vector<8x32xf32>
    %cst_47 = arith.constant 9.99999974E-6 : f32
    %127 = vector.broadcast %cst_47 : f32 to vector<8x1xf32>
    %128 = arith.addf %124, %127 : vector<8x1xf32>
    %129 = math.rsqrt %128 : vector<8x1xf32>
    %130 = vector.broadcast %129 : vector<8x1xf32> to vector<8x32xf32>
    %131 = arith.mulf %126, %130 : vector<8x32xf32>
    %132 = vector.broadcast %112 : vector<1x32xf32> to vector<8x32xf32>
    %133 = arith.mulf %131, %132 : vector<8x32xf32>
    %134 = vector.broadcast %113 : vector<1x32xf32> to vector<8x32xf32>
    %135 = arith.addf %133, %134 : vector<8x32xf32>
    %c0_48 = arith.constant 0 : index
    %c0_49 = arith.constant 0 : index
    %136 = vector.load %arg13[%c0_48, %c0_49] : memref<32x96xbf16, #tpu.memory_space<vmem>>, vector<32x96xbf16>
    %c0_50 = arith.constant 0 : index
    %c0_51 = arith.constant 0 : index
    %137 = vector.load %arg14[%c0_50, %c0_51] : memref<1x96xf32, #tpu.memory_space<vmem>>, vector<1x96xf32>
    %c0_52 = arith.constant 0 : index
    %c0_53 = arith.constant 0 : index
    %138 = vector.load %arg15[%c0_52, %c0_53] : memref<32x32xbf16, #tpu.memory_space<vmem>>, vector<32x32xbf16>
    %c0_54 = arith.constant 0 : index
    %c0_55 = arith.constant 0 : index
    %139 = vector.load %arg16[%c0_54, %c0_55] : memref<1x32xf32, #tpu.memory_space<vmem>>, vector<1x32xf32>
    %140 = arith.truncf %135 : vector<8x32xf32> to vector<8x32xbf16>
    %141 = vector.extract_strided_slice %136 {offsets = [0, 0], sizes = [32, 32], strides = [1, 1]} : vector<32x96xbf16> to vector<32x32xbf16>
    %cst_56 = arith.constant dense<0.000000e+00> : vector<8x32xf32>
    %142 = tpu.matmul %140, %141, %cst_56 {dimension_numbers = #tpu.dot_dimension_numbers<[1], [0], [0], [1], [0, 0, 1, 1], [], []>} : vector<8x32xbf16>, vector<32x32xbf16>, vector<8x32xf32> -> vector<8x32xf32>
    %143 = vector.extract_strided_slice %137 {offsets = [0, 0], sizes = [1, 32], strides = [1, 1]} : vector<1x96xf32> to vector<1x32xf32>
    %144 = vector.broadcast %143 : vector<1x32xf32> to vector<8x32xf32>
    %145 = arith.addf %142, %144 : vector<8x32xf32>
    %146 = arith.truncf %7 : vector<5x32xf32> to vector<5x32xbf16>
    %147 = vector.extract_strided_slice %136 {offsets = [0, 32], sizes = [32, 64], strides = [1, 1]} : vector<32x96xbf16> to vector<32x64xbf16>
    %cst_57 = arith.constant dense<0.000000e+00> : vector<5x64xf32>
    %148 = tpu.matmul %146, %147, %cst_57 {dimension_numbers = #tpu.dot_dimension_numbers<[1], [0], [0], [1], [0, 0, 1, 1], [], []>} : vector<5x32xbf16>, vector<32x64xbf16>, vector<5x64xf32> -> vector<5x64xf32>
    %149 = vector.extract_strided_slice %137 {offsets = [0, 32], sizes = [1, 64], strides = [1, 1]} : vector<1x96xf32> to vector<1x64xf32>
    %150 = vector.broadcast %149 : vector<1x64xf32> to vector<5x64xf32>
    %151 = arith.addf %148, %150 : vector<5x64xf32>
    %152 = vector.extract_strided_slice %151 {offsets = [0, 0], sizes = [5, 32], strides = [1, 1]} : vector<5x64xf32> to vector<5x32xf32>
    %153 = vector.extract_strided_slice %151 {offsets = [0, 32], sizes = [5, 32], strides = [1, 1]} : vector<5x64xf32> to vector<5x32xf32>
    %154 = tpu.iota {dimensions = array<i32: 1>} : vector<8x5xi32>
    %155 = vector.broadcast %3 : i32 to vector<8x5xi32>
    %156 = arith.cmpi sge, %154, %155 : vector<8x5xi32>
    %cst_58 = arith.constant 0.000000e+00 : f32
    %157 = vector.broadcast %cst_58 : f32 to vector<8x32xf32>
    %cst_59 = arith.constant 0.000000e+00 : f32
    %158 = vector.broadcast %cst_59 : f32 to vector<8x5xf32>
    %159 = vector.extract_strided_slice %145 {offsets = [0, 0], sizes = [8, 16], strides = [1, 1]} : vector<8x32xf32> to vector<8x16xf32>
    %160 = arith.truncf %159 : vector<8x16xf32> to vector<8x16xbf16>
    %161 = vector.extract_strided_slice %152 {offsets = [0, 0], sizes = [5, 16], strides = [1, 1]} : vector<5x32xf32> to vector<5x16xf32>
    %162 = arith.truncf %161 : vector<5x16xf32> to vector<5x16xbf16>
    %cst_60 = arith.constant dense<0.000000e+00> : vector<8x5xf32>
    %163 = tpu.matmul %160, %162, %cst_60 {dimension_numbers = #tpu.dot_dimension_numbers<[1], [1], [0], [0], [0, 0, 1, 0], [], []>} : vector<8x16xbf16>, vector<5x16xbf16>, vector<8x5xf32> -> vector<8x5xf32>
    %cst_61 = arith.constant 2.500000e-01 : f32
    %164 = vector.broadcast %cst_61 : f32 to vector<8x5xf32>
    %165 = arith.mulf %163, %164 : vector<8x5xf32>
    %cst_62 = arith.constant -1.000000e+30 : f32
    %166 = vector.broadcast %cst_62 : f32 to vector<8x5xf32>
    %167 = arith.select %156, %166, %165 : vector<8x5xi1>, vector<8x5xf32>
    %cst_63 = arith.constant dense<0xFF800000> : vector<8xf32>
    %168 = vector.multi_reduction <maximumf>, %167, %cst_63 [1] : vector<8x5xf32> to vector<8xf32>
    %169 = vector.shape_cast %168 : vector<8xf32> to vector<8x1xf32>
    %170 = vector.broadcast %169 : vector<8x1xf32> to vector<8x5xf32>
    %171 = arith.subf %167, %170 : vector<8x5xf32>
    %172 = math.exp %171 : vector<8x5xf32>
    %cst_64 = arith.constant dense<0.000000e+00> : vector<8xf32>
    %173 = vector.multi_reduction <add>, %172, %cst_64 [1] : vector<8x5xf32> to vector<8xf32>
    %174 = vector.shape_cast %173 : vector<8xf32> to vector<8x1xf32>
    %175 = tpu.reciprocal %174 {approx = true} : vector<8x1xf32> -> vector<8x1xf32>
    %176 = vector.broadcast %175 : vector<8x1xf32> to vector<8x5xf32>
    %177 = arith.mulf %172, %176 : vector<8x5xf32>
    %178 = arith.truncf %177 : vector<8x5xf32> to vector<8x5xbf16>
    %179 = vector.extract_strided_slice %153 {offsets = [0, 0], sizes = [5, 16], strides = [1, 1]} : vector<5x32xf32> to vector<5x16xf32>
    %180 = arith.truncf %179 : vector<5x16xf32> to vector<5x16xbf16>
    %cst_65 = arith.constant dense<0.000000e+00> : vector<8x16xf32>
    %181 = tpu.matmul %178, %180, %cst_65 {dimension_numbers = #tpu.dot_dimension_numbers<[1], [0], [0], [1], [0, 0, 1, 1], [], []>} : vector<8x5xbf16>, vector<5x16xbf16>, vector<8x16xf32> -> vector<8x16xf32>
    %182 = arith.truncf %181 : vector<8x16xf32> to vector<8x16xbf16>
    %183 = vector.extract_strided_slice %138 {offsets = [0, 0], sizes = [16, 32], strides = [1, 1]} : vector<32x32xbf16> to vector<16x32xbf16>
    %cst_66 = arith.constant dense<0.000000e+00> : vector<8x32xf32>
    %184 = tpu.matmul %182, %183, %cst_66 {dimension_numbers = #tpu.dot_dimension_numbers<[1], [0], [0], [1], [0, 0, 1, 1], [], []>} : vector<8x16xbf16>, vector<16x32xbf16>, vector<8x32xf32> -> vector<8x32xf32>
    %185 = arith.addf %157, %184 : vector<8x32xf32>
    %186 = arith.addf %158, %177 : vector<8x5xf32>
    %187 = vector.extract_strided_slice %145 {offsets = [0, 16], sizes = [8, 16], strides = [1, 1]} : vector<8x32xf32> to vector<8x16xf32>
    %188 = arith.truncf %187 : vector<8x16xf32> to vector<8x16xbf16>
    %189 = vector.extract_strided_slice %152 {offsets = [0, 16], sizes = [5, 16], strides = [1, 1]} : vector<5x32xf32> to vector<5x16xf32>
    %190 = arith.truncf %189 : vector<5x16xf32> to vector<5x16xbf16>
    %cst_67 = arith.constant dense<0.000000e+00> : vector<8x5xf32>
    %191 = tpu.matmul %188, %190, %cst_67 {dimension_numbers = #tpu.dot_dimension_numbers<[1], [1], [0], [0], [0, 0, 1, 0], [], []>} : vector<8x16xbf16>, vector<5x16xbf16>, vector<8x5xf32> -> vector<8x5xf32>
    %cst_68 = arith.constant 2.500000e-01 : f32
    %192 = vector.broadcast %cst_68 : f32 to vector<8x5xf32>
    %193 = arith.mulf %191, %192 : vector<8x5xf32>
    %cst_69 = arith.constant -1.000000e+30 : f32
    %194 = vector.broadcast %cst_69 : f32 to vector<8x5xf32>
    %195 = arith.select %156, %194, %193 : vector<8x5xi1>, vector<8x5xf32>
    %cst_70 = arith.constant dense<0xFF800000> : vector<8xf32>
    %196 = vector.multi_reduction <maximumf>, %195, %cst_70 [1] : vector<8x5xf32> to vector<8xf32>
    %197 = vector.shape_cast %196 : vector<8xf32> to vector<8x1xf32>
    %198 = vector.broadcast %197 : vector<8x1xf32> to vector<8x5xf32>
    %199 = arith.subf %195, %198 : vector<8x5xf32>
    %200 = math.exp %199 : vector<8x5xf32>
    %cst_71 = arith.constant dense<0.000000e+00> : vector<8xf32>
    %201 = vector.multi_reduction <add>, %200, %cst_71 [1] : vector<8x5xf32> to vector<8xf32>
    %202 = vector.shape_cast %201 : vector<8xf32> to vector<8x1xf32>
    %203 = tpu.reciprocal %202 {approx = true} : vector<8x1xf32> -> vector<8x1xf32>
    %204 = vector.broadcast %203 : vector<8x1xf32> to vector<8x5xf32>
    %205 = arith.mulf %200, %204 : vector<8x5xf32>
    %206 = arith.truncf %205 : vector<8x5xf32> to vector<8x5xbf16>
    %207 = vector.extract_strided_slice %153 {offsets = [0, 16], sizes = [5, 16], strides = [1, 1]} : vector<5x32xf32> to vector<5x16xf32>
    %208 = arith.truncf %207 : vector<5x16xf32> to vector<5x16xbf16>
    %cst_72 = arith.constant dense<0.000000e+00> : vector<8x16xf32>
    %209 = tpu.matmul %206, %208, %cst_72 {dimension_numbers = #tpu.dot_dimension_numbers<[1], [0], [0], [1], [0, 0, 1, 1], [], []>} : vector<8x5xbf16>, vector<5x16xbf16>, vector<8x16xf32> -> vector<8x16xf32>
    %210 = arith.truncf %209 : vector<8x16xf32> to vector<8x16xbf16>
    %211 = vector.extract_strided_slice %138 {offsets = [16, 0], sizes = [16, 32], strides = [1, 1]} : vector<32x32xbf16> to vector<16x32xbf16>
    %cst_73 = arith.constant dense<0.000000e+00> : vector<8x32xf32>
    %212 = tpu.matmul %210, %211, %cst_73 {dimension_numbers = #tpu.dot_dimension_numbers<[1], [0], [0], [1], [0, 0, 1, 1], [], []>} : vector<8x16xbf16>, vector<16x32xbf16>, vector<8x32xf32> -> vector<8x32xf32>
    %213 = arith.addf %185, %212 : vector<8x32xf32>
    %214 = arith.addf %186, %205 : vector<8x5xf32>
    %215 = vector.broadcast %139 : vector<1x32xf32> to vector<8x32xf32>
    %216 = arith.addf %213, %215 : vector<8x32xf32>
    %cst_74 = arith.constant 5.000000e-01 : f32
    %217 = vector.broadcast %cst_74 : f32 to vector<8x5xf32>
    %218 = arith.mulf %214, %217 : vector<8x5xf32>
    %219 = arith.addf %135, %216 : vector<8x32xf32>
    %c0_75 = arith.constant 0 : index
    %c0_76 = arith.constant 0 : index
    %220 = vector.load %arg17[%c0_75, %c0_76] : memref<32x64xbf16, #tpu.memory_space<vmem>>, vector<32x64xbf16>
    %c0_77 = arith.constant 0 : index
    %c0_78 = arith.constant 0 : index
    %221 = vector.load %arg18[%c0_77, %c0_78] : memref<1x64xf32, #tpu.memory_space<vmem>>, vector<1x64xf32>
    %c0_79 = arith.constant 0 : index
    %c0_80 = arith.constant 0 : index
    %222 = vector.load %arg19[%c0_79, %c0_80] : memref<64x32xbf16, #tpu.memory_space<vmem>>, vector<64x32xbf16>
    %c0_81 = arith.constant 0 : index
    %c0_82 = arith.constant 0 : index
    %223 = vector.load %arg20[%c0_81, %c0_82] : memref<1x32xf32, #tpu.memory_space<vmem>>, vector<1x32xf32>
    %224 = arith.truncf %219 : vector<8x32xf32> to vector<8x32xbf16>
    %cst_83 = arith.constant dense<0.000000e+00> : vector<8x64xf32>
    %225 = tpu.matmul %224, %220, %cst_83 {dimension_numbers = #tpu.dot_dimension_numbers<[1], [0], [0], [1], [0, 0, 1, 1], [], []>} : vector<8x32xbf16>, vector<32x64xbf16>, vector<8x64xf32> -> vector<8x64xf32>
    %226 = vector.broadcast %221 : vector<1x64xf32> to vector<8x64xf32>
    %227 = arith.addf %225, %226 : vector<8x64xf32>
    %cst_84 = arith.constant 0.707106769 : f32
    %228 = vector.broadcast %cst_84 : f32 to vector<8x64xf32>
    %229 = arith.mulf %227, %228 : vector<8x64xf32>
    %230 = math.absf %229 : vector<8x64xf32>
    %cst_85 = arith.constant 0.327591091 : f32
    %231 = vector.broadcast %cst_85 : f32 to vector<8x64xf32>
    %232 = arith.mulf %231, %230 : vector<8x64xf32>
    %cst_86 = arith.constant 1.000000e+00 : f32
    %233 = vector.broadcast %cst_86 : f32 to vector<8x64xf32>
    %234 = arith.addf %233, %232 : vector<8x64xf32>
    %cst_87 = arith.constant 1.000000e+00 : f32
    %235 = vector.broadcast %cst_87 : f32 to vector<8x64xf32>
    %236 = arith.divf %235, %234 : vector<8x64xf32>
    %cst_88 = arith.constant 1.06140542 : f32
    %237 = vector.broadcast %cst_88 : f32 to vector<8x64xf32>
    %238 = arith.mulf %236, %237 : vector<8x64xf32>
    %cst_89 = arith.constant -1.45315206 : f32
    %239 = vector.broadcast %cst_89 : f32 to vector<8x64xf32>
    %240 = arith.addf %239, %238 : vector<8x64xf32>
    %241 = arith.mulf %236, %240 : vector<8x64xf32>
    %cst_90 = arith.constant 1.42141378 : f32
    %242 = vector.broadcast %cst_90 : f32 to vector<8x64xf32>
    %243 = arith.addf %242, %241 : vector<8x64xf32>
    %244 = arith.mulf %236, %243 : vector<8x64xf32>
    %cst_91 = arith.constant -0.284496725 : f32
    %245 = vector.broadcast %cst_91 : f32 to vector<8x64xf32>
    %246 = arith.addf %245, %244 : vector<8x64xf32>
    %247 = arith.mulf %236, %246 : vector<8x64xf32>
    %cst_92 = arith.constant 0.254829586 : f32
    %248 = vector.broadcast %cst_92 : f32 to vector<8x64xf32>
    %249 = arith.addf %248, %247 : vector<8x64xf32>
    %250 = arith.mulf %236, %249 : vector<8x64xf32>
    %cst_93 = arith.constant 0.000000e+00 : f32
    %251 = vector.broadcast %cst_93 : f32 to vector<8x64xf32>
    %252 = arith.subf %251, %230 : vector<8x64xf32>
    %253 = arith.mulf %252, %230 : vector<8x64xf32>
    %254 = math.exp %253 : vector<8x64xf32>
    %255 = arith.mulf %250, %254 : vector<8x64xf32>
    %cst_94 = arith.constant 1.000000e+00 : f32
    %256 = vector.broadcast %cst_94 : f32 to vector<8x64xf32>
    %257 = arith.subf %256, %255 : vector<8x64xf32>
    %cst_95 = arith.constant 0.000000e+00 : f32
    %258 = vector.broadcast %cst_95 : f32 to vector<8x64xf32>
    %259 = arith.cmpf olt, %229, %258 : vector<8x64xf32>
    %cst_96 = arith.constant 0.000000e+00 : f32
    %260 = vector.broadcast %cst_96 : f32 to vector<8x64xf32>
    %261 = arith.subf %260, %257 : vector<8x64xf32>
    %262 = arith.select %259, %261, %257 : vector<8x64xi1>, vector<8x64xf32>
    %cst_97 = arith.constant 5.000000e-01 : f32
    %263 = vector.broadcast %cst_97 : f32 to vector<8x64xf32>
    %264 = arith.mulf %263, %227 : vector<8x64xf32>
    %cst_98 = arith.constant 1.000000e+00 : f32
    %265 = vector.broadcast %cst_98 : f32 to vector<8x64xf32>
    %266 = arith.addf %265, %262 : vector<8x64xf32>
    %267 = arith.mulf %264, %266 : vector<8x64xf32>
    %268 = arith.truncf %267 : vector<8x64xf32> to vector<8x64xbf16>
    %cst_99 = arith.constant dense<0.000000e+00> : vector<8x32xf32>
    %269 = tpu.matmul %268, %222, %cst_99 {dimension_numbers = #tpu.dot_dimension_numbers<[1], [0], [0], [1], [0, 0, 1, 1], [], []>} : vector<8x64xbf16>, vector<64x32xbf16>, vector<8x32xf32> -> vector<8x32xf32>
    %270 = arith.addf %219, %269 : vector<8x32xf32>
    %271 = vector.broadcast %223 : vector<1x32xf32> to vector<8x32xf32>
    %272 = arith.addf %270, %271 : vector<8x32xf32>
    %c0_100 = arith.constant 0 : index
    %c0_101 = arith.constant 0 : index
    %273 = vector.load %arg21[%c0_100, %c0_101] : memref<1x32xf32, #tpu.memory_space<vmem>>, vector<1x32xf32>
    %c0_102 = arith.constant 0 : index
    %c0_103 = arith.constant 0 : index
    %274 = vector.load %arg22[%c0_102, %c0_103] : memref<1x32xf32, #tpu.memory_space<vmem>>, vector<1x32xf32>
    %cst_104 = arith.constant dense<0.000000e+00> : vector<8xf32>
    %275 = vector.multi_reduction <add>, %272, %cst_104 [1] : vector<8x32xf32> to vector<8xf32>
    %276 = vector.shape_cast %275 : vector<8xf32> to vector<8x1xf32>
    %cst_105 = arith.constant 3.200000e+01 : f32
    %277 = vector.broadcast %cst_105 : f32 to vector<8x1xf32>
    %278 = arith.divf %276, %277 : vector<8x1xf32>
    %279 = vector.broadcast %278 : vector<8x1xf32> to vector<8x32xf32>
    %280 = arith.subf %272, %279 : vector<8x32xf32>
    %281 = arith.mulf %280, %280 : vector<8x32xf32>
    %cst_106 = arith.constant dense<0.000000e+00> : vector<8xf32>
    %282 = vector.multi_reduction <add>, %281, %cst_106 [1] : vector<8x32xf32> to vector<8xf32>
    %283 = vector.shape_cast %282 : vector<8xf32> to vector<8x1xf32>
    %cst_107 = arith.constant 3.200000e+01 : f32
    %284 = vector.broadcast %cst_107 : f32 to vector<8x1xf32>
    %285 = arith.divf %283, %284 : vector<8x1xf32>
    %286 = vector.broadcast %278 : vector<8x1xf32> to vector<8x32xf32>
    %287 = arith.subf %272, %286 : vector<8x32xf32>
    %cst_108 = arith.constant 9.99999974E-6 : f32
    %288 = vector.broadcast %cst_108 : f32 to vector<8x1xf32>
    %289 = arith.addf %285, %288 : vector<8x1xf32>
    %290 = math.rsqrt %289 : vector<8x1xf32>
    %291 = vector.broadcast %290 : vector<8x1xf32> to vector<8x32xf32>
    %292 = arith.mulf %287, %291 : vector<8x32xf32>
    %293 = vector.broadcast %273 : vector<1x32xf32> to vector<8x32xf32>
    %294 = arith.mulf %292, %293 : vector<8x32xf32>
    %295 = vector.broadcast %274 : vector<1x32xf32> to vector<8x32xf32>
    %296 = arith.addf %294, %295 : vector<8x32xf32>
    %c0_109 = arith.constant 0 : index
    %c0_110 = arith.constant 0 : index
    %c0_111 = arith.constant 0 : index
    %297 = vector.load %arg23[%c0_109, %c0_110, %c0_111] : memref<1x8x32xf32, #tpu.memory_space<vmem>>, vector<1x8x32xf32>
    %298 = vector.shape_cast %297 : vector<1x8x32xf32> to vector<8x32xf32>
    %299 = vector.shape_cast %296 : vector<8x32xf32> to vector<1x8x32xf32>
    tpu.vector_store %arg23[%c0_109, %c0_110, %c0_111], %299 {strides = array<i32>} : memref<1x8x32xf32, #tpu.memory_space<vmem>>, vector<1x8x32xf32>,
    %c0_112 = arith.constant 0 : index
    %c0_113 = arith.constant 0 : index
    %c0_114 = arith.constant 0 : index
    %300 = vector.load %arg24[%c0_112, %c0_113, %c0_114] : memref<1x8x8xf32, #tpu.memory_space<vmem>>, vector<1x8x8xf32>
    %301 = vector.shape_cast %300 : vector<1x8x8xf32> to vector<8x8xf32>
    %302 = vector.shape_cast %110 : vector<8x8xf32> to vector<1x8x8xf32>
    tpu.vector_store %arg24[%c0_112, %c0_113, %c0_114], %302 {strides = array<i32>} : memref<1x8x8xf32, #tpu.memory_space<vmem>>, vector<1x8x8xf32>,
    %c0_115 = arith.constant 0 : index
    %c0_116 = arith.constant 0 : index
    %c0_117 = arith.constant 0 : index
    %303 = vector.load %arg25[%c0_115, %c0_116, %c0_117] : memref<1x8x5xf32, #tpu.memory_space<vmem>>, vector<1x8x5xf32>
    %304 = vector.shape_cast %303 : vector<1x8x5xf32> to vector<8x5xf32>
    %305 = vector.shape_cast %218 : vector<8x5xf32> to vector<1x8x5xf32>
    tpu.vector_store %arg25[%c0_115, %c0_116, %c0_117], %305 {strides = array<i32>} : memref<1x8x5xf32, #tpu.memory_space<vmem>>, vector<1x8x5xf32>,
    return
  }
  func.func @transform_0(%arg0: i32, %arg1: memref<2xi32, #tpu.memory_space<smem>>, %arg2: memref<2xi32, #tpu.memory_space<smem>>) -> (i32, i32, i32) {
    %c0_i32 = arith.constant 0 : i32
    %c0_i32_0 = arith.constant 0 : i32
    %c0_i32_1 = arith.constant 0 : i32
    return %arg0, %c0_i32, %c0_i32_0 : i32, i32, i32
  }
  func.func @transform_1(%arg0: i32, %arg1: memref<2xi32, #tpu.memory_space<smem>>, %arg2: memref<2xi32, #tpu.memory_space<smem>>) -> (i32, i32, i32) {
    %c0_i32 = arith.constant 0 : i32
    %c0_i32_0 = arith.constant 0 : i32
    %c0_i32_1 = arith.constant 0 : i32
    return %arg0, %c0_i32, %c0_i32_0 : i32, i32, i32
  }
  func.func @transform_2(%arg0: i32, %arg1: memref<2xi32, #tpu.memory_space<smem>>, %arg2: memref<2xi32, #tpu.memory_space<smem>>) -> (i32, i32) {
    %c0_i32 = arith.constant 0 : i32
    %c0_i32_0 = arith.constant 0 : i32
    %c0_i32_1 = arith.constant 0 : i32
    return %c0_i32, %c0_i32_0 : i32, i32
  }
  func.func @transform_3(%arg0: i32, %arg1: memref<2xi32, #tpu.memory_space<smem>>, %arg2: memref<2xi32, #tpu.memory_space<smem>>) -> (i32, i32) {
    %c0_i32 = arith.constant 0 : i32
    %c0_i32_0 = arith.constant 0 : i32
    %c0_i32_1 = arith.constant 0 : i32
    return %c0_i32, %c0_i32_0 : i32, i32
  }
  func.func @transform_4(%arg0: i32, %arg1: memref<2xi32, #tpu.memory_space<smem>>, %arg2: memref<2xi32, #tpu.memory_space<smem>>) -> (i32, i32) {
    %c0_i32 = arith.constant 0 : i32
    %c0_i32_0 = arith.constant 0 : i32
    %c0_i32_1 = arith.constant 0 : i32
    return %c0_i32, %c0_i32_0 : i32, i32
  }
  func.func @transform_5(%arg0: i32, %arg1: memref<2xi32, #tpu.memory_space<smem>>, %arg2: memref<2xi32, #tpu.memory_space<smem>>) -> (i32, i32) {
    %c0_i32 = arith.constant 0 : i32
    %c0_i32_0 = arith.constant 0 : i32
    %c0_i32_1 = arith.constant 0 : i32
    return %c0_i32, %c0_i32_0 : i32, i32
  }
  func.func @transform_6(%arg0: i32, %arg1: memref<2xi32, #tpu.memory_space<smem>>, %arg2: memref<2xi32, #tpu.memory_space<smem>>) -> (i32, i32) {
    %c0_i32 = arith.constant 0 : i32
    %c0_i32_0 = arith.constant 0 : i32
    %c0_i32_1 = arith.constant 0 : i32
    return %c0_i32, %c0_i32_0 : i32, i32
  }
  func.func @transform_7(%arg0: i32, %arg1: memref<2xi32, #tpu.memory_space<smem>>, %arg2: memref<2xi32, #tpu.memory_space<smem>>) -> (i32, i32) {
    %c0_i32 = arith.constant 0 : i32
    %c0_i32_0 = arith.constant 0 : i32
    %c0_i32_1 = arith.constant 0 : i32
    return %c0_i32, %c0_i32_0 : i32, i32
  }
  func.func @transform_8(%arg0: i32, %arg1: memref<2xi32, #tpu.memory_space<smem>>, %arg2: memref<2xi32, #tpu.memory_space<smem>>) -> (i32, i32) {
    %c0_i32 = arith.constant 0 : i32
    %c0_i32_0 = arith.constant 0 : i32
    %c0_i32_1 = arith.constant 0 : i32
    return %c0_i32, %c0_i32_0 : i32, i32
  }
  func.func @transform_9(%arg0: i32, %arg1: memref<2xi32, #tpu.memory_space<smem>>, %arg2: memref<2xi32, #tpu.memory_space<smem>>) -> (i32, i32) {
    %c0_i32 = arith.constant 0 : i32
    %c0_i32_0 = arith.constant 0 : i32
    %c0_i32_1 = arith.constant 0 : i32
    return %c0_i32, %c0_i32_0 : i32, i32
  }
  func.func @transform_10(%arg0: i32, %arg1: memref<2xi32, #tpu.memory_space<smem>>, %arg2: memref<2xi32, #tpu.memory_space<smem>>) -> (i32, i32) {
    %c0_i32 = arith.constant 0 : i32
    %c0_i32_0 = arith.constant 0 : i32
    %c0_i32_1 = arith.constant 0 : i32
    return %c0_i32, %c0_i32_0 : i32, i32
  }
  func.func @transform_11(%arg0: i32, %arg1: memref<2xi32, #tpu.memory_space<smem>>, %arg2: memref<2xi32, #tpu.memory_space<smem>>) -> (i32, i32) {
    %c0_i32 = arith.constant 0 : i32
    %c0_i32_0 = arith.constant 0 : i32
    %c0_i32_1 = arith.constant 0 : i32
    return %c0_i32, %c0_i32_0 : i32, i32
  }
  func.func @transform_12(%arg0: i32, %arg1: memref<2xi32, #tpu.memory_space<smem>>, %arg2: memref<2xi32, #tpu.memory_space<smem>>) -> (i32, i32) {
    %c0_i32 = arith.constant 0 : i32
    %c0_i32_0 = arith.constant 0 : i32
    %c0_i32_1 = arith.constant 0 : i32
    return %c0_i32, %c0_i32_0 : i32, i32
  }
  func.func @transform_13(%arg0: i32, %arg1: memref<2xi32, #tpu.memory_space<smem>>, %arg2: memref<2xi32, #tpu.memory_space<smem>>) -> (i32, i32) {
    %c0_i32 = arith.constant 0 : i32
    %c0_i32_0 = arith.constant 0 : i32
    %c0_i32_1 = arith.constant 0 : i32
    return %c0_i32, %c0_i32_0 : i32, i32
  }
  func.func @transform_14(%arg0: i32, %arg1: memref<2xi32, #tpu.memory_space<smem>>, %arg2: memref<2xi32, #tpu.memory_space<smem>>) -> (i32, i32) {
    %c0_i32 = arith.constant 0 : i32
    %c0_i32_0 = arith.constant 0 : i32
    %c0_i32_1 = arith.constant 0 : i32
    return %c0_i32, %c0_i32_0 : i32, i32
  }
  func.func @transform_15(%arg0: i32, %arg1: memref<2xi32, #tpu.memory_space<smem>>, %arg2: memref<2xi32, #tpu.memory_space<smem>>) -> (i32, i32) {
    %c0_i32 = arith.constant 0 : i32
    %c0_i32_0 = arith.constant 0 : i32
    %c0_i32_1 = arith.constant 0 : i32
    return %c0_i32, %c0_i32_0 : i32, i32
  }
  func.func @transform_16(%arg0: i32, %arg1: memref<2xi32, #tpu.memory_space<smem>>, %arg2: memref<2xi32, #tpu.memory_space<smem>>) -> (i32, i32) {
    %c0_i32 = arith.constant 0 : i32
    %c0_i32_0 = arith.constant 0 : i32
    %c0_i32_1 = arith.constant 0 : i32
    return %c0_i32, %c0_i32_0 : i32, i32
  }
  func.func @transform_17(%arg0: i32, %arg1: memref<2xi32, #tpu.memory_space<smem>>, %arg2: memref<2xi32, #tpu.memory_space<smem>>) -> (i32, i32) {
    %c0_i32 = arith.constant 0 : i32
    %c0_i32_0 = arith.constant 0 : i32
    %c0_i32_1 = arith.constant 0 : i32
    return %c0_i32, %c0_i32_0 : i32, i32
  }
  func.func @transform_18(%arg0: i32, %arg1: memref<2xi32, #tpu.memory_space<smem>>, %arg2: memref<2xi32, #tpu.memory_space<smem>>) -> (i32, i32) {
    %c0_i32 = arith.constant 0 : i32
    %c0_i32_0 = arith.constant 0 : i32
    %c0_i32_1 = arith.constant 0 : i32
    return %c0_i32, %c0_i32_0 : i32, i32
  }
  func.func @transform_19(%arg0: i32, %arg1: memref<2xi32, #tpu.memory_space<smem>>, %arg2: memref<2xi32, #tpu.memory_space<smem>>) -> (i32, i32) {
    %c0_i32 = arith.constant 0 : i32
    %c0_i32_0 = arith.constant 0 : i32
    %c0_i32_1 = arith.constant 0 : i32
    return %c0_i32, %c0_i32_0 : i32, i32
  }
  func.func @transform_20(%arg0: i32, %arg1: memref<2xi32, #tpu.memory_space<smem>>, %arg2: memref<2xi32, #tpu.memory_space<smem>>) -> (i32, i32, i32) {
    %c0_i32 = arith.constant 0 : i32
    %c0_i32_0 = arith.constant 0 : i32
    %c0_i32_1 = arith.constant 0 : i32
    return %arg0, %c0_i32, %c0_i32_0 : i32, i32, i32
  }
  func.func @transform_21(%arg0: i32, %arg1: memref<2xi32, #tpu.memory_space<smem>>, %arg2: memref<2xi32, #tpu.memory_space<smem>>) -> (i32, i32, i32) {
    %c0_i32 = arith.constant 0 : i32
    %c0_i32_0 = arith.constant 0 : i32
    %c0_i32_1 = arith.constant 0 : i32
    return %arg0, %c0_i32, %c0_i32_0 : i32, i32, i32
  }
  func.func @transform_22(%arg0: i32, %arg1: memref<2xi32, #tpu.memory_space<smem>>, %arg2: memref<2xi32, #tpu.memory_space<smem>>) -> (i32, i32, i32) {
    %c0_i32 = arith.constant 0 : i32
    %c0_i32_0 = arith.constant 0 : i32
    %c0_i32_1 = arith.constant 0 : i32
    return %arg0, %c0_i32, %c0_i32_0 : i32, i32, i32
  }
}

module attributes {stable_mosaic.version = 11 : i64} {
  func.func @_linear_kernel(%arg0: i32, %arg1: memref<8x32xf32, #tpu.memory_space<vmem>>, %arg2: memref<32x128xbf16, #tpu.memory_space<vmem>>, %arg3: memref<1x128xf32, #tpu.memory_space<vmem>>, %arg4: memref<8x128xf32, #tpu.memory_space<vmem>>) attributes {dimension_semantics = [#tpu.dimension_semantics<parallel>], iteration_bounds = array<i64: 2>, scalar_prefetch = 0 : i64, scratch_operands = 0 : i64, tpu.core_type = #tpu.core_type<tc>, window_params = [{transform_indices = @transform_0, window_bounds = array<i64: 8, 32>}, {pipeline_mode = #tpu.pipeline_mode<synchronous>, transform_indices = @transform_1, window_bounds = array<i64: 32, 128>}, {pipeline_mode = #tpu.pipeline_mode<synchronous>, transform_indices = @transform_2, window_bounds = array<i64: 1, 128>}, {transform_indices = @transform_3, window_bounds = array<i64: 8, 128>}]} {
    %c0 = arith.constant 0 : index
    %c0_0 = arith.constant 0 : index
    %0 = vector.load %arg1[%c0, %c0_0] : memref<8x32xf32, #tpu.memory_space<vmem>>, vector<8x32xf32>
    %1 = arith.truncf %0 : vector<8x32xf32> to vector<8x32xbf16>
    %c0_1 = arith.constant 0 : index
    %c0_2 = arith.constant 0 : index
    %2 = vector.load %arg2[%c0_1, %c0_2] : memref<32x128xbf16, #tpu.memory_space<vmem>>, vector<32x128xbf16>
    %cst = arith.constant dense<0.000000e+00> : vector<8x128xf32>
    %3 = tpu.matmul %1, %2, %cst {dimension_numbers = #tpu.dot_dimension_numbers<[1], [0], [0], [1], [0, 0, 1, 1], [], []>} : vector<8x32xbf16>, vector<32x128xbf16>, vector<8x128xf32> -> vector<8x128xf32>
    %c0_3 = arith.constant 0 : index
    %c0_4 = arith.constant 0 : index
    %4 = vector.load %arg3[%c0_3, %c0_4] : memref<1x128xf32, #tpu.memory_space<vmem>>, vector<1x128xf32>
    %5 = vector.broadcast %4 : vector<1x128xf32> to vector<8x128xf32>
    %6 = arith.addf %3, %5 : vector<8x128xf32>
    %c0_5 = arith.constant 0 : index
    %c0_6 = arith.constant 0 : index
    %7 = vector.load %arg4[%c0_5, %c0_6] : memref<8x128xf32, #tpu.memory_space<vmem>>, vector<8x128xf32>
    tpu.vector_store %arg4[%c0_5, %c0_6], %6 {strides = array<i32>} : memref<8x128xf32, #tpu.memory_space<vmem>>, vector<8x128xf32>,
    return
  }
  func.func @transform_0(%arg0: i32) -> (i32, i32) {
    %c0_i32 = arith.constant 0 : i32
    %c0_i32_0 = arith.constant 0 : i32
    return %arg0, %c0_i32 : i32, i32
  }
  func.func @transform_1(%arg0: i32) -> (i32, i32) {
    %c0_i32 = arith.constant 0 : i32
    %c0_i32_0 = arith.constant 0 : i32
    %c0_i32_1 = arith.constant 0 : i32
    return %c0_i32, %c0_i32_0 : i32, i32
  }
  func.func @transform_2(%arg0: i32) -> (i32, i32) {
    %c0_i32 = arith.constant 0 : i32
    %c0_i32_0 = arith.constant 0 : i32
    %c0_i32_1 = arith.constant 0 : i32
    return %c0_i32, %c0_i32_0 : i32, i32
  }
  func.func @transform_3(%arg0: i32) -> (i32, i32) {
    %c0_i32 = arith.constant 0 : i32
    %c0_i32_0 = arith.constant 0 : i32
    return %arg0, %c0_i32 : i32, i32
  }
}

</mosaic_0001>

<bundles_post_ra>
// kernel: transformer_fwd.9
= control target key start
LH: loop header
LB: loop body
LE: loop exit
PB: predicated region body
PF: predicated region fallthrough
CT: control target
= control target key end

     0   :  { %s426_s12 = smov 0   ;;  %s459_s0 = inlined_call_operand.vmem [shape: f32[112,9], index: 0, kind: input, shape index: {}]   ;;  %s460_s1 = inlined_call_operand.vmem [shape: bf16[9,32], index: 1, kind: input, shape index: {}]   ;;  %s461_s2 = inlined_call_operand.vmem [shape: f32[1,32], index: 2, kind: input, shape index: {}]   ;;  %s462_s3 = inlined_call_operand.vmem [shape: f32[112,32], index: 3, kind: output, shape index: {}]  }
   0x1 LB: > { %s355_s13 = sadd.s32 4294967295, %s403_s12   ;;  %p359_p0 = scmp.ge.s32.totalorder %s403_s12, 1  ;;  %s403_s12 = sphi %s426_s12, %s13_s12  }
   0x2   : > { %p138_p1 = scmp.lt.s32.totalorder %s403_s12, 3 }
   0x4   : > { %p139_p2 = pnand %p359_p0, %p138_p1 }
   0x5   : > { %v396_v0 = vld [vmem:[%s460_s1] sm:$0x1f] (!%p139_p2)   ;;  %vm213_vm0 = vcmask (!%p139_p2), 1043456   ;;  %vm214_vm1 = vcmask (!%p139_p2), 1044480   ;;  %s162_s16 = smul.u32 (!%p139_p2), 7, %s355_s13  ;;  %v405_v1 = vmov (!%p139_p2), 65535  }
   0x6   : > { %142 = sbr.rel (%p139_p2) target bundleno = 241 (0xf1), region = 32  ;;  %v215_v2 = vsel (!%p139_p2), %vm213_vm0, 4294967295, %v405_v1  ;;  %vm200_vm2 = vcmask (!%p139_p2), 72704   ;;  %v362_v16 = vld [vmem:[%s461_s2] ss:$0 sm:$0xff] (!%p139_p2)  ;;  %vm291_vm3 = vcmask (!%p139_p2), 261120  }
   0x7   : > { %v216_v3 = vsel (!%p139_p2), %vm214_vm1, %v215_v2, 0  ;;  %p163_p3 = scmp.lt.s32.totalorder (!%p139_p2), %s162_s16, 13 }
   0x8   : > { %v218_v4 = vand.u32 (!%p139_p2), %v396_v0, %v216_v3 }
   0xa   : > { %375 = vmatprep.subr.bf16.mxu0 (!%p139_p2), %v218_v4  ;;  %385 = vmatprep.subr.bf16.mxu1 (!%p139_p2), %v218_v4 }
   0xb   : > { %376 = vmatpush3.bf16.msra.mxu0 (!%p139_p2), %v218_v4  ;;  %386 = vmatpush3.bf16.msra.mxu1 (!%p139_p2), %v218_v4 }
   0xd   : > { %s464_s16 = smov (!%p163_p3, %s162_s16), 13 }
   0xe   : > { %s360_s17 = sshll.u32 %s464_s16, 3 }
   0xf   : > { %s166_s20 = scalar_lea.vmem %s459_s0, %s360_s17  ;;  %s172_s25 = scalar_lea.vmem %s462_s3, %s360_s17 }
  0x10   : > { %v175_v5 = vld [vmem:[%s166_s20] sm:$0xff]  ;;  %v176_v6 = vld [vmem:[%s166_s20 + $0x8] sm:$0xff]  ;;  %v177_v10 = vld [vmem:[%s166_s20 + $0x10] sm:$0xff] }
  0x11   : > { %v179_v7 = vld [vmem:[%s166_s20 + $0x20] sm:$0xff]  ;;  %v182_v8 = vpack.c.bf16 %v176_v6, %v175_v5  ;;  %v180_v9 = vld [vmem:[%s166_s20 + $0x28] sm:$0xff]  ;;  %v178_v11 = vld [vmem:[%s166_s20 + $0x18] sm:$0xff] }
  0x12   : > { %v184_v12 = vpack.c.bf16 %v180_v9, %v179_v7  ;;  %v183_v13 = vpack.c.bf16 %v178_v11, %v177_v10  ;;  %v181_v14 = vld [vmem:[%s166_s20 + $0x30] sm:$0xff] }
  0x13   : > { %377 = vmatprep.mubr.msk.bf16.mxu0 %vm200_vm2, %v182_v8  ;;  %v185_v15 = vpack.c.bf16 %v181_v14, %v181_v14 }
  0x14   : > { %381 = vmatprep.mubr.msk.bf16.mxu1 %vm200_vm2, %v184_v12  ;;  %378 = vmatmul.mubr.msk.bf16.vlgmr.msra.gmra.mrb[0].mxu0 %vm200_vm2, %v183_v13 }
  0x15   : > { %382 = vmatmul.mubr.msk.bf16.vlgmr.msra.gmra.mrb[0].mxu1 %vm200_vm2, %v185_v15 }
  0xe7   : > { %v379_v17 = vpop.f32.mrb[0].mxu0 }
  0xe8   : > { %v263_v18 = vadd.f32 %v379_v17, %v362_v16  ;;  %v383_v19 = vpop.f32.mrb[0].mxu1  ;;  %v254_v20 = vpop.f32.mrb[1].mxu0 }
  0xe9   : > { %v279_v21 = vadd.f32 %v383_v19, %v362_v16  ;;  %v255_v22 = vadd.f32 %v362_v16, %v254_v20  ;;  %v270_v23 = vpop.f32.mrb[1].mxu1  ;;  %v380_v24 = vpop.f32.mrb[2].mxu0 }
  0xea   : > { %v286_v25 = vmax.f32 %v263_v18, 0.0  ;;  %v271_v26 = vadd.f32 %v362_v16, %v270_v23  ;;  %v266_v27 = vadd.f32 %v380_v24, %v362_v16  ;;  %v384_v28 = vpop.f32.mrb[2].mxu1  ;;  %v257_v29 = vpop.f32.mrb[3].mxu0 }
  0xeb   : > { %v290_v30 = vmax.f32 %v279_v21, 0.0  ;;  %v284_v31 = vmax.f32 %v255_v22, 0.0  ;;  %v258_v32 = vadd.f32 %v362_v16, %v257_v29  ;;  %v273_v33 = vpop.f32.mrb[3].mxu1 }
  0xec   : > { %294 = vst.msk [vmem:[%s172_s25 + $0x10] sm:$0xff] %vm291_vm3, %v286_v25  ;;  %v288_v34 = vmax.f32 %v271_v26, 0.0  ;;  %v287_v35 = vmax.f32 %v266_v27, 0.0  ;;  %v274_v36 = vadd.f32 %v362_v16, %v273_v33 }
  0xed   : > { %298 = vst.msk [vmem:[%s172_s25 + $0x30] sm:$0xff] %vm291_vm3, %v290_v30  ;;  %292 = vst.msk [vmem:[%s172_s25] sm:$0xff] %vm291_vm3, %v284_v31  ;;  %v285_v37 = vmax.f32 %v258_v32, 0.0 }
  0xee   : > { %296 = vst.msk [vmem:[%s172_s25 + $0x20] sm:$0xff] %vm291_vm3, %v288_v34  ;;  %295 = vst.msk [vmem:[%s172_s25 + $0x18] sm:$0xff] %vm291_vm3, %v287_v35  ;;  %v289_v38 = vmax.f32 %v274_v36, 0.0 }
  0xef   : > { %293 = vst.msk [vmem:[%s172_s25 + $0x8] sm:$0xff] %vm291_vm3, %v285_v37 }
  0xf0   : > { %297 = vst.msk [vmem:[%s172_s25 + $0x28] sm:$0xff] %vm291_vm3, %v289_v38 }
  0xf1 PF: > { %s13_s12 = sadd.s32 1, %s403_s12  }
  0xf2   : > { %p10_p4 = scmp.ge.s32.totalorder %s13_s12, 4  }
  0xf4   :  { %12 = sbr.rel (!%p10_p4) target bundleno = 1 (0x1), region = 62 }

// kernel: transformer_fwd.10
= control target key start
LH: loop header
LB: loop body
LE: loop exit
PB: predicated region body
PF: predicated region fallthrough
CT: control target
= control target key end

     0   :  { %s643_s12 = smov 0   ;;  %s741_s0 = inlined_call_operand.vmem [shape: f32[64,288], index: 0, kind: input, shape index: {}]   ;;  %s742_s1 = inlined_call_operand.vmem [shape: bf16[288,32], index: 1, kind: input, shape index: {}]   ;;  %s743_s2 = inlined_call_operand.vmem [shape: f32[1,32], index: 2, kind: input, shape index: {}]   ;;  %s744_s3 = inlined_call_operand.vmem [shape: f32[64,32], index: 3, kind: output, shape index: {}]  }
   0x1 LB: > { %s516_s13 = sadd.s32 4294967295, %s621_s12   ;;  %p520_p0 = scmp.ge.s32.totalorder %s621_s12, 1  ;;  %s621_s12 = sphi %s643_s12, %s13_s12  }
   0x2   : > { %p139_p1 = scmp.lt.s32.totalorder %s621_s12, 3 }
   0x4   : > { %p140_p2 = pnand %p520_p0, %p139_p1 }
   0x5   : > { %v597_v0 = vld [vmem:[%s742_s1 + $0x40] sm:$0xff] (!%p140_p2)   ;;  %s521_s16 = sshll.u32 (!%p140_p2), %s516_s13, 2  ;;  %v599_v2 = vld [vmem:[%s742_s1 + $0x48] sm:$0xff] (!%p140_p2)   ;;  %v601_v4 = vld [vmem:[%s742_s1 + $0x50] sm:$0xff] (!%p140_p2)   ;;  %vm347_vm0 = vcmask (!%p140_p2), 261120  }
   0x6   : > { %143 = sbr.rel (%p140_p2) target bundleno = 270 (0x10e), region = 32  ;;  %v598_v1 = vld [vmem:[%s742_s1] sm:$0xff] (!%p140_p2)   ;;  %548 = vmatprep.subr.bf16.mxu0 (!%p140_p2), %v597_v0  ;;  %p165_p3 = scmp.lt.s32.totalorder (!%p140_p2), %s521_s16, 7  ;;  %v600_v3 = vld [vmem:[%s742_s1 + $0x8] sm:$0xff] (!%p140_p2)   ;;  %v602_v5 = vld [vmem:[%s742_s1 + $0x10] sm:$0xff] (!%p140_p2)  }
   0x7   : > { %549 = vmatpush3.bf16.msra.mxu0 (!%p140_p2), %v598_v1  ;;  %v603_v6 = vld [vmem:[%s742_s1 + $0x58] sm:$0xff] (!%p140_p2)   ;;  %v605_v8 = vld [vmem:[%s742_s1 + $0x60] sm:$0xff] (!%p140_p2)   ;;  %v607_v11 = vld [vmem:[%s742_s1 + $0x68] sm:$0xff] (!%p140_p2)  }
   0x8   : > { %550 = vmatprep.subr.bf16.mxu0 (!%p140_p2), %v599_v2  ;;  %v604_v7 = vld [vmem:[%s742_s1 + $0x18] sm:$0xff] (!%p140_p2)   ;;  %v606_v9 = vld [vmem:[%s742_s1 + $0x20] sm:$0xff] (!%p140_p2)   ;;  %v608_v14 = vld [vmem:[%s742_s1 + $0x28] sm:$0xff] (!%p140_p2)  }
   0x9   : > { %v612_v10 = vld [vmem:[%s742_s1 + $0x80] sm:$0xff] (!%p140_p2)   ;;  %v614_v16 = vld [vmem:[%s742_s1 + $0x88] sm:$0xff] (!%p140_p2)   ;;  %v609_v19 = vld [vmem:[%s742_s1 + $0x70] sm:$0xff] (!%p140_p2)  }
   0xa   : > { %580 = vmatprep.subr.bf16.mxu1 (!%p140_p2), %v612_v10  ;;  %v610_v24 = vld [vmem:[%s742_s1 + $0x30] sm:$0xff] (!%p140_p2)   ;;  %v611_v25 = vld [vmem:[%s742_s1 + $0x78] sm:$0xff] (!%p140_p2)   ;;  %v525_v42 = vld [vmem:[%s743_s2] ss:$0 sm:$0xff] (!%p140_p2) }
   0xb   : > { %551 = vmatpush3.bf16.msra.mxu0 (!%p140_p2), %v600_v3  ;;  %581 = vmatpush3.bf16.msra.mxu1 (!%p140_p2), %v612_v10  ;;  %v613_v26 = vld [vmem:[%s742_s1 + $0x38] sm:$0xff] (!%p140_p2)  }
   0xc   : > { %552 = vmatprep.subr.bf16.mxu0 (!%p140_p2), %v601_v4  ;;  %582 = vmatprep.subr.bf16.mxu1 (!%p140_p2), %v614_v16 }
   0xd   : > { %s746_s16 = smov (!%p165_p3, %s521_s16), 7 }
   0xe   : > { %s588_s29 = smul.u32 24, %s746_s16  ;;  %s524_s5 = sshll.u32 %s746_s16, 3 }
   0xf   : > { %553 = vmatpush3.bf16.msra.mxu0 %v602_v5  ;;  %583 = vmatpush3.bf16.msra.mxu1 %v614_v16  ;;  %s175_s8 = scalar_lea.vmem %s744_s3, %s524_s5 }
  0x10   : > { %554 = vmatprep.subr.bf16.mxu0 %v603_v6  ;;  %s687_s11 = scalar_lea.vmem %s741_s0, %s588_s29 }
  0x11   : > { %v179_v12 = vld [vmem:[%s687_s11 + $0x8] sm:$0xff]  ;;  %v182_v13 = vld [vmem:[%s687_s11 + $0x20] sm:$0xff]  ;;  %v180_v17 = vld [vmem:[%s687_s11 + $0x10] sm:$0xff] }
  0x12   : > { %v191_v15 = vpack.c.bf16 %v182_v13, %v179_v12  ;;  %v183_v18 = vld [vmem:[%s687_s11 + $0x28] sm:$0xff]  ;;  %v186_v21 = vld [vmem:[%s687_s11 + $0x40] sm:$0xff]  ;;  %v189_v22 = vld [vmem:[%s687_s11 + $0x58] sm:$0xff] }
  0x13   : > { %555 = vmatpush3.bf16.msra.mxu0 %v604_v7  ;;  %v192_v20 = vpack.c.bf16 %v183_v18, %v180_v17  ;;  %v195_v23 = vpack.c.bf16 %v189_v22, %v186_v21  ;;  %v178_v27 = vld [vmem:[%s687_s11] sm:$0xff]  ;;  %v181_v28 = vld [vmem:[%s687_s11 + $0x18] sm:$0xff]  ;;  %v188_v30 = vld [vmem:[%s687_s11 + $0x50] sm:$0xff] }
  0x14   : > { %556 = vmatprep.subr.bf16.mxu0 %v605_v8  ;;  %386 = vmatprep.mubr.bf16.mxu0 %v191_v15  ;;  %v185_v29 = vld [vmem:[%s687_s11 + $0x38] sm:$0xff]  ;;  %v190_v31 = vpack.c.bf16 %v181_v28, %v178_v27  ;;  %v184_v33 = vld [vmem:[%s687_s11 + $0x30] sm:$0xff]  ;;  %v187_v34 = vld [vmem:[%s687_s11 + $0x48] sm:$0xff] }
  0x15   : > { %584 = vmatprep.mubr.msk.bf16.mxu1 %vm347_vm0, %v192_v20  ;;  %v194_v32 = vpack.c.bf16 %v188_v30, %v185_v29  ;;  %v193_v35 = vpack.c.bf16 %v187_v34, %v184_v33 }
  0x16   : > { %585 = vmatmul.mubr.msk.bf16.vlgmr.msra.gmra.mrb[0].mxu1 %vm347_vm0, %v195_v23 }
  0x17   : > { %557 = vmatpush3.bf16.msra.mxu0 %v606_v9 }
  0x18   : > { %558 = vmatprep.subr.bf16.mxu0 %v607_v11 }
  0x1b   : > { %559 = vmatpush3.bf16.msra.mxu0 %v608_v14 }
  0x1c   : > { %560 = vmatprep.subr.bf16.mxu0 %v609_v19 }
  0x1f   : > { %561 = vmatpush3.bf16.msra.mxu0 %v610_v24 }
  0x20   : > { %562 = vmatprep.subr.bf16.mxu0 %v611_v25 }
  0x23   : > { %563 = vmatpush3.bf16.msra.mxu0 %v613_v26 }
  0x26   : > { %387 = vmatmul.mubr.bf16.vlgmr.msra.gmra.mrb[0].mxu0 %v190_v31 }
  0x27   : > { %394 = vmatprep.mubr.bf16.mxu0 %v194_v32 }
  0x2e   : > { %395 = vmatmul.mubr.bf16.gmra.mrb[4].mxu0 %v193_v35 }
  0xe9   : > { %v586_v36 = vpop.f32.mrb[0].mxu1 }
  0xea   : > { %v437_v37 = vpop.f32.mrb[1].mxu1 }
  0xeb   : > { %v587_v38 = vpop.f32.mrb[2].mxu1 }
  0xec   : > { %v440_v39 = vpop.f32.mrb[3].mxu1 }
  0xf9   : > { %v564_v40 = vpop.f32.mrb[0].mxu0 }
  0xfa   : > { %v565_v41 = vpop.f32.mrb[1].mxu0 }
  0xfb   : > { %v566_v43 = vadd.f32 %v565_v41, %v564_v40  ;;  %v567_v44 = vpop.f32.mrb[2].mxu0 }
  0xfc   : > { %v568_v45 = vpop.f32.mrb[3].mxu0 }
  0xfd   : > { %v569_v46 = vadd.f32 %v568_v45, %v567_v44  ;;  %v389_v47 = vadd.f32 %v566_v43, %v525_v42 }
  0xff   : > { %v438_v48 = vadd.f32 %v437_v37, %v389_v47  ;;  %v392_v49 = vadd.f32 %v569_v46, %v525_v42 }
 0x101   : > { %v452_v50 = vmax.f32 %v438_v48, 0.0  ;;  %v441_v51 = vadd.f32 %v440_v39, %v392_v49  ;;  %v570_v52 = vpop.f32.mrb[4].mxu0 }
 0x102   : > { %v571_v53 = vpop.f32.mrb[5].mxu0 }
 0x103   : > { %456 = vst.msk [vmem:[%s175_s8] sm:$0xff] %vm347_vm0, %v452_v50  ;;  %v453_v54 = vmax.f32 %v441_v51, 0.0  ;;  %v572_v55 = vadd.f32 %v571_v53, %v570_v52  ;;  %v573_v56 = vpop.f32.mrb[6].mxu0 }
 0x104   : > { %v574_v57 = vpop.f32.mrb[7].mxu0 }
 0x105   : > { %457 = vst.msk [vmem:[%s175_s8 + $0x8] sm:$0xff] %vm347_vm0, %v453_v54  ;;  %v397_v58 = vadd.f32 %v572_v55, %v525_v42  ;;  %v575_v59 = vadd.f32 %v574_v57, %v573_v56 }
 0x107   : > { %v446_v60 = vadd.f32 %v586_v36, %v397_v58  ;;  %v400_v61 = vadd.f32 %v575_v59, %v525_v42 }
 0x109   : > { %v454_v62 = vmax.f32 %v446_v60, 0.0  ;;  %v449_v63 = vadd.f32 %v587_v38, %v400_v61 }
 0x10b   : > { %458 = vst.msk [vmem:[%s175_s8 + $0x10] sm:$0xff] %vm347_vm0, %v454_v62  ;;  %v455_v0 = vmax.f32 %v449_v63, 0.0 }
 0x10d   : > { %459 = vst.msk [vmem:[%s175_s8 + $0x18] sm:$0xff] %vm347_vm0, %v455_v0 }
 0x10e PF: > { %s13_s12 = sadd.s32 1, %s621_s12  }
 0x10f   : > { %p10_p4 = scmp.ge.s32.totalorder %s13_s12, 4  }
 0x111   :  { %12 = sbr.rel (!%p10_p4) target bundleno = 1 (0x1), region = 62 }

// kernel: transformer_fwd.11
= control target key start
LH: loop header
LB: loop body
LE: loop exit
PB: predicated region body
PF: predicated region fallthrough
CT: control target
= control target key end

     0   :  { %s430_s12 = smov 0   ;;  %s486_s0 = inlined_call_operand.vmem [shape: f32[16,160], index: 0, kind: input, shape index: {}]   ;;  %s487_s1 = inlined_call_operand.vmem [shape: bf16[160,32], index: 1, kind: input, shape index: {}]   ;;  %s488_s2 = inlined_call_operand.vmem [shape: f32[1,32], index: 2, kind: input, shape index: {}]   ;;  %s489_s3 = inlined_call_operand.vmem [shape: f32[16,32], index: 3, kind: output, shape index: {}]  }
   0x1 LB: > { %s359_s13 = sadd.s32 4294967295, %s407_s12   ;;  %p363_p0 = scmp.ge.s32.totalorder %s407_s12, 1  ;;  %s407_s12 = sphi %s430_s12, %s13_s12  }
   0x2   : > { %p137_p1 = scmp.lt.s32.totalorder %s407_s12, 3 }
   0x4   : > { %p138_p2 = pnand %p363_p0, %p137_p1 }
   0x5   : > { %v391_v0 = vld [vmem:[%s487_s1] sm:$0xff] (!%p138_p2)   ;;  %v409_v1 = vmov (!%p138_p2), 0   ;;  %p160_p3 = scmp.lt.s32.totalorder (!%p138_p2), %s359_s13, 1  ;;  %v392_v2 = vld [vmem:[%s487_s1 + $0x8] sm:$0xff] (!%p138_p2)   ;;  %v393_v3 = vld [vmem:[%s487_s1 + $0x10] sm:$0xff] (!%p138_p2)   ;;  %vm261_vm0 = vcmask (!%p138_p2), 261120  }
   0x6   : > { %141 = sbr.rel (%p138_p2) target bundleno = 261 (0x105), region = 32  ;;  %265 = vmatprep.subr.bf16.mxu0 (!%p138_p2), %v409_v1  ;;  %v394_v4 = vld [vmem:[%s487_s1 + $0x18] sm:$0xff] (!%p138_p2)   ;;  %v395_v7 = vld [vmem:[%s487_s1 + $0x20] sm:$0xff] (!%p138_p2)   ;;  %v396_v8 = vld [vmem:[%s487_s1 + $0x28] sm:$0xff] (!%p138_p2)  }
   0x7   : > { %266 = vmatpush1.bf16.msra.mxu0 (!%p138_p2), %v391_v0  ;;  %v397_v9 = vld [vmem:[%s487_s1 + $0x30] sm:$0xff] (!%p138_p2)   ;;  %v398_v10 = vld [vmem:[%s487_s1 + $0x38] sm:$0xff] (!%p138_p2)   ;;  %v399_v11 = vld [vmem:[%s487_s1 + $0x40] sm:$0xff] (!%p138_p2)  }
   0x8   : > { %267 = vmatprep.subr.bf16.mxu0 (!%p138_p2), %v409_v1  ;;  %v400_v12 = vld [vmem:[%s487_s1 + $0x48] sm:$0xff] (!%p138_p2)   ;;  %v367_v15 = vld [vmem:[%s488_s2] ss:$0 sm:$0xff] (!%p138_p2) }
   0xb   : > { %268 = vmatpush1.bf16.msra.mxu0 (!%p138_p2), %v392_v2 }
   0xc   : > { %269 = vmatprep.subr.bf16.mxu0 (!%p138_p2), %v409_v1 }
   0xd   : > { %s491_s13 = smov (!%p160_p3, %s359_s13), 1 }
   0xe   : > { %s381_s18 = sshll.u32 %s491_s13, 4  ;;  %s366_s11 = sshll.u32 %s491_s13, 3 }
   0xf   : > { %s164_s23 = scalar_lea.vmem %s486_s0, %s381_s18  ;;  %270 = vmatpush1.bf16.msra.mxu0 %v393_v3  ;;  %s168_s18 = scalar_lea.vmem %s489_s3, %s366_s11 }
  0x10   : > { %v171_v5 = vld [vmem:[%s164_s23 + $0x8] sm:$0xff]  ;;  %271 = vmatprep.subr.bf16.mxu0 %v409_v1  ;;  %v170_v13 = vld [vmem:[%s164_s23] sm:$0xff] }
  0x11   : > { %v173_v6 = vpack.c.bf16 %v171_v5, %v171_v5  ;;  %v172_v14 = vpack.c.bf16 %v170_v13, %v170_v13 }
  0x13   : > { %378 = vmatprep.mubr.msk.bf16.mxu0 %vm261_vm0, %v173_v6  ;;  %272 = vmatpush1.bf16.msra.mxu0 %v394_v4 }
  0x14   : > { %273 = vmatprep.subr.bf16.mxu0 %v409_v1 }
  0x17   : > { %274 = vmatpush1.bf16.msra.mxu0 %v395_v7 }
  0x18   : > { %275 = vmatprep.subr.bf16.mxu0 %v409_v1 }
  0x1b   : > { %276 = vmatpush1.bf16.msra.mxu0 %v396_v8 }
  0x1c   : > { %277 = vmatprep.subr.bf16.mxu0 %v409_v1 }
  0x1f   : > { %278 = vmatpush1.bf16.msra.mxu0 %v397_v9 }
  0x20   : > { %279 = vmatprep.subr.bf16.mxu0 %v409_v1 }
  0x23   : > { %280 = vmatpush1.bf16.msra.mxu0 %v398_v10 }
  0x24   : > { %281 = vmatprep.subr.bf16.mxu0 %v409_v1 }
  0x27   : > { %282 = vmatpush1.bf16.msra.mxu0 %v399_v11 }
  0x28   : > { %283 = vmatprep.subr.bf16.mxu0 %v409_v1 }
  0x2b   : > { %284 = vmatpush1.bf16.msra.mxu0 %v400_v12 }
  0x2e   : > { %298 = vmatmul.mubr.bf16.vlgmr.msra.gmra.mrb[0].mxu0 %v172_v14 }
 0x101   : > { %v299_v16 = vpop.f32.mrb[0].mxu0 }
 0x102   : > { %v300_v17 = vadd.f32 %v367_v15, %v299_v16  ;;  %v301_v18 = vpop.f32.mrb[1].mxu0 }
 0x103   : > { %v302_v19 = vpop.f32.mrb[2].mxu0 }
 0x104   : > { %305 = vst.msk [vmem:[%s168_s18] sm:$0xff] %vm261_vm0, %v300_v17  ;;  %v303_v20 = vpop.f32.mrb[3].mxu0 }
 0x105 PF: > { %s13_s12 = sadd.s32 1, %s407_s12  }
 0x106   : > { %p10_p4 = scmp.ge.s32.totalorder %s13_s12, 4  }
 0x108   :  { %12 = sbr.rel (!%p10_p4) target bundleno = 1 (0x1), region = 62 }

// kernel: transformer_fwd.14
= control target key start
LH: loop header
LB: loop body
LE: loop exit
PB: predicated region body
PF: predicated region fallthrough
CT: control target
= control target key end

     0   :  { %s548_s21 = smov 0   ;;  %s592_s0 = inlined_call_operand.vmem [shape: f32[16,32], index: 0, kind: input, shape index: {}]   ;;  %s593_s1 = inlined_call_operand.vmem [shape: f32[1,32], index: 1, kind: input, shape index: {}]   ;;  %s594_s2 = inlined_call_operand.vmem [shape: f32[1,32], index: 2, kind: input, shape index: {}]   ;;  %s595_s3 = inlined_call_operand.vmem [shape: bf16[32,128], index: 3, kind: input, shape index: {}]   ;;  %s596_s4 = inlined_call_operand.vmem [shape: f32[1,128], index: 4, kind: input, shape index: {}]   ;;  %s597_s5 = inlined_call_operand.vmem [shape: f32[16,32], index: 5, kind: output, shape index: {0}]   ;;  %s598_s6 = inlined_call_operand.vmem [shape: f32[16,128], index: 6, kind: output, shape index: {1}]  }
   0x1 LB: > { %s458_s22 = sadd.s32 4294967295, %s509_s21   ;;  %p462_p0 = scmp.ge.s32.totalorder %s509_s21, 1  ;;  %s509_s21 = sphi %s548_s21, %s17_s21  }
   0x2   : > { %p214_p1 = scmp.lt.s32.totalorder %s509_s21, 3 }
   0x4   : > { %p215_p2 = pnand %p462_p0, %p214_p1 }
   0x5   : > { %p246_p3 = scmp.lt.s32.totalorder (!%p215_p2), %s458_s22, 1  ;;  %vm262_vm0 = vcmask (!%p215_p2), 261120   ;;  %v495_v7 = vld [vmem:[%s595_s3] sm:$0xff] (!%p215_p2)   ;;  %v511_v8 = vmov (!%p215_p2), 0.0   ;;  %v496_v9 = vld [vmem:[%s595_s3 + $0x8] sm:$0xff] (!%p215_p2)   ;;  %vm512_vm1 = vmmov (!%p215_p2), 0   ;;  %v359_v20 = vlaneseq (!%p215_p2) }
   0x6   : > { %218 = sbr.rel (%p215_p2) target bundleno = 862 (0x35e), region = 40  ;;  %477 = vmatprep.subr.bf16.mxu0 (!%p215_p2), %v511_v8  ;;  %481 = vmatprep.mubr.msk.bf16.mxu0 (!%p215_p2), %vm512_vm1, %v511_v8  ;;  %v466_v14 = vld [vmem:[%s593_s1] ss:$0 sm:$0xff] (!%p215_p2) }
   0x7   : > { %478 = vmatpush3.bf16.msra.mxu0 (!%p215_p2), %v495_v7  ;;  %v467_v16 = vld [vmem:[%s594_s2] ss:$0 sm:$0xff] (!%p215_p2)  ;;  %v360_v21 = vand.u32 (!%p215_p2), 127, %v359_v20 }
   0x8   : > { %479 = vmatprep.subr.bf16.mxu0 (!%p215_p2), %v511_v8  ;;  %v468_v22 = vld [vmem:[%s596_s4] ss:$0 sm:$0xff] (!%p215_p2) }
   0x9   : > { %vm361_vm2 = vcmp.lt.s32.totalorder (!%p215_p2), %v360_v21, 40 }
   0xb   : > { %480 = vmatpush3.bf16.msra.mxu0 (!%p215_p2), %v496_v9 }
   0xd   : > { %s600_s22 = smov (!%p246_p3, %s458_s22), 1 }
   0xe   : > { %s556_s23 = sshll.u32 %s600_s22, 3 }
   0xf   : > { %s249_s26 = scalar_lea.vmem %s592_s0, %s556_s23  ;;  %s253_s13 = scalar_lea.vmem %s597_s5, %s556_s23 }
  0x10   : > { %v259_v0 = vld [vmem:[%s249_s26] sm:$0xff]  ;;  %s257_s18 = scalar_lea.vmem %s598_s6, %s556_s23 }
  0x11   : > { %v263_v1 = vsel %vm262_vm0, %v259_v0, 0.0 }
  0x12   : > { %264 = vadd.xlane.f32.xlu0 %v263_v1 }
  0x9f   : > { %v265_v2 = vpop.xlane.xlu0 %264 }
  0xa0   : > { %v267_v3 = vmul.f32 0.03125, %v265_v2 }
  0xa2   : > { %v268_v4 = vsub.f32 %v259_v0, %v267_v3 }
  0xa4   : > { %v269_v5 = vmul.f32 %v268_v4, %v268_v4 }
  0xa6   : > { %v270_v6 = vsel %vm262_vm0, %v269_v5, 0.0 }
  0xa7   : > { %271 = vadd.xlane.f32.xlu0 %v270_v6 }
 0x134   : > { %v272_v10 = vpop.xlane.xlu0 %271 }
 0x135   : > { %v273_v11 = vmul.f32 0.03125, %v272_v10 }
 0x137   : > { %v274_v12 = vadd.f32 1e-05, %v273_v11 }
 0x139   : > { %497 = vrsqrt.f32 %v274_v12 }
 0x143   : > { %v498_v13 = vpop.eup %497 }
 0x144   : > { %v276_v15 = vmul.f32 %v498_v13, %v268_v4 }
 0x146   : > { %v283_v17 = vmul.f32 %v466_v14, %v276_v15 }
 0x148   : > { %v290_v18 = vadd.f32 %v467_v16, %v283_v17 }
 0x14a   : > { %291 = vst.msk [vmem:[%s253_s13] sm:$0xff] %vm262_vm0, %v290_v18  ;;  %v292_v19 = vpack.c.bf16 %v290_v18, %v290_v18 }
 0x14c   : > { %482 = vmatmul.mubr.msk.bf16.vlgmr.msra.gmra.mrb[0].mxu0 %vm262_vm0, %v292_v19 }
 0x21f   : > { %v353_v23 = vpop.f32.mrb[0].mxu0 }
 0x220   : > { %v354_v24 = vadd.f32 %v468_v22, %v353_v23  ;;  %v483_v25 = vpop.f32.mrb[1].mxu0 }
 0x221   : > { %v356_v26 = vpop.f32.mrb[2].mxu0 }
 0x222   : > { %v484_v27 = vpop.f32.mrb[3].mxu0  ;;  %v362_v28 = vsel %vm361_vm2, %v354_v24, -1e+30 }
 0x223   : > { %363 = vmax.xlane.f32.xlu1 %v362_v28 }
 0x2b0   : > { %v364_v29 = vpop.xlane.xlu1 %363 }
 0x2b1   : > { %v365_v30 = vsub.f32 %v362_v28, %v364_v29 }
 0x2b3   : > { %v366_v31 = vmul.f32 1.442695, %v365_v30 }
 0x2b5   : > { %499 = vpow2.f32 %v366_v31 }
 0x2bf   : > { %v500_v32 = vpop.eup %499 }
 0x2c0   : > { %368 = vadd.xlane.f32.xlu1 %v500_v32 }
 0x34d   : > { %v369_v33 = vpop.xlane.xlu1 %368 }
 0x34e   : > { %501 = vlog2.f32 %v369_v33 }
 0x358   : > { %v502_v34 = vpop.eup %501 }
 0x359   : > { %v371_v35 = vmul.f32 0.6931472, %v502_v34 }
 0x35b   : > { %v372_v36 = vsub.f32 %v365_v30, %v371_v35 }
 0x35d   : > { %373 = vst [vmem:[%s257_s18] sm:$0xff] %v372_v36 }
 0x35e PF: > { %s17_s21 = sadd.s32 1, %s509_s21  }
 0x35f   : > { %p14_p4 = scmp.ge.s32.totalorder %s17_s21, 4  }
 0x361   :  { %16 = sbr.rel (!%p14_p4) target bundleno = 1 (0x1), region = 82 }

// kernel: transformer_fwd.12
= control target key start
LH: loop header
LB: loop body
LE: loop exit
PB: predicated region body
PF: predicated region fallthrough
CT: control target
= control target key end

     0   :  { %s1678_s0 = inlined_call_operand.vmem [shape: s32[2], index: 0, kind: input, shape index: {}]   ;;  %s1679_s1 = inlined_call_operand.vmem [shape: f32[2,5,32], index: 1, kind: input, shape index: {}]   ;;  %s1680_s2 = inlined_call_operand.vmem [shape: f32[1,32], index: 2, kind: input, shape index: {}]   ;;  %s1681_s3 = inlined_call_operand.vmem [shape: f32[1,32], index: 3, kind: input, shape index: {}]   ;;  %s1682_s4 = inlined_call_operand.vmem [shape: bf16[32,96], index: 4, kind: input, shape index: {}]   ;;  %s1683_s5 = inlined_call_operand.vmem [shape: f32[1,96], index: 5, kind: input, shape index: {}]   ;;  %s1684_s6 = inlined_call_operand.vmem [shape: bf16[32,32], index: 6, kind: input, shape index: {}]   ;;  %s1685_s7 = inlined_call_operand.vmem [shape: f32[1,32], index: 7, kind: input, shape index: {}]   ;;  %s1686_s8 = inlined_call_operand.vmem [shape: f32[1,32], index: 8, kind: input, shape index: {}]   ;;  %s1687_s9 = inlined_call_operand.vmem [shape: f32[1,32], index: 9, kind: input, shape index: {}]   ;;  %s1688_s10 = inlined_call_operand.vmem [shape: bf16[32,64], index: 10, kind: input, shape index: {}]   ;;  %s1689_s11 = inlined_call_operand.vmem [shape: f32[1,64], index: 11, kind: input, shape index: {}]   ;;  %s1690_s12 = inlined_call_operand.vmem [shape: bf16[64,32], index: 12, kind: input, shape index: {}]   ;;  %s1691_s13 = inlined_call_operand.vmem [shape: f32[1,32], index: 13, kind: input, shape index: {}]   ;;  %s1692_s14 = inlined_call_operand.vmem [shape: f32[1,32], index: 14, kind: input, shape index: {}]   ;;  %s1693_s15 = inlined_call_operand.vmem [shape: f32[1,32], index: 15, kind: input, shape index: {}]   ;;  %s1694_s16 = inlined_call_operand.vmem [shape: f32[2,5,32], index: 16, kind: output, shape index: {}]  }
   0x1   :  { %1695 = sst [smem:[#allocation5_spill]] %s1678_s0 }
   0x2   :  { %1696 = sst [smem:[#allocation6_spill]] %s1687_s9  ;;  %s1697_s23 = sld [smem:[#allocation5_spill]] }
   0x8   :  { %s21_s9 = sshll.u32 %s1697_s23, 4  ;;  %s22_s9 = int_to_ptr.vmem [resolvable:$true] %s21_s9 }
   0x9   :  { %s1409_s24 = scalar_lea.vmem %s22_s9, 16  ;;  %p1414_p1 = scmp.lt.s32.totalorder %s22_s9, %s22_s9 }
   0xa   :  { %p1410_p0 = scmp.ne.s32.totalorder %s22_s9, %s1409_s24  ;;  %p1415_p2 = scmp.lt.s32.totalorder %s1409_s24, %s1409_s24 }
   0xc   :  { %p1416_p3 = por %p1415_p2, %p1414_p1 }
   0xe   :  { %p1417_p4 = pnand %p1416_p3, %p1410_p0 }
  0x10   :  { %1420 = shalt.err (!%p1417_p4)  }
  0x11   :  { %s1431_s25 = smov [#allocation3]  }
  0x12   :  { %24 = dma.vmem_to_smem %s22_s9, 16, %s1431_s25, [#allocation2] }
  0x13   :  { %1425 = dma.done.wait [#allocation2], 16 }
  0x14   :  { %1426 = vsyncadd [#allocation2], 4294967280 }
  0x15   :  { %26 = sfence }
  0x16   :  { %s1528_s26 = smov 0  }
  0x17 LB: > { %s1534_s27 = sadd.s32 4294967295, %s1429_s26   ;;  %p1243_p5 = scmp.ge.s32.totalorder %s1429_s26, 1  ;;  %s1429_s26 = sphi %s1528_s26, %s32_s26  }
  0x18   : > { %p443_p6 = scmp.lt.s32.totalorder %s1429_s26, 3 }
  0x1a   : > { %p444_p7 = pnand %p1243_p5, %p443_p6 }
  0x1b   : > { %p489_p8 = scmp.lt.s32.totalorder (!%p444_p7), %s1534_s27, 1  ;;  %vm502_vm0 = vcmask (!%p444_p7), 258048   ;;  %v1381_v7 = vld [vmem:[%s1682_s4] sm:$0xff] (!%p444_p7)   ;;  %v1432_v8 = vmov (!%p444_p7), 0.0   ;;  %vm1433_vm1 = vmmov (!%p444_p7), 0   ;;  %v1382_v9 = vld [vmem:[%s1682_s4 + $0x8] sm:$0xff] (!%p444_p7)   ;;  %v604_v32 = vlaneseq (!%p444_p7) }
  0x1c   : > { %447 = sbr.rel (%p444_p7) target bundleno = 2776 (0xad8), region = 80  ;;  %1300 = vmatprep.subr.bf16.mxu1 (!%p444_p7), %v1432_v8  ;;  %1304 = vmatprep.mubr.msk.bf16.mxu1 (!%p444_p7), %vm1433_vm1, %v1432_v8  ;;  %v1246_v14 = vld [vmem:[%s1680_s2] ss:$0 sm:$0xff] (!%p444_p7)  ;;  %vm560_vm2 = vcmask (!%p444_p7), 261120   ;;  %s1434_s30 = smov (!%p444_p7), 112   ;;  %vm612_vm3 = vcmask (!%p444_p7), 130048  }
  0x1d   : > { %1301 = vmatpush3.bf16.msra.mxu1 (!%p444_p7), %v1381_v7  ;;  %1314 = vmatprep.subr.bf16.mxu0 (!%p444_p7), %v1432_v8  ;;  %v1247_v16 = vld [vmem:[%s1681_s3] ss:$0 sm:$0xff] (!%p444_p7)  ;;  %s1436_s17 = smov (!%p444_p7), 80   ;;  %s498_s18 = sld [smem:[#allocation3 + %s1534_s27]] (!%p444_p7)  ;;  %v605_v33 = vand.u32 (!%p444_p7), 127, %v604_v32  ;;  %vm661_vm5 = vcmask (!%p444_p7), 36864  }
  0x1e   : > { %1302 = vmatprep.subr.bf16.mxu1 (!%p444_p7), %v1432_v8  ;;  %1316 = vmatprep.mubr.msk.bf16.mxu0 (!%p444_p7), %vm1433_vm1, %v1432_v8  ;;  %v1248_v20 = vld [vmem:[%s1683_s5] ss:$0 sm:$0xff] (!%p444_p7)  ;;  %s1438_s19 = smov (!%p444_p7), 64   ;;  %vm680_vm6 = vcmask (!%p444_p7), 1041408   ;;  %vm681_vm7 = vcmask (!%p444_p7), 1042432   ;;  %v1439_v61 = vmov (!%p444_p7), 65535  }
  0x1f   : > { %v682_v62 = vsel (!%p444_p7), %vm680_vm6, 4294967295, %v1439_v61  ;;  %vm676_vm8 = vcmask (!%p444_p7), 39936   ;;  %s1698_s21 = sld [smem:[#allocation6_spill]] (!%p444_p7)  ;;  %vm1104_vm10 = vcmask (!%p444_p7), 523264  }
  0x21   : > { %1303 = vmatpush3.bf16.msra.mxu1 (!%p444_p7), %v1382_v9 }
  0x22   : > { %1308 = vmatprep.subr.bf16.mxu1 (!%p444_p7), %v1432_v8 }
  0x23   : > { %s1540_s9 = scalar_select %p489_p8, %s1534_s27, 1  ;;  %v606_v34 = vstv %s498_s18 }
  0x24   : > { %vm607_vm4 = vcmp.ge.s32.totalorder %v605_v33, %v606_v34  ;;  %s1437_s27 = smov 48  }
  0x25   : > { %s1244_s28 = sshll.u32 %s1540_s9, 3 }
  0x26   : > { %s492_s0 = scalar_lea.vmem %s1679_s1, %s1244_s28 }
  0x27   : > { %v1548_v0 = vld [vmem:[%s492_s0] sm:$0x1f]  ;;  %s1435_s0 = smov 96  }
  0x28   : > { %v503_v1 = vsel %vm502_vm0, %v1548_v0, 0.0 }
  0x29   : > { %504 = vadd.xlane.f32.xlu0 %v503_v1  ;;  %v683_v1 = vsel %vm681_vm7, %v682_v62, 0 }
  0xb6   : > { %v505_v2 = vpop.xlane.xlu0 %504 }
  0xb7   : > { %v507_v3 = vmul.f32 0.03125, %v505_v2 }
  0xb9   : > { %v508_v4 = vsub.f32 %v1548_v0, %v507_v3 }
  0xbb   : > { %v509_v5 = vmul.f32 %v508_v4, %v508_v4 }
  0xbd   : > { %v510_v6 = vsel %vm502_vm0, %v509_v5, 0.0 }
  0xbe   : > { %511 = vadd.xlane.f32.xlu0 %v510_v6 }
 0x14b   : > { %v512_v10 = vpop.xlane.xlu0 %511 }
 0x14c   : > { %v513_v11 = vmul.f32 0.03125, %v512_v10 }
 0x14e   : > { %v514_v12 = vadd.f32 1e-05, %v513_v11 }
 0x150   : > { %1391 = vrsqrt.f32 %v514_v12  ;;  %v1383_v12 = vld [vmem:[%s1684_s6] sm:$0xff]  }
 0x15a   : > { %v1392_v13 = vpop.eup %1391 }
 0x15b   : > { %v516_v15 = vmul.f32 %v1392_v13, %v508_v4  ;;  %v1384_v13 = vld [vmem:[%s1684_s6 + $0x8] sm:$0xff]  }
 0x15d   : > { %v523_v17 = vmul.f32 %v1246_v14, %v516_v15 }
 0x15f   : > { %v530_v18 = vadd.f32 %v1247_v16, %v523_v17 }
 0x161   : > { %v541_v19 = vpack.c.bf16 %v530_v18, %v530_v18 }
 0x163   : > { %1305 = vmatmul.mubr.msk.bf16.vlgmr.msra.gmra.mrb[0].mxu1 %vm560_vm2, %v541_v19 }
 0x164   : > { %1310 = vmatprep.mubr.msk.bf16.mxu1 %vm1433_vm1, %v1432_v8 }
 0x236   : > { %v598_v21 = vpop.f32.mrb[0].mxu1 }
 0x237   : > { %v599_v22 = vadd.f32 %v1248_v20, %v598_v21  ;;  %v1306_v23 = vpop.f32.mrb[1].mxu1 }
 0x238   : > { %v601_v24 = vpop.f32.mrb[2].mxu1 }
 0x239   : > { %v608_v25 = vpack.c.bf16 %v599_v22, %v599_v22  ;;  %v1307_v26 = vpop.f32.mrb[3].mxu1 }
 0x23b   : > { %728 = vrot.lane.b32.xlu0 %v608_v25, %s1434_s30  ;;  %610 = vrot.lane.b32.xlu1 %v608_v25, %s1435_s0  ;;  %s496_s30 = scalar_lea.vmem %s1694_s16, %s1244_s28 }
 0x23f   : > { %730 = vrot.lane.b32.xlu1 %v608_v25, %s1436_s17 }
 0x2ad   : > { %v611_v27 = vpop.permute.xlu1 %610  ;;  %v729_v31 = vpop.permute.xlu0 %728 }
 0x2ae   : > { %v617_v28 = vsel %vm612_vm3, %v611_v27, 0 }
 0x2af   : > { %1309 = vmatpush3.bf16.xpose.msra.mxu1 %v617_v28  ;;  %v1260_v28 = vld [vmem:[%s1685_s7] ss:$0 sm:$0xff] }
 0x2b0   : > { %1320 = vmatprep.subr.bf16.mxu1 %v1432_v8 }
 0x2b1   : > { %v731_v29 = vpop.permute.xlu1 %730 }
 0x2b2   : > { %v736_v30 = vsel %vm612_vm3, %v731_v29, 0 }
 0x2b6   : > { %1311 = vmatmul.mubr.msk.bf16.vlgmr.msra.gmra.mrb[4].mxu1 %vm612_vm3, %v608_v25 }
 0x2b7   : > { %1321 = vmatpush3.bf16.xpose.msra.mxu1 %v736_v30  ;;  %1322 = vmatprep.mubr.msk.bf16.mxu1 %vm1433_vm1, %v1432_v8 }
 0x2b8   : > { %1332 = vmatprep.subr.bf16.mxu1 %v1432_v8 }
 0x2be   : > { %1323 = vmatmul.mubr.msk.bf16.vlgmr.msra.gmra.mrb[8].mxu1 %vm612_vm3, %v729_v31 }
 0x2bf   : > { %1334 = vmatprep.mubr.msk.bf16.mxu1 %vm1433_vm1, %v1432_v8  ;;  %1333 = vmatpush3.bf16.msra.mxu1 %v1384_v13 }
 0x2c0   : > { %1344 = vmatprep.subr.bf16.mxu1 %v1432_v8 }
 0x389   : > { %v653_v35 = vpop.f32.mrb[4].mxu1 }
 0x38a   : > { %v659_v36 = vmul.f32 0.25, %v653_v35  ;;  %v1312_v37 = vpop.f32.mrb[5].mxu1 }
 0x38b   : > { %v656_v38 = vpop.f32.mrb[6].mxu1 }
 0x38c   : > { %v1313_v39 = vpop.f32.mrb[7].mxu1  ;;  %v660_v40 = vsel %vm607_vm4, -1e+30, %v659_v36 }
 0x38d   : > { %v662_v41 = vsel %vm661_vm5, %v660_v40, -inf }
 0x38e   : > { %663 = vmax.xlane.f32.xlu1 %v662_v41 }
 0x391   : > { %v772_v42 = vpop.f32.mrb[8].mxu1 }
 0x392   : > { %v778_v43 = vmul.f32 0.25, %v772_v42  ;;  %v1324_v44 = vpop.f32.mrb[9].mxu1  ;;  %v1385_v42 = vld [vmem:[%s1688_s10] sm:$0xff]  }
 0x393   : > { %v775_v45 = vpop.f32.mrb[10].mxu1 }
 0x394   : > { %v1325_v46 = vpop.f32.mrb[11].mxu1  ;;  %v779_v47 = vsel %vm607_vm4, -1e+30, %v778_v43 }
 0x395   : > { %v780_v48 = vsel %vm661_vm5, %v779_v47, -inf }
 0x396   : > { %781 = vmax.xlane.f32.xlu0 %v780_v48 }
 0x3ac   : > { %792 = vrot.lane.b32.xlu0 %v608_v25, %s1437_s27 }
 0x41b   : > { %v664_v49 = vpop.xlane.xlu1 %663 }
 0x41c   : > { %v665_v50 = vsub.f32 %v660_v40, %v664_v49  ;;  %v1262_v49 = vld [vmem:[%s1698_s21] ss:$0 sm:$0xff] }
 0x41e   : > { %v666_v51 = vmul.f32 1.442695, %v665_v50 }
 0x420   : > { %1393 = vpow2.f32 %v666_v51 }
 0x423   : > { %v782_v52 = vpop.xlane.xlu0 %781 }
 0x424   : > { %v783_v53 = vsub.f32 %v779_v47, %v782_v52  ;;  %v1261_v47 = vld [vmem:[%s1686_s8] ss:$0 sm:$0xff] }
 0x426   : > { %v784_v54 = vmul.f32 1.442695, %v783_v53  ;;  %v1387_v53 = vld [vmem:[%s1690_s12] sm:$0xff]  }
 0x427   : > { %v793_v5 = vpop.permute.xlu0 %792 }
 0x428   : > { %1395 = vpow2.f32 %v784_v54  ;;  %v798_v7 = vand.u32 %v793_v5, %v683_v1  ;;  %v1388_v54 = vld [vmem:[%s1690_s12 + $0x8] sm:$0xff]  }
 0x42a   : > { %v1394_v55 = vpop.eup %1393 }
 0x42b   : > { %v668_v56 = vsel %vm661_vm5, %v1394_v55, 0.0 }
 0x42c   : > { %669 = vadd.xlane.f32.xlu1 %v668_v56  ;;  %v1390_v56 = vld [vmem:[%s1690_s12 + $0x18] sm:$0xff]  }
 0x432   : > { %v1396_v57 = vpop.eup %1395 }
 0x433   : > { %v786_v58 = vsel %vm661_vm5, %v1396_v57, 0.0 }
 0x434   : > { %787 = vadd.xlane.f32.xlu1 %v786_v58 }
 0x445   : > { %674 = vrot.lane.b32.xlu1 %v608_v25, %s1438_s19 }
 0x4b9   : > { %v670_v59 = vpop.xlane.xlu1 %669 }
 0x4ba   : > { %1397 = vrcp.f32 %v670_v59 }
 0x4c1   : > { %v788_v60 = vpop.xlane.xlu1 %787 }
 0x4c2   : > { %1399 = vrcp.f32 %v788_v60 }
 0x4c4   : > { %v1398_v63 = vpop.eup %1397 }
 0x4c5   : > { %v675_v2 = vpop.permute.xlu1 %674  ;;  %v672_v3 = vmul.f32 %v1398_v63, %v1394_v55  ;;  %v1389_v55 = vld [vmem:[%s1690_s12 + $0x10] sm:$0xff]  }
 0x4c6   : > { %v685_v4 = vand.u32 %v683_v1, %v675_v2 }
 0x4c7   : > { %v673_v6 = vpack.c.bf16 %v672_v3, %v672_v3 }
 0x4c8   : > { %1315 = vmatpush3.bf16.msra.mxu0 %v685_v4 }
 0x4c9   : > { %1326 = vmatprep.subr.bf16.mxu0 %v1432_v8 }
 0x4cb   : > { %1317 = vmatmul.mubr.msk.bf16.vlgmr.msra.gmra.mrb[0].mxu0 %vm676_vm8, %v673_v6 }
 0x4cc   : > { %v1400_v9 = vpop.eup %1399  ;;  %1327 = vmatpush3.bf16.msra.mxu0 %v798_v7  ;;  %1328 = vmatprep.mubr.msk.bf16.mxu0 %vm1433_vm1, %v1432_v8 }
 0x4cd   : > { %v790_v10 = vmul.f32 %v1400_v9, %v1396_v57  ;;  %1338 = vmatprep.subr.bf16.mxu0 %v1432_v8  ;;  %v1263_v57 = vld [vmem:[%s1689_s11] ss:$0 sm:$0xff] }
 0x4cf   : > { %v791_v11 = vpack.c.bf16 %v790_v10, %v790_v10 }
 0x4d3   : > { %1329 = vmatmul.mubr.msk.bf16.vlgmr.msra.gmra.mrb[4].mxu0 %vm676_vm8, %v791_v11 }
 0x4d4   : > { %1340 = vmatprep.mubr.msk.bf16.mxu0 %vm1433_vm1, %v1432_v8  ;;  %1339 = vmatpush3.bf16.msra.mxu0 %v1383_v12 }
 0x4d5   : > { %1352 = vmatprep.subr.bf16.mxu0 %v1432_v8 }
 0x59e   : > { %v721_v14 = vpop.f32.mrb[0].mxu0 }
 0x59f   : > { %v727_v15 = vpack.c.bf16 %v721_v14, %v721_v14  ;;  %v1318_v16 = vpop.f32.mrb[1].mxu0 }
 0x5a0   : > { %v724_v17 = vpop.f32.mrb[2].mxu0 }
 0x5a1   : > { %v1319_v18 = vpop.f32.mrb[3].mxu0  ;;  %1341 = vmatmul.mubr.msk.bf16.vlgmr.msra.gmra.mrb[8].mxu0 %vm612_vm3, %v727_v15 }
 0x5a2   : > { %1360 = vmatprep.mubr.msk.bf16.mxu0 %vm1433_vm1, %v1432_v8  ;;  %1353 = vmatpush3.bf16.msra.mxu0 %v1387_v53 }
 0x5a3   : > { %1354 = vmatprep.subr.bf16.mxu0 %v1432_v8 }
 0x5a6   : > { %v834_v19 = vpop.f32.mrb[4].mxu0  ;;  %1355 = vmatpush3.bf16.msra.mxu0 %v1388_v54 }
 0x5a7   : > { %v840_v20 = vpack.c.bf16 %v834_v19, %v834_v19  ;;  %v1330_v21 = vpop.f32.mrb[5].mxu0  ;;  %1356 = vmatprep.subr.bf16.mxu0 %v1432_v8 }
 0x5a8   : > { %v837_v22 = vpop.f32.mrb[6].mxu0 }
 0x5a9   : > { %v1331_v23 = vpop.f32.mrb[7].mxu0  ;;  %1335 = vmatmul.mubr.msk.bf16.vlgmr.msra.gmra.mrb[12].mxu1 %vm612_vm3, %v840_v20 }
 0x5aa   : > { %1348 = vmatprep.mubr.msk.bf16.mxu1 %vm1433_vm1, %v1432_v8  ;;  %1345 = vmatpush3.bf16.msra.mxu1 %v1385_v42 }
 0x5ab   : > { %1346 = vmatprep.subr.bf16.mxu1 %v1432_v8  ;;  %1357 = vmatpush3.bf16.msra.mxu0 %v1389_v55 }
 0x5ac   : > { %1358 = vmatprep.subr.bf16.mxu0 %v1432_v8 }
 0x5af   : > { %1359 = vmatpush3.bf16.msra.mxu0 %v1390_v56 }
 0x674   : > { %v933_v24 = vpop.f32.mrb[8].mxu0 }
 0x675   : > { %v1342_v25 = vpop.f32.mrb[9].mxu0 }
 0x676   : > { %v936_v26 = vpop.f32.mrb[10].mxu0 }
 0x677   : > { %v1343_v27 = vpop.f32.mrb[11].mxu0 }
 0x678   : > { %v1272_v27 = vld [vmem:[%s1691_s13] ss:$0 sm:$0xff] }
 0x67c   : > { %v884_v29 = vpop.f32.mrb[12].mxu1 }
 0x67d   : > { %v934_v30 = vadd.f32 %v933_v24, %v884_v29  ;;  %v1336_v31 = vpop.f32.mrb[13].mxu1 }
 0x67e   : > { %v887_v32 = vpop.f32.mrb[14].mxu1 }
 0x67f   : > { %v945_v33 = vadd.f32 %v1260_v28, %v934_v30  ;;  %v1337_v34 = vpop.f32.mrb[15].mxu1 }
 0x681   : > { %v1619_v35 = vadd.f32 %v945_v33, %v1548_v0  ;;  %v1386_v0 = vld [vmem:[%s1688_s10 + $0x8] sm:$0xff]  }
 0x682   : > { %1347 = vmatpush3.bf16.msra.mxu1 %v1386_v0  ;;  %v1273_v0 = vld [vmem:[%s1692_s14] ss:$0 sm:$0xff] }
 0x683   : > { %v949_v36 = vsel %vm502_vm0, %v1619_v35, 0.0 }
 0x684   : > { %950 = vadd.xlane.f32.xlu1 %v949_v36 }
 0x711   : > { %v951_v37 = vpop.xlane.xlu1 %950 }
 0x712   : > { %v952_v38 = vmul.f32 0.03125, %v951_v37 }
 0x714   : > { %v953_v39 = vsub.f32 %v1619_v35, %v952_v38 }
 0x716   : > { %v954_v40 = vmul.f32 %v953_v39, %v953_v39 }
 0x718   : > { %v955_v41 = vsel %vm502_vm0, %v954_v40, 0.0 }
 0x719   : > { %956 = vadd.xlane.f32.xlu0 %v955_v41 }
 0x7a6   : > { %v957_v43 = vpop.xlane.xlu0 %956 }
 0x7a7   : > { %v958_v44 = vmul.f32 0.03125, %v957_v43 }
 0x7a9   : > { %v959_v45 = vadd.f32 1e-05, %v958_v44  ;;  %v1274_v44 = vld [vmem:[%s1693_s15] ss:$0 sm:$0xff] }
 0x7ab   : > { %1401 = vrsqrt.f32 %v959_v45 }
 0x7b5   : > { %v1402_v46 = vpop.eup %1401 }
 0x7b6   : > { %v961_v48 = vmul.f32 %v1402_v46, %v953_v39 }
 0x7b8   : > { %v968_v50 = vmul.f32 %v1261_v47, %v961_v48 }
 0x7ba   : > { %v975_v51 = vadd.f32 %v1262_v49, %v968_v50 }
 0x7bc   : > { %v990_v52 = vpack.c.bf16 %v975_v51, %v975_v51 }
 0x7be   : > { %1349 = vmatmul.mubr.msk.bf16.vlgmr.msra.gmra.mrb[16].mxu1 %vm560_vm2, %v990_v52 }
 0x891   : > { %v1046_v58 = vpop.f32.mrb[16].mxu1 }
 0x892   : > { %v1047_v59 = vadd.f32 %v1263_v57, %v1046_v58  ;;  %v1350_v60 = vpop.f32.mrb[17].mxu1 }
 0x893   : > { %v1049_v61 = vpop.f32.mrb[18].mxu1 }
 0x894   : > { %v1052_v62 = vmul.f32 0.70710677, %v1047_v59  ;;  %v1351_v63 = vpop.f32.mrb[19].mxu1  ;;  %v1076_v22 = vmul.f32 0.5, %v1047_v59 }
 0x896   : > { %v1053_v1 = vand.u32 2147483647, %v1052_v62  ;;  %vm1073_vm9 = vcmp.lt.f32.partialorder %v1052_v62, 0.0 }
 0x898   : > { %v1054_v2 = vmul.f32 0.3275911, %v1053_v1  ;;  %v1067_v8 = vsub.f32 0.0, %v1053_v1 }
 0x89a   : > { %v1055_v3 = vadd.f32 1.0, %v1054_v2  ;;  %v1068_v5 = vmul.f32 %v1067_v8, %v1053_v1 }
 0x89c   : > { %1403 = vrcp.f32 %v1055_v3  ;;  %v1069_v9 = vmul.f32 1.442695, %v1068_v5 }
 0x89e   : > { %1405 = vpow2.f32 %v1069_v9 }
 0x8a6   : > { %v1404_v4 = vpop.eup %1403 }
 0x8a7   : > { %v1058_v6 = vmul.f32 1.0614054, %v1404_v4 }
 0x8a8   : > { %v1406_v17 = vpop.eup %1405 }
 0x8a9   : > { %v1059_v7 = vadd.f32 -1.4531521, %v1058_v6 }
 0x8ab   : > { %v1060_v10 = vmul.f32 %v1404_v4, %v1059_v7 }
 0x8ad   : > { %v1061_v11 = vadd.f32 1.4214138, %v1060_v10 }
 0x8af   : > { %v1062_v12 = vmul.f32 %v1404_v4, %v1061_v11 }
 0x8b1   : > { %v1063_v13 = vadd.f32 -0.28449672, %v1062_v12 }
 0x8b3   : > { %v1064_v14 = vmul.f32 %v1404_v4, %v1063_v13 }
 0x8b5   : > { %v1065_v15 = vadd.f32 0.2548296, %v1064_v14 }
 0x8b7   : > { %v1066_v16 = vmul.f32 %v1404_v4, %v1065_v15 }
 0x8b9   : > { %v1071_v18 = vmul.f32 %v1406_v17, %v1066_v16 }
 0x8bb   : > { %v1072_v19 = vsub.f32 1.0, %v1071_v18 }
 0x8bd   : > { %v1074_v20 = vsub.f32 0.0, %v1072_v19 }
 0x8bf   : > { %v1075_v21 = vsel %vm1073_vm9, %v1074_v20, %v1072_v19 }
 0x8c0   : > { %v1077_v23 = vadd.f32 1.0, %v1075_v21 }
 0x8c2   : > { %v1078_v24 = vmul.f32 %v1077_v23, %v1076_v22 }
 0x8c4   : > { %v1079_v25 = vpack.c.bf16 %v1078_v24, %v1078_v24 }
 0x8c6   : > { %1361 = vmatmul.mubr.msk.bf16.vlgmr.msra.gmra.mrb[12].mxu0 %vm1104_vm10, %v1079_v25 }
 0x999   : > { %v1142_v26 = vpop.f32.mrb[12].mxu0 }
 0x99a   : > { %v1148_v28 = vadd.f32 %v1142_v26, %v1619_v35  ;;  %v1362_v29 = vpop.f32.mrb[13].mxu0 }
 0x99b   : > { %v1145_v30 = vpop.f32.mrb[14].mxu0 }
 0x99c   : > { %v1363_v31 = vpop.f32.mrb[15].mxu0  ;;  %v1155_v32 = vadd.f32 %v1272_v27, %v1148_v28 }
 0x99e   : > { %v1158_v33 = vsel %vm502_vm0, %v1155_v32, 0.0 }
 0x99f   : > { %1159 = vadd.xlane.f32.xlu1 %v1158_v33 }
 0xa2c   : > { %v1160_v34 = vpop.xlane.xlu1 %1159 }
 0xa2d   : > { %v1161_v36 = vmul.f32 0.03125, %v1160_v34 }
 0xa2f   : > { %v1162_v37 = vsub.f32 %v1155_v32, %v1161_v36 }
 0xa31   : > { %v1163_v38 = vmul.f32 %v1162_v37, %v1162_v37 }
 0xa33   : > { %v1164_v39 = vsel %vm502_vm0, %v1163_v38, 0.0 }
 0xa34   : > { %1165 = vadd.xlane.f32.xlu1 %v1164_v39 }
 0xac1   : > { %v1166_v40 = vpop.xlane.xlu1 %1165 }
 0xac2   : > { %v1167_v41 = vmul.f32 0.03125, %v1166_v40 }
 0xac4   : > { %v1168_v42 = vadd.f32 1e-05, %v1167_v41 }
 0xac6   : > { %1407 = vrsqrt.f32 %v1168_v42 }
 0xad0   : > { %v1408_v35 = vpop.eup %1407 }
 0xad1   : > { %v1170_v43 = vmul.f32 %v1408_v35, %v1162_v37 }
 0xad3   : > { %v1177_v45 = vmul.f32 %v1273_v0, %v1170_v43 }
 0xad5   : > { %v1184_v46 = vadd.f32 %v1274_v44, %v1177_v45 }
 0xad7   : > { %1185 = vst.msk [vmem:[%s496_s30] sm:$0x1f] %vm502_vm0, %v1184_v46 }
 0xad8 PF: > { %s32_s26 = sadd.s32 1, %s1429_s26  }
 0xad9   : > { %p29_p9 = scmp.ge.s32.totalorder %s32_s26, 4  }
 0xadb   :  { %31 = sbr.rel (!%p29_p9) target bundleno = 23 (0x17), region = 110 }

// kernel: transformer_fwd.17
= control target key start
LH: loop header
LB: loop body
LE: loop exit
PB: predicated region body
PF: predicated region fallthrough
CT: control target
= control target key end

     0   :  { %s356_s12 = smov 0   ;;  %s382_s0 = inlined_call_operand.vmem [shape: f32[16,32], index: 0, kind: input, shape index: {}]   ;;  %s383_s1 = inlined_call_operand.vmem [shape: bf16[32,128], index: 1, kind: input, shape index: {}]   ;;  %s384_s2 = inlined_call_operand.vmem [shape: f32[1,128], index: 2, kind: input, shape index: {}]   ;;  %s385_s3 = inlined_call_operand.vmem [shape: f32[16,128], index: 3, kind: output, shape index: {}]  }
   0x1 LB: > { %s290_s13 = sadd.s32 4294967295, %s332_s12   ;;  %p294_p0 = scmp.ge.s32.totalorder %s332_s12, 1  ;;  %s332_s12 = sphi %s356_s12, %s13_s12  }
   0x2   : > { %p136_p1 = scmp.lt.s32.totalorder %s332_s12, 3 }
   0x4   : > { %p137_p2 = pnand %p294_p0, %p136_p1 }
   0x5   : > { %v324_v0 = vld [vmem:[%s383_s1] sm:$0xff] (!%p137_p2)   ;;  %v334_v1 = vmov (!%p137_p2), 0.0   ;;  %v325_v2 = vld [vmem:[%s383_s1 + $0x8] sm:$0xff] (!%p137_p2)   ;;  %vm335_vm0 = vmmov (!%p137_p2), 0   ;;  %p158_p3 = scmp.lt.s32.totalorder (!%p137_p2), %s290_s13, 1  ;;  %vm192_vm1 = vcmask (!%p137_p2), 261120  }
   0x6   : > { %140 = sbr.rel (%p137_p2) target bundleno = 234 (0xea), region = 32  ;;  %306 = vmatprep.subr.bf16.mxu0 (!%p137_p2), %v334_v1  ;;  %310 = vmatprep.mubr.msk.bf16.mxu0 (!%p137_p2), %vm335_vm0, %v334_v1  ;;  %v297_v5 = vld [vmem:[%s384_s2] ss:$0 sm:$0xff] (!%p137_p2) }
   0x7   : > { %307 = vmatpush3.bf16.msra.mxu0 (!%p137_p2), %v324_v0 }
   0x8   : > { %308 = vmatprep.subr.bf16.mxu0 (!%p137_p2), %v334_v1 }
   0xb   : > { %309 = vmatpush3.bf16.msra.mxu0 (!%p137_p2), %v325_v2 }
   0xd   : > { %s387_s13 = smov (!%p158_p3, %s290_s13), 1 }
   0xe   : > { %s295_s18 = sshll.u32 %s387_s13, 3 }
   0xf   : > { %s161_s21 = scalar_lea.vmem %s382_s0, %s295_s18  ;;  %s165_s26 = scalar_lea.vmem %s385_s3, %s295_s18 }
  0x10   : > { %v167_v3 = vld [vmem:[%s161_s21] sm:$0xff] }
  0x11   : > { %v168_v4 = vpack.c.bf16 %v167_v3, %v167_v3 }
  0x13   : > { %311 = vmatmul.mubr.msk.bf16.vlgmr.msra.gmra.mrb[0].mxu0 %vm192_vm1, %v168_v4 }
  0xe6   : > { %v230_v6 = vpop.f32.mrb[0].mxu0 }
  0xe7   : > { %v231_v7 = vadd.f32 %v297_v5, %v230_v6  ;;  %v312_v8 = vpop.f32.mrb[1].mxu0 }
  0xe8   : > { %v233_v9 = vpop.f32.mrb[2].mxu0 }
  0xe9   : > { %236 = vst [vmem:[%s165_s26] sm:$0xff] %v231_v7  ;;  %v313_v10 = vpop.f32.mrb[3].mxu0 }
  0xea PF: > { %s13_s12 = sadd.s32 1, %s332_s12  }
  0xeb   : > { %p10_p4 = scmp.ge.s32.totalorder %s13_s12, 4  }
  0xed   :  { %12 = sbr.rel (!%p10_p4) target bundleno = 1 (0x1), region = 62 }

// kernel: transformer_fwd.15
= control target key start
LH: loop header
LB: loop body
LE: loop exit
PB: predicated region body
PF: predicated region fallthrough
CT: control target
= control target key end

     0   :  { %s2900_s0 = inlined_call_operand.vmem [shape: s32[2], index: 0, kind: input, shape index: {}]   ;;  %s2901_s2 = inlined_call_operand.vmem [shape: f32[2,8,32], index: 2, kind: input, shape index: {}]   ;;  %s2902_s3 = inlined_call_operand.vmem [shape: f32[2,5,32], index: 3, kind: input, shape index: {}]   ;;  %s2903_s4 = inlined_call_operand.vmem [shape: f32[1,32], index: 4, kind: input, shape index: {}]   ;;  %s2904_s5 = inlined_call_operand.vmem [shape: f32[1,32], index: 5, kind: input, shape index: {}]   ;;  %s2905_s6 = inlined_call_operand.vmem [shape: bf16[32,96], index: 6, kind: input, shape index: {}]   ;;  %s2906_s7 = inlined_call_operand.vmem [shape: f32[1,96], index: 7, kind: input, shape index: {}]   ;;  %s2907_s8 = inlined_call_operand.vmem [shape: bf16[32,32], index: 8, kind: input, shape index: {}]   ;;  %s2908_s9 = inlined_call_operand.vmem [shape: f32[1,32], index: 9, kind: input, shape index: {}]   ;;  %s2909_s10 = inlined_call_operand.vmem [shape: f32[1,32], index: 10, kind: input, shape index: {}]   ;;  %s2910_s11 = inlined_call_operand.vmem [shape: f32[1,32], index: 11, kind: input, shape index: {}]   ;;  %s2911_s12 = inlined_call_operand.vmem [shape: bf16[32,96], index: 12, kind: input, shape index: {}]   ;;  %s2912_s13 = inlined_call_operand.vmem [shape: f32[1,96], index: 13, kind: input, shape index: {}]   ;;  %s2913_s14 = inlined_call_operand.vmem [shape: bf16[32,32], index: 14, kind: input, shape index: {}]   ;;  %s2914_s15 = inlined_call_operand.vmem [shape: f32[1,32], index: 15, kind: input, shape index: {}]   ;;  %s2915_s16 = inlined_call_operand.vmem [shape: bf16[32,64], index: 16, kind: input, shape index: {}]   ;;  %s2916_s17 = inlined_call_operand.vmem [shape: f32[1,64], index: 17, kind: input, shape index: {}]   ;;  %s2917_s18 = inlined_call_operand.vmem [shape: bf16[64,32], index: 18, kind: input, shape index: {}]   ;;  %s2918_s19 = inlined_call_operand.vmem [shape: f32[1,32], index: 19, kind: input, shape index: {}]   ;;  %s2919_s20 = inlined_call_operand.vmem [shape: f32[1,32], index: 20, kind: input, shape index: {}]   ;;  %s2920_s21 = inlined_call_operand.vmem [shape: f32[1,32], index: 21, kind: input, shape index: {}]   ;;  %s2921_s22 = inlined_call_operand.vmem [shape: f32[2,8,32], index: 22, kind: output, shape index: {0}]   ;;  %s2922_s23 = inlined_call_operand.hbm [shape: f32[2,8,8], index: 23, kind: output, shape index: {1}]   ;;  %s2923_s24 = inlined_call_operand.vmem [shape: f32[2,8,5], index: 24, kind: output, shape index: {2}]   ;;  %s2924_s1 = inlined_call_operand.vmem [shape: s32[2], index: 1, kind: input, shape index: {}]  }
   0x1   :  { %2935 = sst [smem:[#allocation11_spill]] %s2900_s0 }
   0x2   :  { %2936 = sst [smem:[#allocation12_spill]] %s2901_s2  ;;  %s2949_s27 = sld [smem:[#allocation11_spill]] }
   0x3   :  { %2937 = sst [smem:[#allocation13_spill]] %s2902_s3  ;;  %s34_s3 = sshll.u32 %s2924_s1, 4  ;;  %s35_s3 = int_to_ptr.vmem [resolvable:$true] %s34_s3 }
   0x4   :  { %2938 = sst [smem:[#allocation14_spill]] %s2903_s4 }
   0x5   :  { %2939 = sst [smem:[#allocation15_spill]] %s2904_s5 }
   0x6   :  { %2940 = sst [smem:[#allocation16_spill]] %s2905_s6 }
   0x7   :  { %2941 = sst [smem:[#allocation17_spill]] %s2906_s7 }
   0x8   :  { %2942 = sst [smem:[#allocation18_spill]] %s2907_s8 }
   0x9   :  { %2943 = sst [smem:[#allocation19_spill]] %s2908_s9 }
   0xa   :  { %2944 = sst [smem:[#allocation20_spill]] %s2909_s10 }
   0xb   :  { %2945 = sst [smem:[#allocation21_spill]] %s2910_s11 }
   0xc   :  { %2946 = sst [smem:[#allocation22_spill]] %s2911_s12 }
   0xd   :  { %2947 = sst [smem:[#allocation23_spill]] %s2912_s13 }
   0xe   :  { %2948 = sst [smem:[#allocation24_spill]] %s2918_s19  ;;  %s30_s19 = sshll.u32 %s2949_s27, 4  ;;  %s31_s19 = int_to_ptr.vmem [resolvable:$true] %s30_s19 }
   0xf   :  { %s2340_s29 = scalar_lea.vmem %s31_s19, 16  ;;  %p2345_p1 = scmp.lt.s32.totalorder %s31_s19, %s31_s19 }
  0x10   :  { %p2341_p0 = scmp.ne.s32.totalorder %s31_s19, %s2340_s29  ;;  %p2346_p2 = scmp.lt.s32.totalorder %s2340_s29, %s2340_s29 }
  0x12   :  { %p2347_p3 = por %p2346_p2, %p2345_p1 }
  0x14   :  { %p2348_p4 = pnand %p2347_p3, %p2341_p0 }
  0x16   :  { %2351 = shalt.err (!%p2348_p4)  }
  0x17   :  { %s2430_s0 = smov [#allocation3]   ;;  %s2352_s8 = scalar_lea.vmem %s35_s3, 16 }
  0x18   :  { %33 = dma.vmem_to_smem %s31_s19, 16, %s2430_s0, [#allocation2] }
  0x19   :  { %p2353_p5 = scmp.ne.s32.totalorder %s35_s3, %s2352_s8  ;;  %p2357_p6 = scmp.lt.s32.totalorder %s35_s3, %s35_s3 }
  0x1a   :  { %p2358_p7 = scmp.lt.s32.totalorder %s2352_s8, %s2352_s8 }
  0x1c   :  { %p2359_p8 = por %p2358_p7, %p2357_p6 }
  0x1e   :  { %p2360_p9 = pnand %p2359_p8, %p2353_p5 }
  0x20   :  { %2363 = shalt.err (!%p2360_p9)  }
  0x21   :  { %s2431_s30 = smov [#allocation4]  }
  0x22   :  { %37 = dma.vmem_to_smem %s35_s3, 16, %s2431_s30, [#allocation2] }
  0x23   :  { %2408 = dma.done.wait [#allocation2], 32 }
  0x24   :  { %2409 = vsyncadd [#allocation2], 4294967264 }
  0x25   :  { %39 = sfence }
  0x26   :  { %40 = vsyncpa [#allocation6], 0 }
  0x27   :  { %42 = vsyncpa [#allocation6 + $0x1], 0  ;;  %s2572_s1 = smov 0   ;;  %s2574_s4 = smov 0  }
  0x28   :  { %s2576_s25 = smov 0   ;;  %s2578_s19 = smov 0  }
  0x29 LB: > { %2950 = sst [smem:[#allocation9_spill]] %s2424_s25  ;;  %s2593_s9 = sadd.s32 4294967295, %s2428_s19   ;;  %s2428_s19 = sphi %s2578_s19, %s2975_s19   ;;  %s2424_s25 = sphi %s2576_s25, %s2972_s25   ;;  %s2420_s4 = sphi %s2574_s4, %s2974_s4   ;;  %s2416_s1 = sphi %s2572_s1, %s2973_s1  }
  0x2a   : > { %s2038_s5 = sadd.s32 4294967294, %s2428_s19   ;;  %s2597_s2 = sadd.s32 1, %s2428_s19  }
  0x2b   : > { %s511_s6 = sadd.s32 1, %s2424_s25  ;;  %s508_s26 = ssub.s32 %s2428_s19, %s2597_s2 }
  0x2c   : > { %p521_p10 = scmp.ne.s32.totalorder %s2424_s25, %s2420_s4  ;;  %p509_p11 = scmp.eq.s32.totalorder %s508_s26, 0 }
  0x2d   : > { %p522_p12 = scmp.eq.s32.totalorder %s2593_s9, 1  ;;  %p527_p13 = scmp.ne.s32.totalorder %s2420_s4, %s2416_s1 }
  0x2e   : > { %p528_p0 = scmp.eq.s32.totalorder %s2038_s5, 1  ;;  %p2041_p3 = scmp.ge.s32.totalorder %s2428_s19, 1 }
  0x2f   : > { %s2608_s27 = scalar_select %p509_p11, %s2424_s25, %s511_s6  }
  0x30   : > { %p2610_p1 = por %p522_p12, %p521_p10  ;;  %p2614_p2 = por %p528_p0, %p527_p13 }
  0x31   : > { %2951 = sst [smem:[#allocation10_spill]] %s2608_s27  ;;  %p640_p4 = scmp.lt.s32.totalorder %s2428_s19, 3 }
  0x33   : > { %p641_p5 = pnand %p2041_p3, %p640_p4 }
  0x34   : > { %p713_p6 = scmp.lt.s32.totalorder (!%p641_p5), %s2593_s9, 1  ;;  %vm736_vm0 = vcmask (!%p641_p5), 261120   ;;  %s2954_s30 = sld [smem:[#allocation12_spill]] (!%p641_p5)  ;;  %v2432_v8 = vmov (!%p641_p5), 0.0   ;;  %vm2433_vm1 = vmmov (!%p641_p5), 0   ;;  %vm849_vm2 = vcmask (!%p641_p5), 130048  }
  0x35   : > { %644 = sbr.rel (%p641_p5) target bundleno = 4096 (0x1000), region = 100  ;;  %2135 = vmatprep.subr.bf16.mxu1 (!%p641_p5), %v2432_v8  ;;  %2139 = vmatprep.mubr.msk.bf16.mxu1 (!%p641_p5), %vm2433_vm1, %v2432_v8  ;;  %s2956_s6 = sld [smem:[#allocation14_spill]] (!%p641_p5)  ;;  %v837_v32 = vlaneseq (!%p641_p5)  ;;  %vm898_vm6 = vcmask (!%p641_p5), 64512   ;;  %vm916_vm7 = vcmask (!%p641_p5), 1043456   ;;  %vm1389_vm9 = vcmask (!%p641_p5), 39936  }
  0x36   : > { %2149 = vmatprep.subr.bf16.mxu0 (!%p641_p5), %v2432_v8  ;;  %2151 = vmatprep.mubr.msk.bf16.mxu0 (!%p641_p5), %vm2433_vm1, %v2432_v8  ;;  %s2957_s8 = sld [smem:[#allocation15_spill]] (!%p641_p5)  ;;  %s2958_s25 = sld [smem:[#allocation17_spill]] (!%p641_p5)  ;;  %vm1408_vm10 = vcmask (!%p641_p5), 1041408   ;;  %vm1409_vm11 = vcmask (!%p641_p5), 1042432   ;;  %vm1807_vm13 = vcmask (!%p641_p5), 523264  }
  0x37   : > { %v2680_v33 = vand.u32 (!%p641_p5), 127, %v837_v32  ;;  %v842_v34 = vshrl.u32 (!%p641_p5), %v837_v32, 7  ;;  %s2437_s27 = smov (!%p641_p5), 48   ;;  %s2929_s26 = sand.u32 (!%p641_p5), 1, %s2420_s4  }
  0x38   : > { %s2698_s0 = sshll.u32 (!%p641_p5), %s2929_s26, 3  ;;  %s2961_s12 = sld [smem:[#allocation22_spill]] (!%p641_p5) }
  0x39   : > { %vm843_vm4 = vcmp.gt.s32.totalorder (!%p641_p5), %v2680_v33, %v842_v34  ;;  %s2962_s13 = sld [smem:[#allocation23_spill]] (!%p641_p5)  ;;  %s2963_s26 = sld [smem:[#allocation13_spill]] (!%p641_p5) }
  0x3a   : > { %s2964_s10 = sld [smem:[#allocation20_spill]] (!%p641_p5)  ;;  %s2965_s11 = sld [smem:[#allocation21_spill]] (!%p641_p5) }
  0x3b   : > { %v2047_v14 = vld [vmem:[%s2956_s6] ss:$0 sm:$0xff] (!%p641_p5)  ;;  %s2930_s6 = smov (!%p641_p5), 80  }
  0x3c   : > { %s714_s3 = scalar_select %p713_p6, %s2593_s9, 1  ;;  %v2048_v16 = vld [vmem:[%s2957_s8] ss:$0 sm:$0xff] }
  0x3d   : > { %v2049_v20 = vld [vmem:[%s2958_s25] ss:$0 sm:$0xff]  ;;  %s730_s25 = sld [smem:[#allocation4 + %s2593_s9]]  ;;  %s2931_s8 = scalar_lea.vmem [#allocation5], %s2698_s0 }
  0x3e   : > { %s2622_s29 = sshll.u32 %s714_s3, 3  ;;  %s2955_s3 = sld [smem:[#allocation16_spill]] }
  0x3f   : > { %s716_s5 = scalar_lea.vmem %s2954_s30, %s2622_s29  ;;  %s2932_s30 = smov 112  }
  0x40   : > { %v2628_v0 = vld [vmem:[%s716_s5] sm:$0xff]  ;;  %s2435_s5 = smov 96  }
  0x41   : > { %v737_v1 = vsel %vm736_vm0, %v2628_v0, 0.0 }
  0x42   : > { %738 = vadd.xlane.f32.xlu0 %v737_v1 }
  0x43   : > { %v839_v35 = vstv %s730_s25  ;;  %s2960_s25 = sld [smem:[#allocation19_spill]] }
  0x44   : > { %v2300_v7 = vld [vmem:[%s2955_s3] sm:$0xff]   ;;  %v2301_v9 = vld [vmem:[%s2955_s3 + $0x8] sm:$0xff]   ;;  %vm840_vm3 = vcmp.ge.s32.totalorder %v2680_v33, %v839_v35  ;;  %s2438_s3 = smov 64  }
  0x45   : > { %2136 = vmatpush3.bf16.msra.mxu1 %v2300_v7  ;;  %vm844_vm5 = vmor %vm840_vm3, %vm843_vm4 }
  0x46   : > { %2137 = vmatprep.subr.bf16.mxu1 %v2432_v8 }
  0x49   : > { %2138 = vmatpush3.bf16.msra.mxu1 %v2301_v9 }
  0x4a   : > { %2143 = vmatprep.subr.bf16.mxu1 %v2432_v8 }
  0xcf   : > { %v739_v2 = vpop.xlane.xlu0 %738 }
  0xd0   : > { %v741_v3 = vmul.f32 0.03125, %v739_v2 }
  0xd2   : > { %v742_v4 = vsub.f32 %v2628_v0, %v741_v3 }
  0xd4   : > { %v743_v5 = vmul.f32 %v742_v4, %v742_v4 }
  0xd6   : > { %v744_v6 = vsel %vm736_vm0, %v743_v5, 0.0 }
  0xd7   : > { %745 = vadd.xlane.f32.xlu0 %v744_v6 }
 0x164   : > { %v746_v10 = vpop.xlane.xlu0 %745 }
 0x165   : > { %v747_v11 = vmul.f32 0.03125, %v746_v10 }
 0x167   : > { %v748_v12 = vadd.f32 1e-05, %v747_v11 }
 0x169   : > { %2314 = vrsqrt.f32 %v748_v12 }
 0x173   : > { %v2315_v13 = vpop.eup %2314 }
 0x174   : > { %v750_v15 = vmul.f32 %v2315_v13, %v742_v4 }
 0x176   : > { %v757_v17 = vmul.f32 %v2047_v14, %v750_v15 }
 0x178   : > { %v764_v18 = vadd.f32 %v2048_v16, %v757_v17 }
 0x17a   : > { %v775_v19 = vpack.c.bf16 %v764_v18, %v764_v18 }
 0x17c   : > { %2140 = vmatmul.mubr.msk.bf16.vlgmr.msra.gmra.mrb[0].mxu1 %vm736_vm0, %v775_v19 }
 0x17d   : > { %2145 = vmatprep.mubr.msk.bf16.mxu1 %vm2433_vm1, %v2432_v8 }
 0x24f   : > { %v831_v21 = vpop.f32.mrb[0].mxu1 }
 0x250   : > { %v832_v22 = vadd.f32 %v2049_v20, %v831_v21  ;;  %v2141_v23 = vpop.f32.mrb[1].mxu1 }
 0x251   : > { %v834_v24 = vpop.f32.mrb[2].mxu1 }
 0x252   : > { %v2660_v25 = vpack.c.bf16 %v832_v22, %v832_v22  ;;  %v2142_v26 = vpop.f32.mrb[3].mxu1 }
 0x254   : > { %962 = vrot.lane.b32.xlu0 %v2660_v25, %s2932_s30  ;;  %847 = vrot.lane.b32.xlu1 %v2660_v25, %s2435_s5  ;;  %s720_s30 = scalar_lea.vmem %s2963_s26, %s2622_s29  ;;  %s731_s26 = sld [smem:[#allocation3 + %s2593_s9]] }
 0x258   : > { %964 = vrot.lane.b32.xlu1 %v2660_v25, %s2930_s6  ;;  %s2966_s6 = smov 112  }
 0x2c6   : > { %v848_v27 = vpop.permute.xlu1 %847  ;;  %v963_v31 = vpop.permute.xlu0 %962 }
 0x2c7   : > { %v854_v28 = vsel %vm849_vm2, %v848_v27, 0 }
 0x2c8   : > { %2144 = vmatpush3.bf16.xpose.msra.mxu1 %v854_v28  ;;  %v2061_v28 = vld [vmem:[%s2960_s25] ss:$0 sm:$0xff]  ;;  %s2970_s25 = sand.u32 1, %s2420_s4  }
 0x2c9   : > { %2155 = vmatprep.subr.bf16.mxu1 %v2432_v8 }
 0x2ca   : > { %v965_v29 = vpop.permute.xlu1 %964 }
 0x2cb   : > { %v970_v30 = vsel %vm849_vm2, %v965_v29, 0 }
 0x2cf   : > { %2146 = vmatmul.mubr.msk.bf16.vlgmr.msra.gmra.mrb[4].mxu1 %vm849_vm2, %v2660_v25 }
 0x2d0   : > { %2156 = vmatpush3.bf16.xpose.msra.mxu1 %v970_v30  ;;  %2157 = vmatprep.mubr.msk.bf16.mxu1 %vm2433_vm1, %v2432_v8 }
 0x2d1   : > { %2167 = vmatprep.subr.bf16.mxu1 %v2432_v8 }
 0x2d7   : > { %2158 = vmatmul.mubr.msk.bf16.vlgmr.msra.gmra.mrb[8].mxu1 %vm849_vm2, %v963_v31 }
 0x2d8   : > { %2169 = vmatprep.mubr.msk.bf16.mxu1 %vm2433_vm1, %v2432_v8 }
 0x3a2   : > { %v890_v36 = vpop.f32.mrb[4].mxu1 }
 0x3a3   : > { %v896_v37 = vmul.f32 0.25, %v890_v36  ;;  %v2147_v38 = vpop.f32.mrb[5].mxu1 }
 0x3a4   : > { %v893_v39 = vpop.f32.mrb[6].mxu1  ;;  %v2304_v38 = vld [vmem:[%s2961_s12] sm:$0xff]  }
 0x3a5   : > { %v2148_v40 = vpop.f32.mrb[7].mxu1  ;;  %v897_v41 = vsel %vm844_vm5, -1e+30, %v896_v37  ;;  %v2305_v39 = vld [vmem:[%s2961_s12 + $0x8] sm:$0xff]  }
 0x3a6   : > { %v899_v42 = vsel %vm898_vm6, %v897_v41, -inf }
 0x3a7   : > { %900 = vmax.xlane.f32.xlu1 %v899_v42 }
 0x3aa   : > { %v1006_v43 = vpop.f32.mrb[8].mxu1 }
 0x3ab   : > { %v1012_v44 = vmul.f32 0.25, %v1006_v43  ;;  %v2159_v45 = vpop.f32.mrb[9].mxu1 }
 0x3ac   : > { %v1009_v46 = vpop.f32.mrb[10].mxu1  ;;  %v2064_v45 = vld [vmem:[%s2962_s13] ss:$0 sm:$0xff] }
 0x3ad   : > { %v2160_v47 = vpop.f32.mrb[11].mxu1  ;;  %v1013_v48 = vsel %vm844_vm5, -1e+30, %v1012_v44 }
 0x3ae   : > { %v1014_v49 = vsel %vm898_vm6, %v1013_v48, -inf  ;;  %v733_v47 = vld [vmem:[%s720_s30] sm:$0x1f]  ;;  %s2968_s30 = sld [smem:[#allocation24_spill]] }
 0x3af   : > { %1015 = vmax.xlane.f32.xlu0 %v1014_v49 }
 0x3c5   : > { %1026 = vrot.lane.b32.xlu0 %v2660_v25, %s2437_s27  ;;  %s2091_s27 = sshll.u32 %s2593_s9, 7 }
 0x434   : > { %v901_v50 = vpop.xlane.xlu1 %900 }
 0x435   : > { %v902_v51 = vsub.f32 %v897_v41, %v901_v50  ;;  %v1284_v50 = vpack.c.bf16 %v733_v47, %v733_v47  ;;  %v2307_v47 = vld [vmem:[%s2913_s14 + $0x8] sm:$0xff]  }
 0x437   : > { %v903_v52 = vmul.f32 1.442695, %v902_v51 }
 0x439   : > { %2316 = vpow2.f32 %v903_v52 }
 0x43c   : > { %v1016_v53 = vpop.xlane.xlu0 %1015 }
 0x43d   : > { %v1017_v54 = vsub.f32 %v1013_v48, %v1016_v53  ;;  %v2062_v53 = vld [vmem:[%s2964_s10] ss:$0 sm:$0xff] }
 0x43f   : > { %v1018_v55 = vmul.f32 1.442695, %v1017_v54 }
 0x440   : > { %v1027_v3 = vpop.permute.xlu0 %1026 }
 0x441   : > { %2318 = vpow2.f32 %v1018_v55  ;;  %v1032_v5 = vsel %vm916_vm7, %v1027_v3, 0  ;;  %v2063_v55 = vld [vmem:[%s2965_s11] ss:$0 sm:$0xff]  ;;  %s2440_s11 = smov [#allocation5]  }
 0x442   : > { %s2368_s12 = sshll.u32 %s2440_s11, 4  ;;  %s2369_s12 = int_to_ptr.vmem [resolvable:$false] %s2368_s12 }
 0x443   : > { %v2317_v56 = vpop.eup %2316  ;;  %s2370_s13 = scalar_lea.vmem %s2369_s12, 256 }
 0x444   : > { %v905_v57 = vsel %vm898_vm6, %v2317_v56, 0.0 }
 0x445   : > { %906 = vadd.xlane.f32.xlu1 %v905_v57 }
 0x44b   : > { %v2319_v58 = vpop.eup %2318 }
 0x44c   : > { %v1020_v59 = vsel %vm898_vm6, %v2319_v58, 0.0 }
 0x44d   : > { %1021 = vadd.xlane.f32.xlu1 %v1020_v59 }
 0x45e   : > { %911 = vrot.lane.b32.xlu1 %v2660_v25, %s2438_s3  ;;  %s2959_s3 = sld [smem:[#allocation18_spill]] }
 0x464   : > { %v2302_v12 = vld [vmem:[%s2959_s3] sm:$0xff]   ;;  %v2303_v13 = vld [vmem:[%s2959_s3 + $0x8] sm:$0xff]   ;;  %s2851_s3 = scalar_lea.hbm %s2922_s23, %s2091_s27 }
 0x465   : > { %2168 = vmatpush3.bf16.msra.mxu1 %v2303_v13 }
 0x466   : > { %2179 = vmatprep.subr.bf16.mxu1 %v2432_v8 }
 0x4d2   : > { %v907_v60 = vpop.xlane.xlu1 %906 }
 0x4d3   : > { %2320 = vrcp.f32 %v907_v60 }
 0x4da   : > { %v1022_v61 = vpop.xlane.xlu1 %1021 }
 0x4db   : > { %2322 = vrcp.f32 %v1022_v61 }
 0x4dd   : > { %v2321_v62 = vpop.eup %2320 }
 0x4de   : > { %v912_v63 = vpop.permute.xlu1 %911  ;;  %v909_v1 = vmul.f32 %v2321_v62, %v2317_v56 }
 0x4df   : > { %v918_v2 = vsel %vm916_vm7, %v912_v63, 0 }
 0x4e0   : > { %2150 = vmatpush3.bf16.msra.mxu0 %v918_v2  ;;  %v910_v4 = vpack.c.bf16 %v909_v1, %v909_v1 }
 0x4e1   : > { %2161 = vmatprep.subr.bf16.mxu0 %v2432_v8 }
 0x4e3   : > { %2152 = vmatmul.mubr.msk.bf16.vlgmr.msra.gmra.mrb[0].mxu0 %vm898_vm6, %v910_v4 }
 0x4e4   : > { %2162 = vmatpush3.bf16.msra.mxu0 %v1032_v5  ;;  %2163 = vmatprep.mubr.msk.bf16.mxu0 %vm2433_vm1, %v2432_v8 }
 0x4e5   : > { %v2323_v6 = vpop.eup %2322  ;;  %2173 = vmatprep.subr.bf16.mxu0 %v2432_v8 }
 0x4e6   : > { %v1024_v7 = vmul.f32 %v2323_v6, %v2319_v58 }
 0x4e8   : > { %v1025_v9 = vpack.c.bf16 %v1024_v7, %v1024_v7  ;;  %v1173_v10 = vadd.f32 %v1024_v7, %v909_v1 }
 0x4ea   : > { %v1181_v11 = vmul.f32 0.5, %v1173_v10 }
 0x4eb   : > { %2164 = vmatmul.mubr.msk.bf16.vlgmr.msra.gmra.mrb[4].mxu0 %vm898_vm6, %v1025_v9 }
 0x4ec   : > { %2175 = vmatprep.mubr.msk.bf16.mxu0 %vm2433_vm1, %v2432_v8  ;;  %1889 = vst.msk [vmem:[%s2931_s8] sm:$0xff] %vm898_vm6, %v1181_v11  ;;  %2174 = vmatpush3.bf16.msra.mxu0 %v2302_v12  ;;  %s2967_s8 = smov 80  }
 0x4ed   : > { %2187 = vmatprep.subr.bf16.mxu0 %v2432_v8 }
 0x5b6   : > { %v954_v14 = vpop.f32.mrb[0].mxu0 }
 0x5b7   : > { %v960_v15 = vpack.c.bf16 %v954_v14, %v954_v14  ;;  %v2153_v16 = vpop.f32.mrb[1].mxu0  ;;  %v1337_v14 = vstv %s731_s26 }
 0x5b8   : > { %v957_v17 = vpop.f32.mrb[2].mxu0  ;;  %vm1338_vm8 = vcmp.ge.s32.totalorder %v2680_v33, %v1337_v14 }
 0x5b9   : > { %v2154_v18 = vpop.f32.mrb[3].mxu0  ;;  %2176 = vmatmul.mubr.msk.bf16.vlgmr.msra.gmra.mrb[8].mxu0 %vm849_vm2, %v960_v15 }
 0x5ba   : > { %2191 = vmatprep.mubr.msk.bf16.mxu0 %vm2433_vm1, %v2432_v8 }
 0x5be   : > { %v1068_v19 = vpop.f32.mrb[4].mxu0 }
 0x5bf   : > { %v1074_v20 = vpack.c.bf16 %v1068_v19, %v1068_v19  ;;  %v2165_v21 = vpop.f32.mrb[5].mxu0 }
 0x5c0   : > { %v1071_v22 = vpop.f32.mrb[6].mxu0 }
 0x5c1   : > { %v2166_v23 = vpop.f32.mrb[7].mxu0  ;;  %2170 = vmatmul.mubr.msk.bf16.vlgmr.msra.gmra.mrb[12].mxu1 %vm849_vm2, %v1074_v20 }
 0x5c2   : > { %2183 = vmatprep.mubr.msk.bf16.mxu1 %vm2433_vm1, %v2432_v8  ;;  %2180 = vmatpush3.bf16.msra.mxu1 %v2304_v38 }
 0x5c3   : > { %2181 = vmatprep.subr.bf16.mxu1 %v2432_v8 }
 0x5c6   : > { %2182 = vmatpush3.bf16.msra.mxu1 %v2305_v39 }
 0x5c7   : > { %2195 = vmatprep.subr.bf16.mxu1 %v2432_v8 }
 0x68c   : > { %v1167_v24 = vpop.f32.mrb[8].mxu0 }
 0x68d   : > { %v2177_v25 = vpop.f32.mrb[9].mxu0 }
 0x68e   : > { %v1170_v26 = vpop.f32.mrb[10].mxu0 }
 0x68f   : > { %v2178_v27 = vpop.f32.mrb[11].mxu0 }
 0x694   : > { %v1118_v29 = vpop.f32.mrb[12].mxu1 }
 0x695   : > { %v1168_v30 = vadd.f32 %v1167_v24, %v1118_v29  ;;  %v2171_v31 = vpop.f32.mrb[13].mxu1 }
 0x696   : > { %v1121_v32 = vpop.f32.mrb[14].mxu1 }
 0x697   : > { %v1180_v34 = vadd.f32 %v2061_v28, %v1168_v30  ;;  %v2172_v35 = vpop.f32.mrb[15].mxu1 }
 0x699   : > { %v1182_v36 = vadd.f32 %v1180_v34, %v2628_v0 }
 0x69b   : > { %v1185_v37 = vsel %vm736_vm0, %v1182_v36, 0.0 }
 0x69c   : > { %1186 = vadd.xlane.f32.xlu1 %v1185_v37 }
 0x6ad   : > { %1285 = vrot.lane.b32.xlu1 %v2304_v38, %s2435_s5 }
 0x6b1   : > { %1291 = vrot.lane.b32.xlu1 %v2064_v45, %s2435_s5 }
 0x729   : > { %v1187_v0 = vpop.xlane.xlu1 %1186 }
 0x72a   : > { %v1188_v40 = vmul.f32 0.03125, %v1187_v0 }
 0x72c   : > { %v1189_v41 = vsub.f32 %v1182_v36, %v1188_v40 }
 0x72d   : > { %v1286_v44 = vpop.permute.xlu1 %1285 }
 0x72e   : > { %v1190_v42 = vmul.f32 %v1189_v41, %v1189_v41  ;;  %2188 = vmatpush3.bf16.msra.mxu0 %v1286_v44 }
 0x72f   : > { %2189 = vmatprep.subr.bf16.mxu0 %v2432_v8 }
 0x730   : > { %v1191_v43 = vsel %vm736_vm0, %v1190_v42, 0.0 }
 0x731   : > { %1192 = vadd.xlane.f32.xlu0 %v1191_v43  ;;  %v1292_v59 = vpop.permute.xlu1 %1291 }
 0x747   : > { %1287 = vrot.lane.b32.xlu0 %v2305_v39, %s2435_s5  ;;  %v2439_v39 = vmov 65535  }
 0x748   : > { %v1410_v0 = vsel %vm1408_vm10, 4294967295, %v2439_v39 }
 0x7be   : > { %v1193_v46 = vpop.xlane.xlu0 %1192 }
 0x7bf   : > { %v1194_v48 = vmul.f32 0.03125, %v1193_v46 }
 0x7c1   : > { %v1195_v49 = vadd.f32 1e-05, %v1194_v48 }
 0x7c2   : > { %v1288_v51 = vpop.permute.xlu0 %1287 }
 0x7c3   : > { %2324 = vrsqrt.f32 %v1195_v49  ;;  %2190 = vmatpush3.bf16.msra.mxu0 %v1288_v51 }
 0x7c4   : > { %2201 = vmatprep.subr.bf16.mxu0 %v2432_v8 }
 0x7c6   : > { %2192 = vmatmul.mubr.msk.bf16.vlgmr.msra.gmra.mrb[12].mxu0 %vm736_vm0, %v1284_v50 }
 0x7c7   : > { %2203 = vmatprep.mubr.msk.bf16.mxu0 %vm2433_vm1, %v2432_v8 }
 0x7cd   : > { %v2325_v52 = vpop.eup %2324 }
 0x7ce   : > { %v1197_v54 = vmul.f32 %v2325_v52, %v1189_v41  ;;  %v1411_v41 = vsel %vm1409_vm11, %v1410_v0, 0 }
 0x7d0   : > { %v1204_v56 = vmul.f32 %v2062_v53, %v1197_v54  ;;  %v2306_v53 = vld [vmem:[%s2913_s14] sm:$0xff]  }
 0x7d2   : > { %v2756_v57 = vadd.f32 %v2063_v55, %v1204_v56 }
 0x7d4   : > { %v1222_v58 = vpack.c.bf16 %v2756_v57, %v2756_v57 }
 0x7d6   : > { %2184 = vmatmul.mubr.msk.bf16.vlgmr.msra.gmra.mrb[16].mxu1 %vm736_vm0, %v1222_v58 }
 0x7d7   : > { %2197 = vmatprep.mubr.msk.bf16.mxu1 %vm2433_vm1, %v2432_v8 }
 0x899   : > { %v1331_v60 = vpop.f32.mrb[12].mxu0 }
 0x89a   : > { %v2193_v61 = vpop.f32.mrb[13].mxu0  ;;  %v1332_v62 = vadd.f32 %v1331_v60, %v1292_v59 }
 0x89b   : > { %v1334_v63 = vpop.f32.mrb[14].mxu0 }
 0x89c   : > { %v2194_v1 = vpop.f32.mrb[15].mxu0  ;;  %v1340_v2 = vpack.c.bf16 %v1332_v62, %v1332_v62 }
 0x89e   : > { %1460 = vrot.lane.b32.xlu1 %v1340_v2, %s2966_s6  ;;  %v1345_v3 = vsel %vm849_vm2, %v1340_v2, 0 }
 0x89f   : > { %2196 = vmatpush3.bf16.xpose.msra.mxu1 %v1345_v3 }
 0x8a0   : > { %2207 = vmatprep.subr.bf16.mxu1 %v2432_v8 }
 0x8a9   : > { %v1278_v4 = vpop.f32.mrb[16].mxu1 }
 0x8aa   : > { %v1279_v5 = vadd.f32 %v2064_v45, %v1278_v4  ;;  %v2185_v6 = vpop.f32.mrb[17].mxu1 }
 0x8ab   : > { %v1281_v7 = vpop.f32.mrb[18].mxu1  ;;  %v2309_v6 = vld [vmem:[%s2915_s16 + $0x8] sm:$0xff]  }
 0x8ac   : > { %v1339_v9 = vpack.c.bf16 %v1279_v5, %v1279_v5  ;;  %v2186_v10 = vpop.f32.mrb[19].mxu1  ;;  %v2308_v5 = vld [vmem:[%s2915_s16] sm:$0xff]  }
 0x8ae   : > { %1458 = vrot.lane.b32.xlu1 %v1339_v9, %s2966_s6  ;;  %2198 = vmatmul.mubr.msk.bf16.vlgmr.msra.gmra.mrb[20].mxu1 %vm849_vm2, %v1339_v9  ;;  %s2969_s6 = scalar_lea.vmem [#allocation5], %s2698_s0 }
 0x8af   : > { %2209 = vmatprep.mubr.msk.bf16.mxu1 %vm2433_vm1, %v2432_v8  ;;  %s1916_s26 = sshll.u32 %s2969_s6, 4  ;;  %s1917_s26 = int_to_ptr.vmem [resolvable:$true] %s1916_s26 }
 0x8b0   : > { %s2364_s10 = scalar_lea.vmem %s1917_s26, 128  ;;  %p2371_p10 = scmp.lt.s32.totalorder %s1917_s26, %s2369_s12 }
 0x8b1   : > { %p2365_p7 = scmp.ne.s32.totalorder %s1917_s26, %s2364_s10  ;;  %p2372_p11 = scmp.lt.s32.totalorder %s2370_s13, %s2364_s10 }
 0x8b3   : > { %p2366_p8 = pnand %p2365_p7, %p2610_p1  ;;  %p2373_p12 = por %p2372_p11, %p2371_p10 }
 0x8b5   : > { %p2367_p9 = pneg %p2366_p8 }
 0x8b7   : > { %p2374_p13 = pnand %p2373_p12, %p2367_p9 }
 0x910   : > { %v1461_v11 = vpop.permute.xlu1 %1460 }
 0x911   : > { %v1466_v12 = vsel %vm849_vm2, %v1461_v11, 0 }
 0x912   : > { %2208 = vmatpush3.bf16.xpose.msra.mxu1 %v1466_v12  ;;  %v2077_v12 = vld [vmem:[%s2914_s15] ss:$0 sm:$0xff] }
 0x913   : > { %2219 = vmatprep.subr.bf16.mxu1 %v2432_v8 }
 0x920   : > { %v1459_v13 = vpop.permute.xlu1 %1458 }
 0x921   : > { %2210 = vmatmul.mubr.msk.bf16.vlgmr.msra.gmra.mrb[24].mxu1 %vm849_vm2, %v1459_v13 }
 0x922   : > { %2221 = vmatprep.mubr.msk.bf16.mxu1 %vm2433_vm1, %v2432_v8  ;;  %2220 = vmatpush3.bf16.msra.mxu1 %v2307_v47 }
 0x923   : > { %2231 = vmatprep.subr.bf16.mxu1 %v2432_v8 }
 0x981   : > { %v1381_v15 = vpop.f32.mrb[20].mxu1 }
 0x982   : > { %v1387_v16 = vmul.f32 0.25, %v1381_v15  ;;  %v2199_v17 = vpop.f32.mrb[21].mxu1 }
 0x983   : > { %v1384_v18 = vpop.f32.mrb[22].mxu1 }
 0x984   : > { %v2200_v19 = vpop.f32.mrb[23].mxu1  ;;  %v1388_v20 = vsel %vm1338_vm8, -1e+30, %v1387_v16 }
 0x985   : > { %v1390_v21 = vsel %vm1389_vm9, %v1388_v20, -inf }
 0x986   : > { %1391 = vmax.xlane.f32.xlu1 %v1390_v21  ;;  %v2310_v21 = vld [vmem:[%s2917_s18] sm:$0xff]  }
 0x9f4   : > { %v1502_v22 = vpop.f32.mrb[24].mxu1 }
 0x9f5   : > { %v1508_v23 = vmul.f32 0.25, %v1502_v22  ;;  %v2211_v24 = vpop.f32.mrb[25].mxu1  ;;  %v2311_v22 = vld [vmem:[%s2917_s18 + $0x8] sm:$0xff]  }
 0x9f6   : > { %v1505_v25 = vpop.f32.mrb[26].mxu1  ;;  %v2078_v24 = vld [vmem:[%s2916_s17] ss:$0 sm:$0xff] }
 0x9f7   : > { %v2212_v26 = vpop.f32.mrb[27].mxu1  ;;  %v1509_v27 = vsel %vm1338_vm8, -1e+30, %v1508_v23  ;;  %v2313_v23 = vld [vmem:[%s2917_s18 + $0x18] sm:$0xff]  }
 0x9f8   : > { %v1510_v28 = vsel %vm1389_vm9, %v1509_v27, -inf }
 0x9f9   : > { %1511 = vmax.xlane.f32.xlu0 %v1510_v28 }
 0xa13   : > { %v1392_v29 = vpop.xlane.xlu1 %1391 }
 0xa14   : > { %v1393_v33 = vsub.f32 %v1388_v20, %v1392_v29 }
 0xa16   : > { %v1394_v30 = vmul.f32 1.442695, %v1393_v33 }
 0xa18   : > { %2326 = vpow2.f32 %v1394_v30 }
 0xa22   : > { %v2327_v31 = vpop.eup %2326 }
 0xa23   : > { %v1396_v32 = vsel %vm1389_vm9, %v2327_v31, 0.0 }
 0xa24   : > { %1397 = vadd.xlane.f32.xlu0 %v1396_v32 }
 0xa3a   : > { %1403 = vrot.lane.b32.xlu0 %v1340_v2, %s2435_s5 }
 0xa86   : > { %v1512_v34 = vpop.xlane.xlu0 %1511 }
 0xa87   : > { %v1513_v35 = vsub.f32 %v1509_v27, %v1512_v34 }
 0xa89   : > { %v1514_v36 = vmul.f32 1.442695, %v1513_v35 }
 0xa8b   : > { %2328 = vpow2.f32 %v1514_v36 }
 0xa95   : > { %v2329_v37 = vpop.eup %2328 }
 0xa96   : > { %v1516_v38 = vsel %vm1389_vm9, %v2329_v37, 0.0 }
 0xa97   : > { %1517 = vadd.xlane.f32.xlu1 %v1516_v38 }
 0xaa8   : > { %1522 = vrot.lane.b32.xlu1 %v1340_v2, %s2967_s8  ;;  %s728_s8 = scalar_lea.vmem %s2923_s24, %s2622_s29 }
 0xab1   : > { %v1398_v40 = vpop.xlane.xlu0 %1397 }
 0xab2   : > { %2330 = vrcp.f32 %v1398_v40 }
 0xab5   : > { %v1404_v42 = vpop.permute.xlu0 %1403 }
 0xab6   : > { %v1413_v43 = vand.u32 %v1411_v41, %v1404_v42 }
 0xab8   : > { %2202 = vmatpush3.bf16.msra.mxu0 %v1413_v43 }
 0xab9   : > { %2213 = vmatprep.subr.bf16.mxu0 %v2432_v8 }
 0xabc   : > { %v2331_v44 = vpop.eup %2330 }
 0xabd   : > { %v1400_v45 = vmul.f32 %v2331_v44, %v2327_v31 }
 0xabf   : > { %v1401_v46 = vpack.c.bf16 %v1400_v45, %v1400_v45 }
 0xac1   : > { %2204 = vmatmul.mubr.msk.bf16.vlgmr.msra.gmra.mrb[16].mxu0 %vm1389_vm9, %v1401_v46 }
 0xac2   : > { %2215 = vmatprep.mubr.msk.bf16.mxu0 %vm2433_vm1, %v2432_v8 }
 0xb24   : > { %v1518_v48 = vpop.xlane.xlu1 %1517 }
 0xb25   : > { %2332 = vrcp.f32 %v1518_v48 }
 0xb28   : > { %v1523_v49 = vpop.permute.xlu1 %1522 }
 0xb29   : > { %v1528_v50 = vand.u32 %v1523_v49, %v1411_v41 }
 0xb2b   : > { %2214 = vmatpush3.bf16.msra.mxu0 %v1528_v50 }
 0xb2c   : > { %2225 = vmatprep.subr.bf16.mxu0 %v2432_v8 }
 0xb2f   : > { %v2333_v51 = vpop.eup %2332 }
 0xb30   : > { %v1520_v52 = vmul.f32 %v2333_v51, %v2329_v37 }
 0xb32   : > { %v1669_v54 = vadd.f32 %v1520_v52, %v1400_v45  ;;  %v1521_v55 = vpack.c.bf16 %v1520_v52, %v1520_v52 }
 0xb34   : > { %v1677_v56 = vmul.f32 0.5, %v1669_v54  ;;  %2216 = vmatmul.mubr.msk.bf16.vlgmr.msra.gmra.mrb[20].mxu0 %vm1389_vm9, %v1521_v55  ;;  %v2087_v55 = vld [vmem:[%s2968_s30] ss:$0 sm:$0xff]  ;;  %s1896_s30 = scalar_lea.sflag [#allocation6], %s2970_s25 }
 0xb35   : > { %2226 = vmatpush3.bf16.msra.mxu0 %v2306_v53  ;;  %2227 = vmatprep.mubr.msk.bf16.mxu0 %vm2433_vm1, %v2432_v8 }
 0xb36   : > { %1890 = vst.msk [vmem:[%s728_s8] sm:$0xff] %vm1389_vm9, %v1677_v56  ;;  %2239 = vmatprep.subr.bf16.mxu0 %v2432_v8 }
 0xb94   : > { %v1449_v58 = vpop.f32.mrb[16].mxu0 }
 0xb95   : > { %v1455_v59 = vpack.c.bf16 %v1449_v58, %v1449_v58  ;;  %v2205_v60 = vpop.f32.mrb[17].mxu0 }
 0xb96   : > { %v1452_v61 = vpop.f32.mrb[18].mxu0 }
 0xb97   : > { %v2206_v62 = vpop.f32.mrb[19].mxu0  ;;  %2228 = vmatmul.mubr.msk.bf16.vlgmr.msra.gmra.mrb[24].mxu0 %vm849_vm2, %v1455_v59 }
 0xb98   : > { %2247 = vmatprep.mubr.msk.bf16.mxu0 %vm2433_vm1, %v2432_v8  ;;  %2240 = vmatpush3.bf16.msra.mxu0 %v2310_v21 }
 0xb99   : > { %2241 = vmatprep.subr.bf16.mxu0 %v2432_v8 }
 0xb9c   : > { %2242 = vmatpush3.bf16.msra.mxu0 %v2311_v22 }
 0xb9d   : > { %2243 = vmatprep.subr.bf16.mxu0 %v2432_v8 }
 0xc07   : > { %v1564_v63 = vpop.f32.mrb[20].mxu0 }
 0xc08   : > { %v1570_v1 = vpack.c.bf16 %v1564_v63, %v1564_v63  ;;  %v2217_v2 = vpop.f32.mrb[21].mxu0 }
 0xc09   : > { %v1567_v3 = vpop.f32.mrb[22].mxu0 }
 0xc0a   : > { %v2218_v4 = vpop.f32.mrb[23].mxu0  ;;  %2222 = vmatmul.mubr.msk.bf16.vlgmr.msra.gmra.mrb[28].mxu1 %vm849_vm2, %v1570_v1 }
 0xc0b   : > { %2235 = vmatprep.mubr.msk.bf16.mxu1 %vm2433_vm1, %v2432_v8  ;;  %2232 = vmatpush3.bf16.msra.mxu1 %v2308_v5 }
 0xc0c   : > { %2233 = vmatprep.subr.bf16.mxu1 %v2432_v8 }
 0xc0f   : > { %2234 = vmatpush3.bf16.msra.mxu1 %v2309_v6 }
 0xc6a   : > { %v1663_v7 = vpop.f32.mrb[24].mxu0 }
 0xc6b   : > { %v2229_v9 = vpop.f32.mrb[25].mxu0 }
 0xc6c   : > { %v1666_v10 = vpop.f32.mrb[26].mxu0 }
 0xc6d   : > { %v2230_v11 = vpop.f32.mrb[27].mxu0 }
 0xcdd   : > { %v1614_v13 = vpop.f32.mrb[28].mxu1 }
 0xcde   : > { %v1664_v14 = vadd.f32 %v1663_v7, %v1614_v13  ;;  %v2223_v15 = vpop.f32.mrb[29].mxu1 }
 0xcdf   : > { %v1617_v16 = vpop.f32.mrb[30].mxu1 }
 0xce0   : > { %v1676_v17 = vadd.f32 %v2077_v12, %v1664_v14  ;;  %v2224_v18 = vpop.f32.mrb[31].mxu1 }
 0xce2   : > { %v1678_v19 = vadd.f32 %v1676_v17, %v2756_v57  ;;  %v2312_v57 = vld [vmem:[%s2917_s18 + $0x10] sm:$0xff]  }
 0xce3   : > { %2244 = vmatpush3.bf16.msra.mxu0 %v2312_v57 }
 0xce4   : > { %v1693_v20 = vpack.c.bf16 %v1678_v19, %v1678_v19  ;;  %2245 = vmatprep.subr.bf16.mxu0 %v2432_v8 }
 0xce6   : > { %2236 = vmatmul.mubr.msk.bf16.vlgmr.msra.gmra.mrb[32].mxu1 %vm736_vm0, %v1693_v20 }
 0xce7   : > { %2246 = vmatpush3.bf16.msra.mxu0 %v2313_v23 }
 0xdb9   : > { %v1749_v25 = vpop.f32.mrb[32].mxu1 }
 0xdba   : > { %v1750_v26 = vadd.f32 %v2078_v24, %v1749_v25  ;;  %v2237_v27 = vpop.f32.mrb[33].mxu1 }
 0xdbb   : > { %v1752_v28 = vpop.f32.mrb[34].mxu1 }
 0xdbc   : > { %v1755_v29 = vmul.f32 0.70710677, %v1750_v26  ;;  %v2238_v33 = vpop.f32.mrb[35].mxu1  ;;  %v1779_v50 = vmul.f32 0.5, %v1750_v26 }
 0xdbe   : > { %v1756_v30 = vand.u32 2147483647, %v1755_v29  ;;  %vm1776_vm12 = vcmp.lt.f32.partialorder %v1755_v29, 0.0 }
 0xdc0   : > { %v1757_v31 = vmul.f32 0.3275911, %v1756_v30  ;;  %v1770_v8 = vsub.f32 0.0, %v1756_v30 }
 0xdc2   : > { %v1758_v32 = vadd.f32 1.0, %v1757_v31  ;;  %v1771_v35 = vmul.f32 %v1770_v8, %v1756_v30 }
 0xdc4   : > { %2334 = vrcp.f32 %v1758_v32  ;;  %v1772_v38 = vmul.f32 1.442695, %v1771_v35 }
 0xdc6   : > { %2336 = vpow2.f32 %v1772_v38 }
 0xdce   : > { %v2335_v34 = vpop.eup %2334 }
 0xdcf   : > { %v1761_v36 = vmul.f32 1.0614054, %v2335_v34 }
 0xdd0   : > { %v2337_v45 = vpop.eup %2336 }
 0xdd1   : > { %v1762_v37 = vadd.f32 -1.4531521, %v1761_v36 }
 0xdd3   : > { %v1763_v39 = vmul.f32 %v2335_v34, %v1762_v37 }
 0xdd5   : > { %v1764_v0 = vadd.f32 1.4214138, %v1763_v39 }
 0xdd7   : > { %v1765_v40 = vmul.f32 %v2335_v34, %v1764_v0 }
 0xdd9   : > { %v1766_v41 = vadd.f32 -0.28449672, %v1765_v40 }
 0xddb   : > { %v1767_v42 = vmul.f32 %v2335_v34, %v1766_v41 }
 0xddd   : > { %v1768_v43 = vadd.f32 0.2548296, %v1767_v42 }
 0xddf   : > { %v1769_v44 = vmul.f32 %v2335_v34, %v1768_v43 }
 0xde1   : > { %v1774_v46 = vmul.f32 %v2337_v45, %v1769_v44 }
 0xde3   : > { %v1775_v47 = vsub.f32 1.0, %v1774_v46 }
 0xde5   : > { %v1777_v48 = vsub.f32 0.0, %v1775_v47 }
 0xde7   : > { %v1778_v49 = vsel %vm1776_vm12, %v1777_v48, %v1775_v47 }
 0xde8   : > { %v1780_v51 = vadd.f32 1.0, %v1778_v49 }
 0xdea   : > { %v1781_v52 = vmul.f32 %v1780_v51, %v1779_v50 }
 0xdec   : > { %v1782_v53 = vpack.c.bf16 %v1781_v52, %v1781_v52 }
 0xdee   : > { %2248 = vmatmul.mubr.msk.bf16.vlgmr.msra.gmra.mrb[28].mxu0 %vm1807_vm13, %v1782_v53 }
 0xec1   : > { %v1845_v54 = vpop.f32.mrb[28].mxu0 }
 0xec2   : > { %v1851_v56 = vadd.f32 %v1845_v54, %v1678_v19  ;;  %v2249_v58 = vpop.f32.mrb[29].mxu0 }
 0xec3   : > { %v1848_v59 = vpop.f32.mrb[30].mxu0 }
 0xec4   : > { %v2250_v60 = vpop.f32.mrb[31].mxu0  ;;  %v1858_v61 = vadd.f32 %v2087_v55, %v1851_v56 }
 0xec6   : > { %v1861_v62 = vsel %vm736_vm0, %v1858_v61, 0.0 }
 0xec7   : > { %1862 = vadd.xlane.f32.xlu1 %v1861_v62 }
 0xf54   : > { %v1863_v63 = vpop.xlane.xlu1 %1862 }
 0xf55   : > { %v1864_v1 = vmul.f32 0.03125, %v1863_v63 }
 0xf57   : > { %v1865_v2 = vsub.f32 %v1858_v61, %v1864_v1 }
 0xf59   : > { %v1866_v3 = vmul.f32 %v1865_v2, %v1865_v2 }
 0xf5b   : > { %v1867_v4 = vsel %vm736_vm0, %v1866_v3, 0.0 }
 0xf5c   : > { %1868 = vadd.xlane.f32.xlu0 %v1867_v4 }
 0xf5d   : > { %2377 = shalt.err (!%p2374_p13)
}
 0xf5e   : > { %s2378_s9 = scalar_lea.hbm %s2851_s3, 128  ;;  %s2382_s11 = scalar_lea.hbm %s2922_s23, 256 }
 0xf5f   : > { %p2379_p0 = scmp.ne.s32.totalorder %s2851_s3, %s2378_s9  ;;  %p2383_p5 = scmp.lt.u32.totalorder %s2851_s3, %s2922_s23 }
 0xf60   : > { %p2384_p6 = scmp.lt.u32.totalorder %s2382_s11, %s2378_s9  ;;  %p2386_p8 = scmp.lt.u32.totalorder %s2378_s9, %s2851_s3 }
 0xf61   : > { %p2380_p3 = pnand %p2379_p0, %p2610_p1 }
 0xf62   : > { %p2385_p7 = por %p2384_p6, %p2383_p5 }
 0xf63   : > { %p2381_p4 = pneg %p2380_p3 }
 0xf64   : > { %p2387_p9 = por %p2386_p8, %p2385_p7 }
 0xf66   : > { %p2388_p10 = pnand %p2387_p9, %p2381_p4 }
 0xf68   : > { %2391 = shalt.err (!%p2388_p10)
}
 0xf69   : > { %2251 = dma.vmem_to_hbm [thread:$0]  (%p2610_p1), %s1917_s26, 128, %s2851_s3, %s1896_s30   ;;  %v2088_v10 = vld [vmem:[%s2919_s20] ss:$0 sm:$0xff] }
 0xf6a   : > { %v2089_v12 = vld [vmem:[%s2920_s21] ss:$0 sm:$0xff]  ;;  %s724_s9 = scalar_lea.vmem %s2921_s22, %s2622_s29 }
 0xfe9   : > { %v1869_v5 = vpop.xlane.xlu0 %1868 }
 0xfea   : > { %v1870_v6 = vmul.f32 0.03125, %v1869_v5 }
 0xfec   : > { %v1871_v7 = vadd.f32 1e-05, %v1870_v6 }
 0xfee   : > { %2338 = vrsqrt.f32 %v1871_v7 }
 0xff8   : > { %v2339_v9 = vpop.eup %2338 }
 0xff9   : > { %v1873_v11 = vmul.f32 %v2339_v9, %v1865_v2 }
 0xffb   : > { %v1880_v13 = vmul.f32 %v2088_v10, %v1873_v11 }
 0xffd   : > { %v1887_v14 = vadd.f32 %v2089_v12, %v1880_v13 }
 0xfff   : > { %1888 = vst.msk [vmem:[%s724_s9] sm:$0xff] %vm736_vm0, %v1887_v14 }
0x1000 PF: > { %p2257_p1 = scmp.ge.s32.totalorder %s2428_s19, 2  ;;  %s1938_s26 = sand.u32 1, %s2416_s1  }
0x1001   : > { %s1939_s3 = scalar_lea.sflag [#allocation6], %s1938_s26 }
0x1002   : > { %p2254_p11 = pnand %p2257_p1, %p2614_p2 }
0x1004   : > { %2411 = dma.done.wait (!%p2254_p11), %s1939_s3, 128  }
0x1005   : > { %2413 = vsyncadd (!%p2254_p11), %s1939_s3, 4294967168  ;;  %s2971_s30 = sld [smem:[#allocation9_spill]]  ;;  %s2972_s25 = sld [smem:[#allocation10_spill]] }
0x1006   : > { %p45_p12 = scmp.ge.s32.totalorder %s2597_s2, 4   ;;  %s2973_s1 = smov %s2420_s4 }
0x1007   : > { %s2975_s19 = smov %s2597_s2 }
0x1008   :  { %47 = sbr.rel (!%p45_p12) target bundleno = 41 (0x29), region = 162 }
0x100b   : > { %s2974_s4 = smov %s2971_s30 }
0x100f   :  { %1951 = vsyncpa [#allocation6], 1 }
0x1010   :  { %1953 = vsyncpa [#allocation6 + $0x1], 1 }

</bundles_post_ra>
